<compile_context>
chip_gen: v5e
topology: v5e:2x2
jax: 0.10.0
libtpu: 0.0.40
codegen_flags: <defaults>
</compile_context>

<pallas_src>
import jax
import jax.numpy as jnp
from jax.experimental import pallas as pl
from jax.experimental.pallas import tpu as pltpu

CP = 128  # lane-padded channel width (vreg lane count)


# ----------------------------- Pallas kernel ------------------------------- #

def _make_block_kernel(tap_plan, res_tap, h_out, w_out, c_in):
    """Fused residual-block body for ONE image (one grid step).

    Refs:
      x_ref  : (P, Hs, Ws, C_in)  bf16  stride-phase-decomposed, halo-padded input
      w1_ref : (9*128, 128)       bf16  conv1 weights, BN1 folded, tap-slot layout
      b1_ref : (1, 128)           f32   folded conv1/BN1 bias
      w2_ref : (9*128, 128)       bf16  conv2 weights, BN2 folded, tap-slot layout
      b2_ref : (1, 128)           f32   folded conv2/BN2 bias
      wr_ref : (C_in, 128)        bf16  residual 1x1 weights (BN folded) or identity
      br_ref : (1, 128)           f32   residual bias (zeros for identity path)
      o_ref  : (1, M, 128)        f32   block output, M = h_out * w_out
      p1_ref : (M, 9*128)         bf16  conv1 patch scratch (aligned tap slots)
      p2_ref : (M, 9*128)         bf16  conv2 patch scratch (aligned tap slots)
      y1_ref : (h_out+2, w_out+2, 128) bf16  halo-padded conv1 activation
    """
    k2 = len(tap_plan)                 # 9 taps for 3x3
    k = int(round(k2 ** 0.5))
    m = h_out * w_out

    def kernel(x_ref, w1_ref, b1_ref, w2_ref, b2_ref, wr_ref, br_ref,
               o_ref, p1_ref, p2_ref, y1_ref):
        # Re-zero scratches each step (cheap VMEM stores): conv1 only fills the
        # first c_in lanes of each 128-wide tap slot (rest must be 0), and y1
        # keeps a 1-pixel zero halo.  Unconditional so it is correct under
        # "parallel" grid semantics (each core gets a freshly zeroed scratch).
        p1_ref[...] = jnp.zeros_like(p1_ref)
        y1_ref[...] = jnp.zeros_like(y1_ref)

        # ---- conv1 patch pack: 9 shifted slices into lane-ALIGNED 128-wide slots
        for t, (ph, oi, oj) in enumerate(tap_plan):
            xt = x_ref[ph, oi:oi + h_out, oj:oj + w_out, :].reshape(m, c_in)
            p1_ref[:, t * CP:t * CP + c_in] = xt

        # ---- conv1 + bn1 + relu : ONE (M, 9*128) @ (9*128, 128) MXU matmul
        y1 = jnp.dot(p1_ref[...], w1_ref[...], preferred_element_type=jnp.float32)
        y1 = jnp.maximum(y1 + b1_ref[...], 0.0)
        y1_ref[1:1 + h_out, 1:1 + w_out, :] = (
            y1.astype(y1_ref.dtype).reshape(h_out, w_out, CP))

        # ---- residual: downsample conv1x1+BN (folded) or identity embedding,
        #      one small matmul, kept in f32, never leaves VMEM.
        pr, ri, rj = res_tap
        xr = x_ref[pr, ri:ri + h_out, rj:rj + w_out, :].reshape(m, c_in)
        res = jnp.dot(xr, wr_ref[...],
                      preferred_element_type=jnp.float32) + br_ref[...]

        # ---- conv2 patch pack: lane-dense 128-wide slots from padded y1 scratch
        for t in range(k2):
            di, dj = t // k, t % k
            p2_ref[:, t * CP:(t + 1) * CP] = (
                y1_ref[di:di + h_out, dj:dj + w_out, :].reshape(m, CP))

        # ---- conv2 + bn2 + residual + relu : ONE MXU matmul, lane-dense store
        y2 = jnp.dot(p2_ref[...], w2_ref[...], preferred_element_type=jnp.float32)
        o_ref[0] = jnp.maximum(y2 + b2_ref[...] + res, 0.0).astype(o_ref.dtype)

    return kernel


# ------------------------------ JAX glue ----------------------------------- #

def _phase_decompose(x_nhwc, pad, stride, ksize):
    """Halo-pad spatially and split into stride*stride phases (done ONCE per block).

    phases[n, p] = x_pad[n, pi::stride, pj::stride, :] with p = pi*stride + pj.
    tap_plan[t]  = (phase_index, row_offset, col_offset) for conv tap t = di*k + dj.
    Total bytes == input bytes (no im2col blow-up); all in-kernel slices are unit stride.
    """
    N, H, W, C = x_nhwc.shape
    h_out = (H + 2 * pad - ksize) // stride + 1
    w_out = (W + 2 * pad - ksize) // stride + 1
    hs = -(-(H + 2 * pad) // stride)
    ws = -(-(W + 2 * pad) // stride)
    xp = jnp.pad(x_nhwc, ((0, 0),
                          (pad, hs * stride - H - pad),
                          (pad, ws * stride - W - pad),
                          (0, 0)))
    if stride == 1:
        phases = xp[:, None]                                      # (N, 1, hs, ws, C)
    else:
        phases = xp.reshape(N, hs, stride, ws, stride, C)
        phases = jnp.transpose(phases, (0, 2, 4, 1, 3, 5))
        phases = phases.reshape(N, stride * stride, hs, ws, C)
    tap_plan = tuple(
        ((di % stride) * stride + (dj % stride), di // stride, dj // stride)
        for di in range(ksize) for dj in range(ksize))
    return phases, tap_plan, h_out, w_out, hs, ws


def _fold_bn(w, b, g, be, m, v, eps=1e-5):
    """Fold inference-mode BatchNorm into conv weight & bias (f32)."""
    s = g / jnp.sqrt(v + eps)
    return w * s[:, None, None, None], (b - m) * s + be


def _flat3x3(w_folded):
    """(C_out, C_src, 3, 3) folded weights -> (9*128, 128) bf16 tap-slot layout."""
    c_o, c_s = w_folded.shape[0], w_folded.shape[1]
    wt = jnp.transpose(w_folded, (2, 3, 1, 0)).reshape(9, c_s, c_o)
    wt = jnp.pad(wt, ((0, 0), (0, CP - c_s), (0, CP - c_o)))
    return wt.reshape(9 * CP, CP).astype(jnp.bfloat16)


def _pad_bias(b):
    return jnp.pad(b, (0, CP - b.shape[0])).reshape(1, CP).astype(jnp.float32)


def basic_residual_block(x_nchw, params, *, stride):
    """Forward pass of BasicResidualBlock. Input/output in NCHW (PyTorch layout)."""
    x = jnp.transpose(x_nchw, (0, 2, 3, 1)).astype(jnp.bfloat16)   # NCHW -> NHWC bf16
    N, H, W, c_in = x.shape
    c_out = params["w1"].shape[0]
    has_ds = (stride != 1) or (c_in != c_out)

    # ---- fold BN into conv weights / biases, pad channels to 128 (lane-dense)
    w1f, b1f = _fold_bn(params["w1"], params["b1"], params["g1"], params["be1"],
                        params["m1"], params["v1"])
    w2f, b2f = _fold_bn(params["w2"], params["b2"], params["g2"], params["be2"],
                        params["m2"], params["v2"])
    w1_flat, b1_vec = _flat3x3(w1f), _pad_bias(b1f)
    w2_flat, b2_vec = _flat3x3(w2f), _pad_bias(b2f)

    if has_ds:
        wdf, bdf = _fold_bn(params["w_ds"], params["b_ds"], params["g_ds"],
                            params["be_ds"], params["m_ds"], params["v_ds"])
        wr = jnp.transpose(wdf[:, :, 0, 0], (1, 0))                 # (c_in, c_out)
        wr = jnp.pad(wr, ((0, 0), (0, CP - c_out))).astype(jnp.bfloat16)
        br = _pad_bias(bdf)
    else:
        # Identity residual expressed as a (c_in, 128) embedding matmul so the
        # kernel has a single code path (values 0/1 are exact in bf16).
        wr = jnp.pad(jnp.eye(c_in, dtype=jnp.float32),
                     ((0, 0), (0, CP - c_in))).astype(jnp.bfloat16)
        br = jnp.zeros((1, CP), jnp.float32)

    # ---- single halo-pad + stride-phase decomposition at block entry
    phases, tap_plan, h1, w1, hs, ws = _phase_decompose(x, 1, stride, 3)
    P = stride * stride
    M = h1 * w1
    phases = phases.reshape(N * P, hs, ws, c_in)

    # Residual input tap: x[s*i, s*j] = x_pad[s*i+1, s*j+1].
    if stride == 1:
        res_tap = (0, 1, 1)
    else:
        res_tap = ((1 % stride) * stride + (1 % stride), 0, 0)

    kernel = _make_block_kernel(tap_plan, res_tap, h1, w1, c_in)

    out = pl.pallas_call(
        kernel,
        out_shape=jax.ShapeDtypeStruct((N, M, CP), jnp.float32),
        grid=(N,),
        in_specs=[
            pl.BlockSpec((P, hs, ws, c_in), lambda n: (n, 0, 0, 0)),  # image n phases
            pl.BlockSpec((9 * CP, CP), lambda n: (0, 0)),             # conv1 weights
            pl.BlockSpec((1, CP), lambda n: (0, 0)),                  # conv1 bias
            pl.BlockSpec((9 * CP, CP), lambda n: (0, 0)),             # conv2 weights
            pl.BlockSpec((1, CP), lambda n: (0, 0)),                  # conv2 bias
            pl.BlockSpec((c_in, CP), lambda n: (0, 0)),               # residual weights
            pl.BlockSpec((1, CP), lambda n: (0, 0)),                  # residual bias
        ],
        out_specs=pl.BlockSpec((1, M, CP), lambda n: (n, 0, 0)),
        scratch_shapes=[
            pltpu.VMEM((M, 9 * CP), jnp.bfloat16),              # conv1 patch
            pltpu.VMEM((M, 9 * CP), jnp.bfloat16),              # conv2 patch
            pltpu.VMEM((h1 + 2, w1 + 2, CP), jnp.bfloat16),     # halo-padded y1
        ],
        compiler_params=pltpu.CompilerParams(
            dimension_semantics=("parallel",),
            # Working set is ~2 MiB; 32 MiB is safe on every generation
            # (re-derive per generation once row-banded at larger shapes).
            vmem_limit_bytes=32 * 1024 * 1024),
    )(phases, w1_flat, b1_vec, w2_flat, b2_vec, wr, br)

    # Slice off the channel padding inside the NHWC->NCHW transpose the
    # interface needs anyway (kernel's HBM store stays lane-dense).
    out = out[:, :, :c_out].reshape(N, h1, w1, c_out)
    return jnp.transpose(out, (0, 3, 1, 2))


# --------------------------- pure-JAX reference ----------------------------- #

def _ref_conv(x, w, b, stride, padding):
    y = jax.lax.conv_general_dilated(
        x, w, (stride, stride), [(padding, padding)] * 2,
        dimension_numbers=("NCHW", "OIHW", "NCHW"))
    return y + b.reshape(1, -1, 1, 1)


def _ref_bn(y, g, be, m, v, eps=1e-5):
    rs = lambda a: a.reshape(1, -1, 1, 1)
    return (y - rs(m)) / jnp.sqrt(rs(v) + eps) * rs(g) + rs(be)


def reference_block(x, p, stride):
    c_in = x.shape[1]
    c_out = p["w1"].shape[0]
    if stride != 1 or c_in != c_out:
        res = _ref_bn(_ref_conv(x, p["w_ds"], p["b_ds"], stride, 0),
                      p["g_ds"], p["be_ds"], p["m_ds"], p["v_ds"])
    else:
        res = x
    y = jax.nn.relu(_ref_bn(_ref_conv(x, p["w1"], p["b1"], stride, 1),
                            p["g1"], p["be1"], p["m1"], p["v1"]))
    y = _ref_bn(_ref_conv(y, p["w2"], p["b2"], 1, 1),
                p["g2"], p["be2"], p["m2"], p["v2"])
    return jax.nn.relu(y + res)


# --------------------------------- main ------------------------------------ #

def _make_params(key, c_in, c_out, with_ds):
    ks = jax.random.split(key, 18)
    f32 = jnp.float32
    u = lambda k: jax.random.uniform(k, (c_out,), f32, 0.5, 1.5)
    n = lambda k, s: 0.1 * jax.random.normal(k, s, f32)
    p = {
        "w1": n(ks[0], (c_out, c_in, 3, 3)), "b1": n(ks[1], (c_out,)),
        "g1": u(ks[2]), "be1": n(ks[3], (c_out,)),
        "m1": n(ks[4], (c_out,)), "v1": u(ks[5]),
        "w2": n(ks[6], (c_out, c_out, 3, 3)), "b2": n(ks[7], (c_out,)),
        "g2": u(ks[8]), "be2": n(ks[9], (c_out,)),
        "m2": n(ks[10], (c_out,)), "v2": u(ks[11]),
    }
    if with_ds:
        p.update({
            "w_ds": n(ks[12], (c_out, c_in, 1, 1)), "b_ds": n(ks[13], (c_out,)),
            "g_ds": u(ks[14]), "be_ds": n(ks[15], (c_out,)),
            "m_ds": n(ks[16], (c_out,)), "v_ds": u(ks[17]),
        })
    return p


def _check(name, out, ref, atol=2e-2, rtol=2e-2):
    # bf16 MXU operands + bf16 VMEM intermediate (y1) vs. the f32 XLA reference.
    err = float(jnp.max(jnp.abs(out - ref)))
    if not jnp.allclose(out, ref, atol=atol, rtol=rtol):
        raise AssertionError(f"{name}: Pallas output mismatch (max abs err {err:.4e})")


if __name__ == "__main__":
    key = jax.random.PRNGKey(0)
    k_p1, k_p2, k_x1, k_x2 = jax.random.split(key, 4)

    block_fn = jax.jit(basic_residual_block, static_argnames=("stride",))

    # Case 1: stride-2 block with 1x1 downsample residual (4 -> 8 channels).
    p1 = _make_params(k_p1, 4, 8, with_ds=True)
    x1 = jax.random.normal(k_x1, (2, 4, 16, 16), jnp.float32)
    out1 = jax.block_until_ready(block_fn(x1, p1, stride=2))
    assert out1.shape == (2, 8, 8, 8), out1.shape
    ref1 = jax.block_until_ready(reference_block(x1, p1, 2))
    _check("downsample path", out1, ref1)

    # Case 2: stride-1 identity-residual block (8 -> 8 channels).
    p2 = _make_params(k_p2, 8, 8, with_ds=False)
    x2 = jax.random.normal(k_x2, (2, 8, 16, 16), jnp.float32)
    out2 = jax.block_until_ready(block_fn(x2, p2, stride=1))
    assert out2.shape == (2, 8, 16, 16), out2.shape
    ref2 = jax.block_until_ready(reference_block(x2, p2, 1))
    _check("identity path", out2, ref2)

    print("KERNEL_OK")
</pallas_src>

<mosaic_0001>
module attributes {stable_mosaic.version = 11 : i64} {
  func.func @kernel(%arg0: i32, %arg1: memref<4x9x9x4xbf16, #tpu.memory_space<vmem>>, %arg2: memref<1152x128xbf16, #tpu.memory_space<vmem>>, %arg3: memref<1x128xf32, #tpu.memory_space<vmem>>, %arg4: memref<1152x128xbf16, #tpu.memory_space<vmem>>, %arg5: memref<1x128xf32, #tpu.memory_space<vmem>>, %arg6: memref<4x128xbf16, #tpu.memory_space<vmem>>, %arg7: memref<1x128xf32, #tpu.memory_space<vmem>>, %arg8: memref<1x64x128xf32, #tpu.memory_space<vmem>>, %arg9: memref<64x1152xbf16, #tpu.memory_space<vmem>>, %arg10: memref<64x1152xbf16, #tpu.memory_space<vmem>>, %arg11: memref<10x10x128xbf16, #tpu.memory_space<vmem>>) attributes {dimension_semantics = [#tpu.dimension_semantics<parallel>], iteration_bounds = array<i64: 2>, scalar_prefetch = 0 : i64, scratch_operands = 3 : i64, tpu.core_type = #tpu.core_type<tc>, window_params = [{transform_indices = @transform_0, window_bounds = array<i64: 4, 9, 9, 4>}, {pipeline_mode = #tpu.pipeline_mode<synchronous>, transform_indices = @transform_1, window_bounds = array<i64: 1152, 128>}, {pipeline_mode = #tpu.pipeline_mode<synchronous>, transform_indices = @transform_2, window_bounds = array<i64: 1, 128>}, {pipeline_mode = #tpu.pipeline_mode<synchronous>, transform_indices = @transform_3, window_bounds = array<i64: 1152, 128>}, {pipeline_mode = #tpu.pipeline_mode<synchronous>, transform_indices = @transform_4, window_bounds = array<i64: 1, 128>}, {pipeline_mode = #tpu.pipeline_mode<synchronous>, transform_indices = @transform_5, window_bounds = array<i64: 4, 128>}, {pipeline_mode = #tpu.pipeline_mode<synchronous>, transform_indices = @transform_6, window_bounds = array<i64: 1, 128>}, {transform_indices = @transform_7, window_bounds = array<i64: 1, 64, 128>}]} {
    %cst = arith.constant 0.000000e+00 : bf16
    %0 = vector.broadcast %cst : bf16 to vector<64x1152xbf16>
    %c0 = arith.constant 0 : index
    %c0_0 = arith.constant 0 : index
    %1 = vector.load %arg9[%c0, %c0_0] : memref<64x1152xbf16, #tpu.memory_space<vmem>>, vector<64x1152xbf16>
    tpu.vector_store %arg9[%c0, %c0_0], %0 {strides = array<i32>} : memref<64x1152xbf16, #tpu.memory_space<vmem>>, vector<64x1152xbf16>,
    %cst_1 = arith.constant 0.000000e+00 : bf16
    %2 = vector.broadcast %cst_1 : bf16 to vector<10x10x128xbf16>
    %c0_2 = arith.constant 0 : index
    %c0_3 = arith.constant 0 : index
    %c0_4 = arith.constant 0 : index
    %3 = vector.load %arg11[%c0_2, %c0_3, %c0_4] : memref<10x10x128xbf16, #tpu.memory_space<vmem>>, vector<10x10x128xbf16>
    tpu.vector_store %arg11[%c0_2, %c0_3, %c0_4], %2 {strides = array<i32>} : memref<10x10x128xbf16, #tpu.memory_space<vmem>>, vector<10x10x128xbf16>,
    %c0_5 = arith.constant 0 : index
    %c0_6 = arith.constant 0 : index
    %c0_7 = arith.constant 0 : index
    %c0_8 = arith.constant 0 : index
    %4 = vector.load %arg1[%c0_5, %c0_6, %c0_7, %c0_8] : memref<4x9x9x4xbf16, #tpu.memory_space<vmem>>, vector<1x8x8x4xbf16>
    %5 = vector.shape_cast %4 : vector<1x8x8x4xbf16> to vector<8x8x4xbf16>
    %6 = vector.shape_cast %5 : vector<8x8x4xbf16> to vector<64x4xbf16>
    %c0_9 = arith.constant 0 : index
    %c0_10 = arith.constant 0 : index
    %7 = vector.load %arg9[%c0_9, %c0_10] : memref<64x1152xbf16, #tpu.memory_space<vmem>>, vector<64x4xbf16>
    tpu.vector_store %arg9[%c0_9, %c0_10], %6 {strides = array<i32>} : memref<64x1152xbf16, #tpu.memory_space<vmem>>, vector<64x4xbf16>,
    %c1 = arith.constant 1 : index
    %c0_11 = arith.constant 0 : index
    %c0_12 = arith.constant 0 : index
    %c0_13 = arith.constant 0 : index
    %8 = vector.load %arg1[%c1, %c0_11, %c0_12, %c0_13] : memref<4x9x9x4xbf16, #tpu.memory_space<vmem>>, vector<1x8x8x4xbf16>
    %9 = vector.shape_cast %8 : vector<1x8x8x4xbf16> to vector<8x8x4xbf16>
    %10 = vector.shape_cast %9 : vector<8x8x4xbf16> to vector<64x4xbf16>
    %c0_14 = arith.constant 0 : index
    %c128 = arith.constant 128 : index
    %11 = vector.load %arg9[%c0_14, %c128] : memref<64x1152xbf16, #tpu.memory_space<vmem>>, vector<64x4xbf16>
    tpu.vector_store %arg9[%c0_14, %c128], %10 {strides = array<i32>} : memref<64x1152xbf16, #tpu.memory_space<vmem>>, vector<64x4xbf16>,
    %c0_15 = arith.constant 0 : index
    %c0_16 = arith.constant 0 : index
    %c1_17 = arith.constant 1 : index
    %c0_18 = arith.constant 0 : index
    %12 = vector.load %arg1[%c0_15, %c0_16, %c1_17, %c0_18] : memref<4x9x9x4xbf16, #tpu.memory_space<vmem>>, vector<1x8x8x4xbf16>
    %13 = vector.shape_cast %12 : vector<1x8x8x4xbf16> to vector<8x8x4xbf16>
    %14 = vector.shape_cast %13 : vector<8x8x4xbf16> to vector<64x4xbf16>
    %c0_19 = arith.constant 0 : index
    %c256 = arith.constant 256 : index
    %15 = vector.load %arg9[%c0_19, %c256] : memref<64x1152xbf16, #tpu.memory_space<vmem>>, vector<64x4xbf16>
    tpu.vector_store %arg9[%c0_19, %c256], %14 {strides = array<i32>} : memref<64x1152xbf16, #tpu.memory_space<vmem>>, vector<64x4xbf16>,
    %c2 = arith.constant 2 : index
    %c0_20 = arith.constant 0 : index
    %c0_21 = arith.constant 0 : index
    %c0_22 = arith.constant 0 : index
    %16 = vector.load %arg1[%c2, %c0_20, %c0_21, %c0_22] : memref<4x9x9x4xbf16, #tpu.memory_space<vmem>>, vector<1x8x8x4xbf16>
    %17 = vector.shape_cast %16 : vector<1x8x8x4xbf16> to vector<8x8x4xbf16>
    %18 = vector.shape_cast %17 : vector<8x8x4xbf16> to vector<64x4xbf16>
    %c0_23 = arith.constant 0 : index
    %c384 = arith.constant 384 : index
    %19 = vector.load %arg9[%c0_23, %c384] : memref<64x1152xbf16, #tpu.memory_space<vmem>>, vector<64x4xbf16>
    tpu.vector_store %arg9[%c0_23, %c384], %18 {strides = array<i32>} : memref<64x1152xbf16, #tpu.memory_space<vmem>>, vector<64x4xbf16>,
    %c3 = arith.constant 3 : index
    %c0_24 = arith.constant 0 : index
    %c0_25 = arith.constant 0 : index
    %c0_26 = arith.constant 0 : index
    %20 = vector.load %arg1[%c3, %c0_24, %c0_25, %c0_26] : memref<4x9x9x4xbf16, #tpu.memory_space<vmem>>, vector<1x8x8x4xbf16>
    %21 = vector.shape_cast %20 : vector<1x8x8x4xbf16> to vector<8x8x4xbf16>
    %22 = vector.shape_cast %21 : vector<8x8x4xbf16> to vector<64x4xbf16>
    %c0_27 = arith.constant 0 : index
    %c512 = arith.constant 512 : index
    %23 = vector.load %arg9[%c0_27, %c512] : memref<64x1152xbf16, #tpu.memory_space<vmem>>, vector<64x4xbf16>
    tpu.vector_store %arg9[%c0_27, %c512], %22 {strides = array<i32>} : memref<64x1152xbf16, #tpu.memory_space<vmem>>, vector<64x4xbf16>,
    %c2_28 = arith.constant 2 : index
    %c0_29 = arith.constant 0 : index
    %c1_30 = arith.constant 1 : index
    %c0_31 = arith.constant 0 : index
    %24 = vector.load %arg1[%c2_28, %c0_29, %c1_30, %c0_31] : memref<4x9x9x4xbf16, #tpu.memory_space<vmem>>, vector<1x8x8x4xbf16>
    %25 = vector.shape_cast %24 : vector<1x8x8x4xbf16> to vector<8x8x4xbf16>
    %26 = vector.shape_cast %25 : vector<8x8x4xbf16> to vector<64x4xbf16>
    %c0_32 = arith.constant 0 : index
    %c640 = arith.constant 640 : index
    %27 = vector.load %arg9[%c0_32, %c640] : memref<64x1152xbf16, #tpu.memory_space<vmem>>, vector<64x4xbf16>
    tpu.vector_store %arg9[%c0_32, %c640], %26 {strides = array<i32>} : memref<64x1152xbf16, #tpu.memory_space<vmem>>, vector<64x4xbf16>,
    %c0_33 = arith.constant 0 : index
    %c1_34 = arith.constant 1 : index
    %c0_35 = arith.constant 0 : index
    %c0_36 = arith.constant 0 : index
    %28 = vector.load %arg1[%c0_33, %c1_34, %c0_35, %c0_36] : memref<4x9x9x4xbf16, #tpu.memory_space<vmem>>, vector<1x8x8x4xbf16>
    %29 = vector.shape_cast %28 : vector<1x8x8x4xbf16> to vector<8x8x4xbf16>
    %30 = vector.shape_cast %29 : vector<8x8x4xbf16> to vector<64x4xbf16>
    %c0_37 = arith.constant 0 : index
    %c768 = arith.constant 768 : index
    %31 = vector.load %arg9[%c0_37, %c768] : memref<64x1152xbf16, #tpu.memory_space<vmem>>, vector<64x4xbf16>
    tpu.vector_store %arg9[%c0_37, %c768], %30 {strides = array<i32>} : memref<64x1152xbf16, #tpu.memory_space<vmem>>, vector<64x4xbf16>,
    %c1_38 = arith.constant 1 : index
    %c1_39 = arith.constant 1 : index
    %c0_40 = arith.constant 0 : index
    %c0_41 = arith.constant 0 : index
    %32 = vector.load %arg1[%c1_38, %c1_39, %c0_40, %c0_41] : memref<4x9x9x4xbf16, #tpu.memory_space<vmem>>, vector<1x8x8x4xbf16>
    %33 = vector.shape_cast %32 : vector<1x8x8x4xbf16> to vector<8x8x4xbf16>
    %34 = vector.shape_cast %33 : vector<8x8x4xbf16> to vector<64x4xbf16>
    %c0_42 = arith.constant 0 : index
    %c896 = arith.constant 896 : index
    %35 = vector.load %arg9[%c0_42, %c896] : memref<64x1152xbf16, #tpu.memory_space<vmem>>, vector<64x4xbf16>
    tpu.vector_store %arg9[%c0_42, %c896], %34 {strides = array<i32>} : memref<64x1152xbf16, #tpu.memory_space<vmem>>, vector<64x4xbf16>,
    %c0_43 = arith.constant 0 : index
    %c1_44 = arith.constant 1 : index
    %c1_45 = arith.constant 1 : index
    %c0_46 = arith.constant 0 : index
    %36 = vector.load %arg1[%c0_43, %c1_44, %c1_45, %c0_46] : memref<4x9x9x4xbf16, #tpu.memory_space<vmem>>, vector<1x8x8x4xbf16>
    %37 = vector.shape_cast %36 : vector<1x8x8x4xbf16> to vector<8x8x4xbf16>
    %38 = vector.shape_cast %37 : vector<8x8x4xbf16> to vector<64x4xbf16>
    %c0_47 = arith.constant 0 : index
    %c1024 = arith.constant 1024 : index
    %39 = vector.load %arg9[%c0_47, %c1024] : memref<64x1152xbf16, #tpu.memory_space<vmem>>, vector<64x4xbf16>
    tpu.vector_store %arg9[%c0_47, %c1024], %38 {strides = array<i32>} : memref<64x1152xbf16, #tpu.memory_space<vmem>>, vector<64x4xbf16>,
    %c0_48 = arith.constant 0 : index
    %c0_49 = arith.constant 0 : index
    %40 = vector.load %arg9[%c0_48, %c0_49] : memref<64x1152xbf16, #tpu.memory_space<vmem>>, vector<64x1152xbf16>
    %c0_50 = arith.constant 0 : index
    %c0_51 = arith.constant 0 : index
    %41 = vector.load %arg2[%c0_50, %c0_51] : memref<1152x128xbf16, #tpu.memory_space<vmem>>, vector<1152x128xbf16>
    %cst_52 = arith.constant dense<0.000000e+00> : vector<64x128xf32>
    %42 = tpu.matmul %40, %41, %cst_52 {dimension_numbers = #tpu.dot_dimension_numbers<[1], [0], [0], [1], [0, 0, 1, 1], [], []>} : vector<64x1152xbf16>, vector<1152x128xbf16>, vector<64x128xf32> -> vector<64x128xf32>
    %c0_53 = arith.constant 0 : index
    %c0_54 = arith.constant 0 : index
    %43 = vector.load %arg3[%c0_53, %c0_54] : memref<1x128xf32, #tpu.memory_space<vmem>>, vector<1x128xf32>
    %44 = vector.broadcast %43 : vector<1x128xf32> to vector<64x128xf32>
    %45 = arith.addf %42, %44 : vector<64x128xf32>
    %cst_55 = arith.constant 0.000000e+00 : f32
    %46 = vector.broadcast %cst_55 : f32 to vector<64x128xf32>
    %47 = arith.maximumf %45, %46 : vector<64x128xf32>
    %48 = arith.truncf %47 : vector<64x128xf32> to vector<64x128xbf16>
    %49 = vector.shape_cast %48 : vector<64x128xbf16> to vector<8x8x128xbf16>
    %c1_56 = arith.constant 1 : index
    %c1_57 = arith.constant 1 : index
    %c0_58 = arith.constant 0 : index
    %50 = vector.load %arg11[%c1_56, %c1_57, %c0_58] : memref<10x10x128xbf16, #tpu.memory_space<vmem>>, vector<8x8x128xbf16>
    tpu.vector_store %arg11[%c1_56, %c1_57, %c0_58], %49 {strides = array<i32>} : memref<10x10x128xbf16, #tpu.memory_space<vmem>>, vector<8x8x128xbf16>,
    %c3_59 = arith.constant 3 : index
    %c0_60 = arith.constant 0 : index
    %c0_61 = arith.constant 0 : index
    %c0_62 = arith.constant 0 : index
    %51 = vector.load %arg1[%c3_59, %c0_60, %c0_61, %c0_62] : memref<4x9x9x4xbf16, #tpu.memory_space<vmem>>, vector<1x8x8x4xbf16>
    %52 = vector.shape_cast %51 : vector<1x8x8x4xbf16> to vector<8x8x4xbf16>
    %53 = vector.shape_cast %52 : vector<8x8x4xbf16> to vector<64x4xbf16>
    %c0_63 = arith.constant 0 : index
    %c0_64 = arith.constant 0 : index
    %54 = vector.load %arg6[%c0_63, %c0_64] : memref<4x128xbf16, #tpu.memory_space<vmem>>, vector<4x128xbf16>
    %cst_65 = arith.constant dense<0.000000e+00> : vector<64x128xf32>
    %55 = tpu.matmul %53, %54, %cst_65 {dimension_numbers = #tpu.dot_dimension_numbers<[1], [0], [0], [1], [0, 0, 1, 1], [], []>} : vector<64x4xbf16>, vector<4x128xbf16>, vector<64x128xf32> -> vector<64x128xf32>
    %c0_66 = arith.constant 0 : index
    %c0_67 = arith.constant 0 : index
    %56 = vector.load %arg7[%c0_66, %c0_67] : memref<1x128xf32, #tpu.memory_space<vmem>>, vector<1x128xf32>
    %57 = vector.broadcast %56 : vector<1x128xf32> to vector<64x128xf32>
    %58 = arith.addf %55, %57 : vector<64x128xf32>
    %c0_68 = arith.constant 0 : index
    %c0_69 = arith.constant 0 : index
    %c0_70 = arith.constant 0 : index
    %59 = vector.load %arg11[%c0_68, %c0_69, %c0_70] : memref<10x10x128xbf16, #tpu.memory_space<vmem>>, vector<8x8x128xbf16>
    %60 = vector.shape_cast %59 : vector<8x8x128xbf16> to vector<64x128xbf16>
    %c0_71 = arith.constant 0 : index
    %c0_72 = arith.constant 0 : index
    %61 = vector.load %arg10[%c0_71, %c0_72] : memref<64x1152xbf16, #tpu.memory_space<vmem>>, vector<64x128xbf16>
    tpu.vector_store %arg10[%c0_71, %c0_72], %60 {strides = array<i32>} : memref<64x1152xbf16, #tpu.memory_space<vmem>>, vector<64x128xbf16>,
    %c0_73 = arith.constant 0 : index
    %c1_74 = arith.constant 1 : index
    %c0_75 = arith.constant 0 : index
    %62 = vector.load %arg11[%c0_73, %c1_74, %c0_75] : memref<10x10x128xbf16, #tpu.memory_space<vmem>>, vector<8x8x128xbf16>
    %63 = vector.shape_cast %62 : vector<8x8x128xbf16> to vector<64x128xbf16>
    %c0_76 = arith.constant 0 : index
    %c128_77 = arith.constant 128 : index
    %64 = vector.load %arg10[%c0_76, %c128_77] : memref<64x1152xbf16, #tpu.memory_space<vmem>>, vector<64x128xbf16>
    tpu.vector_store %arg10[%c0_76, %c128_77], %63 {strides = array<i32>} : memref<64x1152xbf16, #tpu.memory_space<vmem>>, vector<64x128xbf16>,
    %c0_78 = arith.constant 0 : index
    %c2_79 = arith.constant 2 : index
    %c0_80 = arith.constant 0 : index
    %65 = vector.load %arg11[%c0_78, %c2_79, %c0_80] : memref<10x10x128xbf16, #tpu.memory_space<vmem>>, vector<8x8x128xbf16>
    %66 = vector.shape_cast %65 : vector<8x8x128xbf16> to vector<64x128xbf16>
    %c0_81 = arith.constant 0 : index
    %c256_82 = arith.constant 256 : index
    %67 = vector.load %arg10[%c0_81, %c256_82] : memref<64x1152xbf16, #tpu.memory_space<vmem>>, vector<64x128xbf16>
    tpu.vector_store %arg10[%c0_81, %c256_82], %66 {strides = array<i32>} : memref<64x1152xbf16, #tpu.memory_space<vmem>>, vector<64x128xbf16>,
    %c1_83 = arith.constant 1 : index
    %c0_84 = arith.constant 0 : index
    %c0_85 = arith.constant 0 : index
    %68 = vector.load %arg11[%c1_83, %c0_84, %c0_85] : memref<10x10x128xbf16, #tpu.memory_space<vmem>>, vector<8x8x128xbf16>
    %69 = vector.shape_cast %68 : vector<8x8x128xbf16> to vector<64x128xbf16>
    %c0_86 = arith.constant 0 : index
    %c384_87 = arith.constant 384 : index
    %70 = vector.load %arg10[%c0_86, %c384_87] : memref<64x1152xbf16, #tpu.memory_space<vmem>>, vector<64x128xbf16>
    tpu.vector_store %arg10[%c0_86, %c384_87], %69 {strides = array<i32>} : memref<64x1152xbf16, #tpu.memory_space<vmem>>, vector<64x128xbf16>,
    %c1_88 = arith.constant 1 : index
    %c1_89 = arith.constant 1 : index
    %c0_90 = arith.constant 0 : index
    %71 = vector.load %arg11[%c1_88, %c1_89, %c0_90] : memref<10x10x128xbf16, #tpu.memory_space<vmem>>, vector<8x8x128xbf16>
    %72 = vector.shape_cast %71 : vector<8x8x128xbf16> to vector<64x128xbf16>
    %c0_91 = arith.constant 0 : index
    %c512_92 = arith.constant 512 : index
    %73 = vector.load %arg10[%c0_91, %c512_92] : memref<64x1152xbf16, #tpu.memory_space<vmem>>, vector<64x128xbf16>
    tpu.vector_store %arg10[%c0_91, %c512_92], %72 {strides = array<i32>} : memref<64x1152xbf16, #tpu.memory_space<vmem>>, vector<64x128xbf16>,
    %c1_93 = arith.constant 1 : index
    %c2_94 = arith.constant 2 : index
    %c0_95 = arith.constant 0 : index
    %74 = vector.load %arg11[%c1_93, %c2_94, %c0_95] : memref<10x10x128xbf16, #tpu.memory_space<vmem>>, vector<8x8x128xbf16>
    %75 = vector.shape_cast %74 : vector<8x8x128xbf16> to vector<64x128xbf16>
    %c0_96 = arith.constant 0 : index
    %c640_97 = arith.constant 640 : index
    %76 = vector.load %arg10[%c0_96, %c640_97] : memref<64x1152xbf16, #tpu.memory_space<vmem>>, vector<64x128xbf16>
    tpu.vector_store %arg10[%c0_96, %c640_97], %75 {strides = array<i32>} : memref<64x1152xbf16, #tpu.memory_space<vmem>>, vector<64x128xbf16>,
    %c2_98 = arith.constant 2 : index
    %c0_99 = arith.constant 0 : index
    %c0_100 = arith.constant 0 : index
    %77 = vector.load %arg11[%c2_98, %c0_99, %c0_100] : memref<10x10x128xbf16, #tpu.memory_space<vmem>>, vector<8x8x128xbf16>
    %78 = vector.shape_cast %77 : vector<8x8x128xbf16> to vector<64x128xbf16>
    %c0_101 = arith.constant 0 : index
    %c768_102 = arith.constant 768 : index
    %79 = vector.load %arg10[%c0_101, %c768_102] : memref<64x1152xbf16, #tpu.memory_space<vmem>>, vector<64x128xbf16>
    tpu.vector_store %arg10[%c0_101, %c768_102], %78 {strides = array<i32>} : memref<64x1152xbf16, #tpu.memory_space<vmem>>, vector<64x128xbf16>,
    %c2_103 = arith.constant 2 : index
    %c1_104 = arith.constant 1 : index
    %c0_105 = arith.constant 0 : index
    %80 = vector.load %arg11[%c2_103, %c1_104, %c0_105] : memref<10x10x128xbf16, #tpu.memory_space<vmem>>, vector<8x8x128xbf16>
    %81 = vector.shape_cast %80 : vector<8x8x128xbf16> to vector<64x128xbf16>
    %c0_106 = arith.constant 0 : index
    %c896_107 = arith.constant 896 : index
    %82 = vector.load %arg10[%c0_106, %c896_107] : memref<64x1152xbf16, #tpu.memory_space<vmem>>, vector<64x128xbf16>
    tpu.vector_store %arg10[%c0_106, %c896_107], %81 {strides = array<i32>} : memref<64x1152xbf16, #tpu.memory_space<vmem>>, vector<64x128xbf16>,
    %c2_108 = arith.constant 2 : index
    %c2_109 = arith.constant 2 : index
    %c0_110 = arith.constant 0 : index
    %83 = vector.load %arg11[%c2_108, %c2_109, %c0_110] : memref<10x10x128xbf16, #tpu.memory_space<vmem>>, vector<8x8x128xbf16>
    %84 = vector.shape_cast %83 : vector<8x8x128xbf16> to vector<64x128xbf16>
    %c0_111 = arith.constant 0 : index
    %c1024_112 = arith.constant 1024 : index
    %85 = vector.load %arg10[%c0_111, %c1024_112] : memref<64x1152xbf16, #tpu.memory_space<vmem>>, vector<64x128xbf16>
    tpu.vector_store %arg10[%c0_111, %c1024_112], %84 {strides = array<i32>} : memref<64x1152xbf16, #tpu.memory_space<vmem>>, vector<64x128xbf16>,
    %c0_113 = arith.constant 0 : index
    %c0_114 = arith.constant 0 : index
    %86 = vector.load %arg10[%c0_113, %c0_114] : memref<64x1152xbf16, #tpu.memory_space<vmem>>, vector<64x1152xbf16>
    %c0_115 = arith.constant 0 : index
    %c0_116 = arith.constant 0 : index
    %87 = vector.load %arg4[%c0_115, %c0_116] : memref<1152x128xbf16, #tpu.memory_space<vmem>>, vector<1152x128xbf16>
    %cst_117 = arith.constant dense<0.000000e+00> : vector<64x128xf32>
    %88 = tpu.matmul %86, %87, %cst_117 {dimension_numbers = #tpu.dot_dimension_numbers<[1], [0], [0], [1], [0, 0, 1, 1], [], []>} : vector<64x1152xbf16>, vector<1152x128xbf16>, vector<64x128xf32> -> vector<64x128xf32>
    %c0_118 = arith.constant 0 : index
    %c0_119 = arith.constant 0 : index
    %89 = vector.load %arg5[%c0_118, %c0_119] : memref<1x128xf32, #tpu.memory_space<vmem>>, vector<1x128xf32>
    %90 = vector.broadcast %89 : vector<1x128xf32> to vector<64x128xf32>
    %91 = arith.addf %88, %90 : vector<64x128xf32>
    %92 = arith.addf %91, %58 : vector<64x128xf32>
    %cst_120 = arith.constant 0.000000e+00 : f32
    %93 = vector.broadcast %cst_120 : f32 to vector<64x128xf32>
    %94 = arith.maximumf %92, %93 : vector<64x128xf32>
    %c0_121 = arith.constant 0 : index
    %c0_122 = arith.constant 0 : index
    %c0_123 = arith.constant 0 : index
    %95 = vector.load %arg8[%c0_121, %c0_122, %c0_123] : memref<1x64x128xf32, #tpu.memory_space<vmem>>, vector<1x64x128xf32>
    %96 = vector.shape_cast %95 : vector<1x64x128xf32> to vector<64x128xf32>
    %97 = vector.shape_cast %94 : vector<64x128xf32> to vector<1x64x128xf32>
    tpu.vector_store %arg8[%c0_121, %c0_122, %c0_123], %97 {strides = array<i32>} : memref<1x64x128xf32, #tpu.memory_space<vmem>>, vector<1x64x128xf32>,
    return
  }
  func.func @transform_0(%arg0: i32) -> (i32, i32, i32, i32) {
    %c0_i32 = arith.constant 0 : i32
    %c0_i32_0 = arith.constant 0 : i32
    %c0_i32_1 = arith.constant 0 : i32
    %c0_i32_2 = arith.constant 0 : i32
    return %arg0, %c0_i32, %c0_i32_0, %c0_i32_1 : i32, i32, i32, i32
  }
  func.func @transform_1(%arg0: i32) -> (i32, i32) {
    %c0_i32 = arith.constant 0 : i32
    %c0_i32_0 = arith.constant 0 : i32
    %c0_i32_1 = arith.constant 0 : i32
    return %c0_i32, %c0_i32_0 : i32, i32
  }
  func.func @transform_2(%arg0: i32) -> (i32, i32) {
    %c0_i32 = arith.constant 0 : i32
    %c0_i32_0 = arith.constant 0 : i32
    %c0_i32_1 = arith.constant 0 : i32
    return %c0_i32, %c0_i32_0 : i32, i32
  }
  func.func @transform_3(%arg0: i32) -> (i32, i32) {
    %c0_i32 = arith.constant 0 : i32
    %c0_i32_0 = arith.constant 0 : i32
    %c0_i32_1 = arith.constant 0 : i32
    return %c0_i32, %c0_i32_0 : i32, i32
  }
  func.func @transform_4(%arg0: i32) -> (i32, i32) {
    %c0_i32 = arith.constant 0 : i32
    %c0_i32_0 = arith.constant 0 : i32
    %c0_i32_1 = arith.constant 0 : i32
    return %c0_i32, %c0_i32_0 : i32, i32
  }
  func.func @transform_5(%arg0: i32) -> (i32, i32) {
    %c0_i32 = arith.constant 0 : i32
    %c0_i32_0 = arith.constant 0 : i32
    %c0_i32_1 = arith.constant 0 : i32
    return %c0_i32, %c0_i32_0 : i32, i32
  }
  func.func @transform_6(%arg0: i32) -> (i32, i32) {
    %c0_i32 = arith.constant 0 : i32
    %c0_i32_0 = arith.constant 0 : i32
    %c0_i32_1 = arith.constant 0 : i32
    return %c0_i32, %c0_i32_0 : i32, i32
  }
  func.func @transform_7(%arg0: i32) -> (i32, i32, i32) {
    %c0_i32 = arith.constant 0 : i32
    %c0_i32_0 = arith.constant 0 : i32
    %c0_i32_1 = arith.constant 0 : i32
    return %arg0, %c0_i32, %c0_i32_0 : i32, i32, i32
  }
}

</mosaic_0001>

<bundles_post_ra>
// kernel: basic_residual_block.1
= control target key start
LH: loop header
LB: loop body
LE: loop exit
PB: predicated region body
PF: predicated region fallthrough
CT: control target
= control target key end

     0   :  { %s5351_s24 = smov 0   ;;  %s6674_s0 = inlined_call_operand.vmem [shape: bf16[8,9,9,4], index: 0, kind: input, shape index: {}]   ;;  %s6675_s1 = inlined_call_operand.vmem [shape: bf16[1152,128], index: 1, kind: input, shape index: {}]   ;;  %s6676_s2 = inlined_call_operand.vmem [shape: f32[1,128], index: 2, kind: input, shape index: {}]   ;;  %s6677_s3 = inlined_call_operand.vmem [shape: bf16[1152,128], index: 3, kind: input, shape index: {}]   ;;  %s6678_s4 = inlined_call_operand.vmem [shape: f32[1,128], index: 4, kind: input, shape index: {}]   ;;  %s6679_s5 = inlined_call_operand.vmem [shape: bf16[4,128], index: 5, kind: input, shape index: {}]   ;;  %s6680_s6 = inlined_call_operand.vmem [shape: f32[1,128], index: 6, kind: input, shape index: {}]   ;;  %s6681_s7 = inlined_call_operand.vmem [shape: f32[2,64,128], index: 7, kind: output, shape index: {}]  }
   0x1 LB: > { %s5357_s25 = sadd.s32 4294967295, %s5308_s24   ;;  %p4049_p0 = scmp.ge.s32.totalorder %s5308_s24, 1  ;;  %s5308_s24 = sphi %s5351_s24, %s17_s24  }
   0x2   : > { %p239_p1 = scmp.lt.s32.totalorder %s5308_s24, 3 }
   0x4   : > { %p240_p2 = pnand %p4049_p0, %p239_p1 }
   0x5   : > { %s4050_s9 = sshll.u32 (!%p240_p2), %s5357_s25, 2  ;;  %p279_p4 = scmp.lt.s32.totalorder (!%p240_p2), %s5357_s25, 1 }
   0x6   : > { %243 = sbr.rel (%p240_p2) target bundleno = 665 (0x299), region = 48  ;;  %p273_p3 = scmp.lt.s32.totalorder (!%p240_p2), %s4050_s9, 7 }
   0xb   : > { %v5088_v0 = vld [vmem:[%s6675_s1 + $0x38] sm:$0xff]  ;;  %v5310_v3 = vmov 0   ;;  %v5087_v4 = vld [vmem:[%s6675_s1 + $0x30] sm:$0xff]  ;;  %s6691_s9 = smov (!%p273_p3, %s4050_s9), 7  ;;  %v5086_v7 = vld [vmem:[%s6675_s1 + $0x28] sm:$0xff]  ;;  %vm353_vm0 = vcmask 27648  }
   0xc   : > { %v5096_v1 = vld [vmem:[%s6675_s1 + $0x78] sm:$0xff]  ;;  %285 = vst [vmem:[#allocation2] sm:$0xff] %v5310_v3  ;;  %1686 = vmatpush.bf16.msra.mxu0 %v5088_v0  ;;  %5265 = vmatpush.bf16.msra.mxu3 %v5088_v0  ;;  %v5095_v5 = vld [vmem:[%s6675_s1 + $0x70] sm:$0xff]  ;;  %s5289_s16 = smul.u32 72, %s6691_s9  ;;  %v5094_v8 = vld [vmem:[%s6675_s1 + $0x68] sm:$0xff]  ;;  %vm2144_vm4 = vcmask 1041408  }
   0xd   : > { %v5104_v2 = vld [vmem:[%s6675_s1 + $0xb8] sm:$0xff]  ;;  %290 = vst [vmem:[#allocation2 + $0x24] sm:$0xff] %v5310_v3  ;;  %1715 = vmatpush.bf16.msra.mxu1 %v5096_v1  ;;  %v5103_v6 = vld [vmem:[%s6675_s1 + $0xb0] sm:$0xff]  ;;  %v5102_v9 = vld [vmem:[%s6675_s1 + $0xa8] sm:$0xff]  ;;  %vm395_vm1 = vsmask.f32 3328 }
   0xe   : > { %1744 = vmatpush.bf16.msra.mxu2 %v5104_v2  ;;  %286 = vst [vmem:[#allocation2 + $0x8] sm:$0xff] %v5310_v3  ;;  %s5398_s27 = scalar_lea.vmem %s6674_s0, %s5289_s16  ;;  %v5085_v12 = vld [vmem:[%s6675_s1 + $0x20] sm:$0xff]  ;;  %v5084_v15 = vld [vmem:[%s6675_s1 + $0x18] sm:$0xff]  ;;  %v5083_v18 = vld [vmem:[%s6675_s1 + $0x10] sm:$0xff]  ;;  %vm396_vm2 = vsmask.f32 7440 }
   0xf   : > { %287 = vst [vmem:[#allocation2 + $0x10] sm:$0xff] %v5310_v3  ;;  %v345_v10 = vld [vmem:[%s5398_s27] sm:$0xf]  ;;  %v346_v11 = vld [vmem:[%s5398_s27 + $0x8] sm:$0xf]  ;;  %v5092_v16 = vld [vmem:[%s6675_s1 + $0x58] sm:$0xff] }
  0x10   : > { %288 = vst [vmem:[#allocation2 + $0x18] sm:$0xff] %v5310_v3  ;;  %1687 = vmatpush.bf16.msra.mxu0 %v5087_v4  ;;  %5266 = vmatpush.bf16.msra.mxu3 %v5087_v4  ;;  %v5093_v13 = vld [vmem:[%s6675_s1 + $0x60] sm:$0xff]  ;;  %v5100_v17 = vld [vmem:[%s6675_s1 + $0x98] sm:$0xff]  ;;  %v5091_v19 = vld [vmem:[%s6675_s1 + $0x50] sm:$0xff]  ;;  %vm2131_vm5 = vcmask 31744   ;;  %vm2369_vm6 = vcmask 1042432  }
  0x11   : > { %289 = vst [vmem:[#allocation2 + $0x20] sm:$0xf] %v5310_v3  ;;  %1716 = vmatpush.bf16.msra.mxu1 %v5095_v5  ;;  %v5101_v14 = vld [vmem:[%s6675_s1 + $0xa0] sm:$0xff]  ;;  %v5099_v20 = vld [vmem:[%s6675_s1 + $0x90] sm:$0xff]  ;;  %v5082_v21 = vld [vmem:[%s6675_s1 + $0x8] sm:$0xff]  ;;  %vm2370_vm7 = vcmask 1046532  }
  0x12   : > { %1745 = vmatpush.bf16.msra.mxu2 %v5103_v6  ;;  %291 = vst [vmem:[#allocation2 + $0x2c] sm:$0xff] %v5310_v3  ;;  %v5090_v22 = vld [vmem:[%s6675_s1 + $0x48] sm:$0xff]  ;;  %v5081_v24 = vld [vmem:[%s6675_s1] sm:$0xff]  ;;  %v5112_v36 = vld [vmem:[%s6675_s1 + $0xf8] sm:$0xff]  ;;  %vm2044_vm9 = vcmask 1043456   ;;  %vm2050_vm11 = vcmask 1040384  }
  0x13   : > { %292 = vst [vmem:[#allocation2 + $0x34] sm:$0xff] %v5310_v3  ;;  %v5098_v23 = vld [vmem:[%s6675_s1 + $0x88] sm:$0xff]  ;;  %v5089_v27 = vld [vmem:[%s6675_s1 + $0x40] sm:$0xff]  ;;  %v5120_v37 = vld [vmem:[%s6675_s1 + $0x138] sm:$0xff]  ;;  %vm2045_vm10 = vsmask.f32 7938 }
  0x14   : > { %354 = vst.msk [vmem:[#allocation2] sm:$0xf] %vm353_vm0, %v345_v10  ;;  %1688 = vmatpush.bf16.msra.mxu0 %v5086_v7  ;;  %5267 = vmatpush.bf16.msra.mxu3 %v5086_v7  ;;  %v5097_v28 = vld [vmem:[%s6675_s1 + $0x80] sm:$0xff]  ;;  %v381_v31 = vld [vmem:[%s5398_s27 + $0x8] sm:$0xf]  ;;  %v5111_v38 = vld [vmem:[%s6675_s1 + $0xf0] sm:$0xff] }
  0x15   : > { %355 = vst.msk [vmem:[#allocation2 + $0x24] sm:$0xf] %vm353_vm0, %v346_v11  ;;  %1717 = vmatpush.bf16.msra.mxu1 %v5094_v8  ;;  %v379_v30 = vld [vmem:[%s5398_s27] sm:$0xf]  ;;  %v413_v34 = vshrl.u32 %v381_v31, 16  ;;  %v416_v35 = vshll.u32 %v381_v31, 16  ;;  %vm5538_vm3 = vmor %vm395_vm1, %vm396_vm2 }
  0x16   : > { %1746 = vmatpush.bf16.msra.mxu2 %v5102_v9  ;;  %293 = vst [vmem:[#allocation2 + $0x3c] sm:$0xff] %v5310_v3  ;;  %v399_v32 = vshrl.u32 %v379_v30, 16  ;;  %v402_v33 = vshll.u32 %v379_v30, 16  ;;  %v5119_v39 = vld [vmem:[%s6675_s1 + $0x130] sm:$0xff]  ;;  %v380_v42 = vld [vmem:[%s5398_s27 + $0x4] sm:$0x1]  ;;  %vm6055_vm8 = vmor %vm2369_vm6, %vm2370_vm7 }
  0x17   : > { %294 = vst [vmem:[#allocation2 + $0x44] sm:$0xf] %v5310_v3  ;;  %v415_v43 = vrot.slane %v413_v34, 4  ;;  %v418_v44 = vrot.slane %v416_v35, 5  ;;  %v382_v45 = vld [vmem:[%s5398_s27 + $0xc] sm:$0x1]  ;;  %vm6096_vm13 = vmand %vm2044_vm9, %vm2045_vm10 }
  0x18   : > { %295 = vst [vmem:[#allocation2 + $0x48] sm:$0xff] %v5310_v3  ;;  %1689 = vmatpush.bf16.msra.mxu0 %v5085_v12  ;;  %5268 = vmatpush.bf16.msra.mxu3 %v5085_v12  ;;  %v401_v40 = vrot.slane %v399_v32, 4  ;;  %v404_v41 = vrot.slane %v402_v33, 5  ;;  %v383_v46 = vld [vmem:[%s5398_s27 + $0x10] sm:$0xf]  ;;  %v5110_v47 = vld [vmem:[%s6675_s1 + $0xe8] sm:$0xff] }
  0x19   : > { %296 = vst [vmem:[#allocation2 + $0x50] sm:$0xff] %v5310_v3  ;;  %1718 = vmatpush.bf16.msra.mxu1 %v5093_v13  ;;  %v5118_v48 = vld [vmem:[%s6675_s1 + $0x128] sm:$0xff]  ;;  %v408_v50 = vshll.u32 %v380_v42, 16  ;;  %v385_v51 = vld [vmem:[%s5398_s27 + $0x18] sm:$0xf]  ;;  %v419_v52 = vor.u32 %v418_v44, %v415_v43  ;;  %v422_v53 = vshll.u32 %v382_v45, 16 }
  0x1a   : > { %1747 = vmatpush.bf16.msra.mxu2 %v5101_v14  ;;  %297 = vst [vmem:[#allocation2 + $0x58] sm:$0xff] %v5310_v3  ;;  %v405_v49 = vor.u32 %v404_v41, %v401_v40  ;;  %v427_v54 = vshrl.u32 %v383_v46, 16  ;;  %v430_v55 = vshll.u32 %v383_v46, 16  ;;  %v5109_v56 = vld [vmem:[%s6675_s1 + $0xe0] sm:$0xff]  ;;  %v441_v58 = vshrl.u32 %v385_v51, 16  ;;  %v5108_v14 = vld [vmem:[%s6675_s1 + $0xd8] sm:$0xff] }
  0x1b   : > { %298 = vst [vmem:[#allocation2 + $0x60] sm:$0xff] %v5310_v3  ;;  %v4128_v25 = vld [vmem:[#allocation2] sm:$0xf]  ;;  %v444_v59 = vshll.u32 %v385_v51, 16  ;;  %v410_v61 = vrot.slane %v408_v50, 5  ;;  %v420_v62 = vrot.slane %v419_v52, 4 }
  0x1c   : > { %299 = vst [vmem:[#allocation2 + $0x68] sm:$0xf] %v5310_v3  ;;  %1690 = vmatpush.bf16.msra.mxu0 %v5084_v15  ;;  %5269 = vmatpush.bf16.msra.mxu3 %v5084_v15  ;;  %v5049_v26 = vld [vmem:[#allocation2 + $0x20] sm:$0xf0]  ;;  %v406_v60 = vrot.slane %v405_v49, 4  ;;  %v424_v63 = vrot.slane %v422_v53, 5 }
  0x1d   : > { %300 = vst [vmem:[#allocation2 + $0x6c] sm:$0xff] %v5310_v3  ;;  %1719 = vmatpush.bf16.msra.mxu1 %v5092_v16  ;;  %v4129_v29 = vor.u32 %v5049_v26, %v4128_v25  ;;  %v5117_v57 = vld [vmem:[%s6675_s1 + $0x120] sm:$0xff]  ;;  %v429_v0 = vrot.slane %v427_v54, 4  ;;  %v432_v1 = vrot.slane %v430_v55, 5  ;;  %v389_v5 = vld [vmem:[%s5398_s27 + $0x28] sm:$0xf] }
  0x1e   : > { %1748 = vmatpush.bf16.msra.mxu2 %v5100_v17  ;;  %301 = vst [vmem:[#allocation2 + $0x74] sm:$0xff] %v5310_v3  ;;  %v349_v2 = vld [vmem:[%s5398_s27 + $0x20] sm:$0xf]  ;;  %v350_v6 = vld [vmem:[%s5398_s27 + $0x28] sm:$0xf]  ;;  %v443_v8 = vrot.slane %v441_v58, 4 }
  0x1f   : > { %302 = vst [vmem:[#allocation2 + $0x7c] sm:$0xff] %v5310_v3  ;;  %v387_v4 = vld [vmem:[%s5398_s27 + $0x20] sm:$0xf]  ;;  %v384_v7 = vld [vmem:[%s5398_s27 + $0x14] sm:$0x1]  ;;  %v446_v9 = vrot.slane %v444_v59, 5 }
  0x20   : > { %303 = vst [vmem:[#allocation2 + $0x84] sm:$0xff] %v5310_v3  ;;  %1691 = vmatpush.bf16.msra.mxu0 %v5083_v18  ;;  %5270 = vmatpush.bf16.msra.mxu3 %v5083_v18  ;;  %v386_v11 = vld [vmem:[%s5398_s27 + $0x1c] sm:$0x1]  ;;  %v455_v12 = vshrl.u32 %v387_v4, 16  ;;  %v458_v13 = vshll.u32 %v387_v4, 16  ;;  %v469_v16 = vshrl.u32 %v389_v5, 16 }
  0x21   : > { %304 = vst [vmem:[#allocation2 + $0x8c] sm:$0xf] %v5310_v3  ;;  %1720 = vmatpush.bf16.msra.mxu1 %v5091_v19  ;;  %v5116_v15 = vld [vmem:[%s6675_s1 + $0x118] sm:$0xff]  ;;  %v472_v17 = vshll.u32 %v389_v5, 16  ;;  %v4054_v18 = vld [vmem:[%s5398_s27 + $0x48] sm:$0xf]  ;;  %v447_v31 = vor.u32 %v446_v9, %v443_v8 }
  0x22   : > { %1749 = vmatpush.bf16.msra.mxu2 %v5099_v20  ;;  %305 = vst [vmem:[#allocation2 + $0x90] sm:$0xff] %v5310_v3  ;;  %v4055_v19 = vld [vmem:[%s5398_s27 + $0x50] sm:$0xf]  ;;  %v411_v20 = vsel %vm5538_vm3, %v406_v60, %v410_v61  ;;  %v450_v25 = vshll.u32 %v386_v11, 16  ;;  %v5136_v26 = vld [vmem:[%s6675_s1 + $0x1b8] sm:$0xff]  ;;  %v471_v33 = vrot.slane %v469_v16, 4 }
  0x23   : > { %306 = vst [vmem:[#allocation2 + $0x98] sm:$0xff] %v5310_v3  ;;  %v348_v30 = vld [vmem:[%s5398_s27 + $0x18] sm:$0xf]  ;;  %v388_v32 = vld [vmem:[%s5398_s27 + $0x24] sm:$0x1]  ;;  %v474_v34 = vrot.slane %v472_v17, 5 }
  0x24   : > { %307 = vst [vmem:[#allocation2 + $0xa0] sm:$0xff] %v5310_v3  ;;  %1692 = vmatpush.bf16.msra.mxu0 %v5082_v21  ;;  %5271 = vmatpush.bf16.msra.mxu3 %v5082_v21  ;;  %v436_v21 = vshll.u32 %v384_v7, 16  ;;  %v351_v35 = vld [vmem:[%s5398_s27 + $0x30] sm:$0xf]  ;;  %v4056_v40 = vld [vmem:[%s5398_s27 + $0x58] sm:$0xf] }
  0x25   : > { %308 = vst [vmem:[#allocation2 + $0xa8] sm:$0xff] %v5310_v3  ;;  %1721 = vmatpush.bf16.msra.mxu1 %v5090_v22  ;;  %v5107_v22 = vld [vmem:[%s6675_s1 + $0xd0] sm:$0xff]  ;;  %v464_v44 = vshll.u32 %v388_v32, 16  ;;  %v448_v45 = vrot.slane %v447_v31, 4  ;;  %v452_v46 = vrot.slane %v450_v25, 5  ;;  %v5105_v52 = vld [vmem:[%s6675_s1 + $0xc0] sm:$0xff] }
  0x26   : > { %1750 = vmatpush.bf16.msra.mxu2 %v5098_v23  ;;  %309 = vst [vmem:[#allocation2 + $0xb0] sm:$0xf] %v5310_v3  ;;  %v347_v23 = vld [vmem:[%s5398_s27 + $0x10] sm:$0xf]  ;;  %v438_v42 = vrot.slane %v436_v21, 5  ;;  %v5113_v53 = vld [vmem:[%s6675_s1 + $0x100] sm:$0xff] }
  0x27   : > { %310 = vst [vmem:[#allocation2 + $0xb4] sm:$0xff] %v5310_v3  ;;  %v4057_v50 = vld [vmem:[%s5398_s27 + $0x60] sm:$0xf]  ;;  %v466_v58 = vrot.slane %v464_v44, 5  ;;  %v453_v60 = vsel %vm5538_vm3, %v448_v45, %v452_v46  ;;  %v4059_v4 = vld [vmem:[%s5398_s27 + $0x70] sm:$0xf] }
  0x28   : > { %311 = vst [vmem:[#allocation2 + $0xbc] sm:$0xff] %v5310_v3  ;;  %1693 = vmatpush.bf16.msra.mxu0 %v5081_v24  ;;  %5272 = vmatpush.bf16.msra.mxu3 %v5081_v24  ;;  %v433_v24 = vor.u32 %v432_v1, %v429_v0  ;;  %v4058_v1 = vld [vmem:[%s5398_s27 + $0x68] sm:$0xf]  ;;  %v4062_v8 = vld [vmem:[%s5398_s27 + $0x90] sm:$0xf]  ;;  %v5144_v16 = vld [vmem:[%s6675_s1 + $0x1f8] sm:$0xff] }
  0x29   : > { %312 = vst [vmem:[#allocation2 + $0xc4] sm:$0xff] %v5310_v3  ;;  %1722 = vmatpush.bf16.msra.mxu1 %v5089_v27  ;;  %v457_v27 = vrot.slane %v455_v12, 4  ;;  %v4063_v12 = vld [vmem:[%s5398_s27 + $0x98] sm:$0xf]  ;;  %v391_v17 = vld [vmem:[%s5398_s27 + $0x30] sm:$0xf] }
  0x2a   : > { %1751 = vmatpush.bf16.msra.mxu2 %v5097_v28  ;;  %313 = vst [vmem:[#allocation2 + $0xcc] sm:$0xff] %v5310_v3  ;;  %v460_v28 = vrot.slane %v458_v13, 5  ;;  %v434_v41 = vrot.slane %v433_v24, 4  ;;  %v5128_v13 = vld [vmem:[%s6675_s1 + $0x178] sm:$0xff]  ;;  %v5143_v21 = vld [vmem:[%s6675_s1 + $0x1f0] sm:$0xff]  ;;  %v483_v24 = vshrl.u32 %v391_v17, 16 }
  0x2b   : > { %314 = vst [vmem:[#allocation2 + $0xd4] sm:$0xf] %v5310_v3  ;;  %1694 = vmatmul.bf16.vlgmr.msra.gmra.mxu0 %v4129_v29  ;;  %v425_v29 = vsel %vm5538_vm3, %v420_v62, %v424_v63  ;;  %v486_v25 = vshll.u32 %v391_v17, 16  ;;  %v4074_v17 = vld [vmem:[%s5398_s27 + $0xf8] sm:$0xf]  ;;  %s6693_s25 = smov (!%p279_p4, %s5357_s25), 1 }
  0x2c   : > { %315 = vst [vmem:[#allocation2 + $0xd8] sm:$0xff] %v5310_v3  ;;  %1773 = vmatpush.bf16.msrb.mxu3 %v5112_v36  ;;  %1802 = vmatpush.bf16.msrb.mxu0 %v5120_v37  ;;  %v390_v36 = vld [vmem:[%s5398_s27 + $0x2c] sm:$0x1]  ;;  %v352_v37 = vld [vmem:[%s5398_s27 + $0x38] sm:$0xf]  ;;  %v461_v43 = vor.u32 %v460_v28, %v457_v27 }
  0x2d   : > { %316 = vst [vmem:[#allocation2 + $0xe0] sm:$0xff] %v5310_v3  ;;  %1831 = vmatpush.bf16.msrb.mxu1 %v5128_v13  ;;  %v5122_v13 = vld [vmem:[%s6675_s1 + $0x148] sm:$0xff]  ;;  %vm2051_vm12 = vsmask.f32 256 }
  0x2e   : > { %317 = vst [vmem:[#allocation2 + $0xe8] sm:$0xff] %v5310_v3  ;;  %1860 = vmatpush.bf16.msrb.mxu2 %v5136_v26  ;;  %vm6104_vm14 = vmand %vm2050_vm11, %vm2051_vm12 }
  0x2f   : > { %318 = vst [vmem:[#allocation2 + $0xf0] sm:$0xff] %v5310_v3 }
  0x30   : > { %319 = vst [vmem:[#allocation2 + $0xf8] sm:$0xf] %v5310_v3  ;;  %1774 = vmatpush.bf16.msrb.mxu3 %v5111_v38  ;;  %1803 = vmatpush.bf16.msrb.mxu0 %v5119_v39  ;;  %v5106_v38 = vld [vmem:[%s6675_s1 + $0xc8] sm:$0xff] }
  0x31   : > { %320 = vst [vmem:[#allocation2 + $0xfc] sm:$0xff] %v5310_v3  ;;  %v5114_v39 = vld [vmem:[%s6675_s1 + $0x108] sm:$0xff] }
  0x32   : > { %321 = vst [vmem:[#allocation2 + $0x104] sm:$0xff] %v5310_v3 }
  0x33   : > { %322 = vst [vmem:[#allocation2 + $0x10c] sm:$0xff] %v5310_v3 }
  0x34   : > { %323 = vst [vmem:[#allocation2 + $0x114] sm:$0xff] %v5310_v3  ;;  %1775 = vmatpush.bf16.msrb.mxu3 %v5110_v47  ;;  %1804 = vmatpush.bf16.msrb.mxu0 %v5118_v48  ;;  %v475_v47 = vor.u32 %v474_v34, %v471_v33  ;;  %v478_v48 = vshll.u32 %v390_v36, 16  ;;  %v4061_v33 = vld [vmem:[%s5398_s27 + $0x80] sm:$0xf]  ;;  %v392_v36 = vld [vmem:[%s5398_s27 + $0x34] sm:$0x1] }
  0x35   : > { %324 = vst [vmem:[#allocation2 + $0x11c] sm:$0xf] %v5310_v3  ;;  %v5125_v34 = vld [vmem:[%s6675_s1 + $0x160] sm:$0xff] }
  0x36   : > { %325 = vst [vmem:[#allocation4] sm:$0xf] %v5310_v3  ;;  %v476_v61 = vrot.slane %v475_v47, 4  ;;  %v480_v62 = vrot.slane %v478_v48, 5  ;;  %v4064_v48 = vld [vmem:[%s5398_s27 + $0xa0] sm:$0xf] }
  0x37   : > { %326 = vst [vmem:[#allocation4 + $0x4] sm:$0x1] %v5310_v3 }
  0x38   : > { %327 = vst [vmem:[#allocation4 + $0x8] sm:$0xf] %v5310_v3  ;;  %1776 = vmatpush.bf16.msrb.mxu3 %v5109_v56  ;;  %1805 = vmatpush.bf16.msrb.mxu0 %v5117_v57  ;;  %v439_v56 = vsel %vm5538_vm3, %v434_v41, %v438_v42  ;;  %v462_v57 = vrot.slane %v461_v43, 4  ;;  %v481_v11 = vsel %vm5538_vm3, %v476_v61, %v480_v62  ;;  %v488_v42 = vrot.slane %v486_v25, 5  ;;  %v4073_v61 = vld [vmem:[%s5398_s27 + $0xf0] sm:$0xf] }
  0x39   : > { %328 = vst [vmem:[#allocation4 + $0xc] sm:$0x1] %v5310_v3  ;;  %v492_v43 = vshll.u32 %v392_v36, 16  ;;  %v5121_v25 = vld [vmem:[%s6675_s1 + $0x140] sm:$0xff]  ;;  %v4094_v36 = vld [vmem:[%s5398_s27 + $0x8] sm:$0xf] }
  0x3a   : > { %329 = vst [vmem:[#allocation4 + $0x10] sm:$0xf] %v5310_v3  ;;  %v467_v7 = vsel %vm5538_vm3, %v462_v57, %v466_v58 }
  0x3b   : > { %330 = vst [vmem:[#allocation4 + $0x14] sm:$0x1] %v5310_v3 }
  0x3c   : > { %331 = vst [vmem:[#allocation4 + $0x18] sm:$0xf] %v5310_v3  ;;  %1777 = vmatpush.bf16.msrb.mxu3 %v5108_v14  ;;  %1806 = vmatpush.bf16.msrb.mxu0 %v5116_v15  ;;  %v4070_v15 = vld [vmem:[%s5398_s27 + $0xd8] sm:$0xf] }
  0x3d   : > { %332 = vst [vmem:[#allocation4 + $0x1c] sm:$0x1] %v5310_v3 }
  0x3e   : > { %333 = vst [vmem:[#allocation4 + $0x20] sm:$0xf] %v5310_v3 }
  0x3f   : > { %334 = vst [vmem:[#allocation4 + $0x24] sm:$0x1] %v5310_v3 }
  0x40   : > { %335 = vst [vmem:[#allocation4 + $0x28] sm:$0xf] %v5310_v3  ;;  %1778 = vmatpush.bf16.msrb.mxu3 %v5107_v22  ;;  %v5152_v22 = vld [vmem:[%s6675_s1 + $0x238] sm:$0xff] }
  0x41   : > { %336 = vst [vmem:[#allocation4 + $0x2c] sm:$0x1] %v5310_v3 }
  0x42   : > { %337 = vst [vmem:[#allocation4 + $0x30] sm:$0xf] %v5310_v3 }
  0x43   : > { %338 = vst [vmem:[#allocation4 + $0x34] sm:$0x1] %v5310_v3 }
  0x44   : > { %339 = vst [vmem:[#allocation4 + $0x38] sm:$0xf] %v5310_v3  ;;  %1779 = vmatpush.bf16.msrb.mxu3 %v5106_v38 }
  0x45   : > { %340 = vst [vmem:[#allocation4 + $0x3c] sm:$0x1] %v5310_v3 }
  0x46   : > { %341 = vst [vmem:[#allocation4 + $0x40] sm:$0xf] %v5310_v3 }
  0x47   : > { %342 = vst [vmem:[#allocation4 + $0x44] sm:$0x1] %v5310_v3 }
  0x48   : > { %343 = vst [vmem:[#allocation4 + $0x48] sm:$0xf] %v5310_v3  ;;  %1780 = vmatpush.bf16.msrb.mxu3 %v5105_v52  ;;  %v4065_v52 = vld [vmem:[%s5398_s27 + $0xa8] sm:$0xf] }
  0x49   : > { %344 = vst [vmem:[#allocation4 + $0x4c] sm:$0x1] %v5310_v3  ;;  %v5115_v3 = vld [vmem:[%s6675_s1 + $0x110] sm:$0xff] }
  0x4a   : > { %358 = vst.msk [vmem:[#allocation2 + $0x90] sm:$0xf] %vm353_vm0, %v349_v2  ;;  %1807 = vmatpush.bf16.msrb.mxu0 %v5115_v3  ;;  %v393_v3 = vld [vmem:[%s5398_s27 + $0x38] sm:$0xf] }
  0x4b   : > { %359 = vst.msk [vmem:[#allocation2 + $0xb4] sm:$0xf] %vm353_vm0, %v350_v6  ;;  %v497_v31 = vshrl.u32 %v393_v3, 16  ;;  %v500_v45 = vshll.u32 %v393_v3, 16  ;;  %v5130_v3 = vld [vmem:[%s6675_s1 + $0x188] sm:$0xff] }
  0x4c   : > { %371 = vst.msk [vmem:[#allocation2 + $0x4] sm:$0xf] %vm353_vm0, %v4054_v18  ;;  %v4071_v18 = vld [vmem:[%s5398_s27 + $0xe0] sm:$0xf] }
  0x4d   : > { %372 = vst.msk [vmem:[#allocation2 + $0x28] sm:$0xf] %vm353_vm0, %v4055_v19  ;;  %v5127_v19 = vld [vmem:[%s6675_s1 + $0x170] sm:$0xff]  ;;  %v499_v44 = vrot.slane %v497_v31, 4 }
  0x4e   : > { %518 = vst.msk [vmem:[#allocation2 + $0x8] sm:$0xf] %vm353_vm0, %v411_v20  ;;  %1808 = vmatpush.bf16.msrb.mxu0 %v5114_v39  ;;  %v5135_v20 = vld [vmem:[%s6675_s1 + $0x1b0] sm:$0xff]  ;;  %1832 = vmatpush.bf16.msrb.mxu1 %v5127_v19 }
  0x4f   : > { %519 = vst.msk [vmem:[#allocation2 + $0x2c] sm:$0xf] %vm353_vm0, %v425_v29  ;;  %1861 = vmatpush.bf16.msrb.mxu2 %v5135_v20  ;;  %v5126_v29 = vld [vmem:[%s6675_s1 + $0x168] sm:$0xff]  ;;  %v4078_v20 = vld [vmem:[%s5398_s27 + $0x90] sm:$0xf] }
  0x50   : > { %356 = vst.msk [vmem:[#allocation2 + $0x48] sm:$0xf] %vm353_vm0, %v347_v23  ;;  %v5134_v23 = vld [vmem:[%s6675_s1 + $0x1a8] sm:$0xff]  ;;  %v580_v31 = vshll.u32 %v4078_v20, 16 }
  0x51   : > { %v4200_v49 = vld [vmem:[#allocation2 + $0x90] sm:$0xf]  ;;  %357 = vst.msk [vmem:[#allocation2 + $0x6c] sm:$0xf] %vm353_vm0, %v348_v30  ;;  %v4060_v30 = vld [vmem:[%s5398_s27 + $0x78] sm:$0xf] }
  0x52   : > { %v5067_v51 = vld [vmem:[#allocation2 + $0xb0] sm:$0xf0]  ;;  %360 = vst.msk [vmem:[#allocation2 + $0xd8] sm:$0xf] %vm353_vm0, %v351_v35  ;;  %1809 = vmatpush.bf16.msrb.mxu0 %v5113_v53  ;;  %v5133_v35 = vld [vmem:[%s6675_s1 + $0x1a0] sm:$0xff]  ;;  %1833 = vmatpush.bf16.msrb.mxu1 %v5126_v29 }
  0x53   : > { %v4201_v54 = vor.u32 %v5067_v51, %v4200_v49  ;;  %v5045_v55 = vld [vmem:[#allocation2 + $0x4] sm:$0xf]  ;;  %361 = vst.msk [vmem:[#allocation2 + $0xfc] sm:$0xf] %vm353_vm0, %v352_v37  ;;  %1862 = vmatpush.bf16.msrb.mxu2 %v5134_v23  ;;  %v485_v37 = vrot.slane %v483_v24, 4  ;;  %v502_v51 = vrot.slane %v500_v45, 5 }
  0x54   : > { %v4130_v59 = vld [vmem:[#allocation2 + $0x24] sm:$0xf0]  ;;  %373 = vst.msk [vmem:[#allocation2 + $0x4c] sm:$0xf] %vm353_vm0, %v4056_v40  ;;  %v394_v40 = vld [vmem:[%s5398_s27 + $0x3c] sm:$0x1] }
  0x55   : > { %1704 = vmatmul.bf16.vlgmr.msra.gmra.mxu3 %v4201_v54  ;;  %v4133_v63 = vor.u32 %v5045_v55, %v4130_v59  ;;  %v4136_v0 = vld [vmem:[#allocation2 + $0x8] sm:$0xf]  ;;  %374 = vst.msk [vmem:[#allocation2 + $0x70] sm:$0xf] %vm353_vm0, %v4057_v50  ;;  %v506_v47 = vshll.u32 %v394_v40, 16  ;;  %v489_v49 = vor.u32 %v488_v42, %v485_v37  ;;  %v494_v50 = vrot.slane %v492_v43, 5 }
  0x56   : > { %v5050_v2 = vld [vmem:[#allocation2 + $0x28] sm:$0xf0]  ;;  %520 = vst.msk [vmem:[#allocation2 + $0x50] sm:$0xf] %vm353_vm0, %v439_v56  ;;  %1889 = vmatpush.bf16.msra.mxu3 %v5144_v16  ;;  %1918 = vmatpush.bf16.msra.mxu0 %v5152_v22  ;;  %v503_v57 = vor.u32 %v502_v51, %v499_v44  ;;  %v4079_v23 = vld [vmem:[%s5398_s27 + $0x94] sm:$0x1] }
  0x57   : > { %1723 = vmatmul.bf16.vlgmr.msra.gmra.mxu1 %v4133_v63  ;;  %v4137_v5 = vor.u32 %v5050_v2, %v4136_v0  ;;  %v4164_v6 = vld [vmem:[#allocation2 + $0x48] sm:$0xf]  ;;  %521 = vst.msk [vmem:[#allocation2 + $0x74] sm:$0xf] %vm353_vm0, %v453_v60  ;;  %1863 = vmatpush.bf16.msrb.mxu2 %v5133_v35  ;;  %v490_v56 = vrot.slane %v489_v49, 4  ;;  %v508_v58 = vrot.slane %v506_v47, 5 }
  0x58   : > { %v5058_v9 = vld [vmem:[#allocation2 + $0x68] sm:$0xf0]  ;;  %375 = vst.msk [vmem:[#allocation2 + $0x94] sm:$0xf] %vm353_vm0, %v4058_v1  ;;  %1834 = vmatpush.bf16.msrb.mxu1 %v5125_v34  ;;  %v4072_v60 = vld [vmem:[%s5398_s27 + $0xe8] sm:$0xf] }
  0x59   : > { %1752 = vmatmul.bf16.vlgmr.msra.gmra.mxu2 %v4137_v5  ;;  %v4165_v14 = vor.u32 %v5058_v9, %v4164_v6  ;;  %376 = vst.msk [vmem:[#allocation2 + $0xb8] sm:$0xf] %vm353_vm0, %v4059_v4  ;;  %v4236_v26 = vld [vmem:[#allocation2 + $0xd8] sm:$0xf]  ;;  %v495_v62 = vsel %vm5538_vm3, %v490_v56, %v494_v50  ;;  %v504_v63 = vrot.slane %v503_v57, 4  ;;  %v5142_v1 = vld [vmem:[%s6675_s1 + $0x1e8] sm:$0xff] }
  0x5a   : > { %522 = vst.msk [vmem:[#allocation2 + $0x98] sm:$0xf] %vm353_vm0, %v467_v7  ;;  %v5076_v27 = vld [vmem:[#allocation2 + $0xf8] sm:$0xf0]  ;;  %1890 = vmatpush.bf16.msra.mxu3 %v5143_v21  ;;  %v5151_v2 = vld [vmem:[%s6675_s1 + $0x230] sm:$0xff]  ;;  %v5141_v7 = vld [vmem:[%s6675_s1 + $0x1e0] sm:$0xff] }
  0x5b   : > { %1699 = vmatmul.bf16.gmra.mxu0 %v4165_v14  ;;  %523 = vst.msk [vmem:[#allocation2 + $0xbc] sm:$0xf] %vm353_vm0, %v481_v11  ;;  %v5054_v28 = vld [vmem:[#allocation2 + $0x4c] sm:$0xf]  ;;  %v4237_v38 = vor.u32 %v5076_v27, %v4236_v26  ;;  %v5124_v0 = vld [vmem:[%s6675_s1 + $0x158] sm:$0xff]  ;;  %v509_v5 = vsel %vm5538_vm3, %v504_v63, %v508_v58  ;;  %v5123_v6 = vld [vmem:[%s6675_s1 + $0x150] sm:$0xff] }
  0x5c   : > { %535 = vst.msk [vmem:[#allocation2 + $0xc] sm:$0xf] %vm353_vm0, %v4062_v8  ;;  %v4166_v32 = vld [vmem:[#allocation2 + $0x6c] sm:$0xf0]  ;;  %v5132_v4 = vld [vmem:[%s6675_s1 + $0x198] sm:$0xff]  ;;  %1835 = vmatpush.bf16.msrb.mxu1 %v5124_v0  ;;  %1919 = vmatpush.bf16.msra.mxu0 %v5151_v2  ;;  %v5129_v37 = vld [vmem:[%s6675_s1 + $0x180] sm:$0xff] }
  0x5d   : > { %536 = vst.msk [vmem:[#allocation2 + $0x30] sm:$0xf] %vm353_vm0, %v4063_v12  ;;  %v4172_v39 = vld [vmem:[#allocation2 + $0x50] sm:$0xf]  ;;  %v4169_v46 = vor.u32 %v5054_v28, %v4166_v32  ;;  %1864 = vmatpush.bf16.msrb.mxu2 %v5132_v4  ;;  %v5150_v12 = vld [vmem:[%s6675_s1 + $0x228] sm:$0xff]  ;;  %v5149_v56 = vld [vmem:[%s6675_s1 + $0x220] sm:$0xff] }
  0x5e   : > { %552 = vst.msk [vmem:[#allocation2 + $0x10] sm:$0xf] %vm353_vm0, %v4070_v15  ;;  %v5059_v41 = vld [vmem:[#allocation2 + $0x70] sm:$0xf0]  ;;  %1891 = vmatpush.bf16.msra.mxu3 %v5142_v1  ;;  %v4066_v14 = vld [vmem:[%s5398_s27 + $0xb0] sm:$0xf] }
  0x5f   : > { %553 = vst.msk [vmem:[#allocation2 + $0x34] sm:$0xf] %vm353_vm0, %v4071_v18  ;;  %v4173_v53 = vor.u32 %v5059_v41, %v4172_v39  ;;  %v5131_v11 = vld [vmem:[%s6675_s1 + $0x190] sm:$0xff]  ;;  %v4067_v15 = vld [vmem:[%s5398_s27 + $0xb8] sm:$0xf]  ;;  %v582_v39 = vrot.slane %v580_v31, 5 }
  0x60   : > { %377 = vst.msk [vmem:[#allocation2 + $0xdc] sm:$0xf] %vm353_vm0, %v4060_v30  ;;  %v5063_v16 = vld [vmem:[#allocation2 + $0x94] sm:$0xf]  ;;  %1836 = vmatpush.bf16.msrb.mxu1 %v5123_v6  ;;  %v4075_v18 = vld [vmem:[%s5398_s27 + $0x100] sm:$0xf]  ;;  %1920 = vmatpush.bf16.msra.mxu0 %v5150_v12 }
  0x61   : > { %378 = vst.msk [vmem:[#allocation2 + $0x100] sm:$0xf] %vm353_vm0, %v4061_v33  ;;  %v4202_v19 = vld [vmem:[#allocation2 + $0xb4] sm:$0xf0]  ;;  %1865 = vmatpush.bf16.msrb.mxu2 %v5131_v11  ;;  %v4081_v29 = vld [vmem:[%s5398_s27 + $0x9c] sm:$0x1] }
  0x62   : > { %537 = vst.msk [vmem:[#allocation2 + $0x54] sm:$0xf] %vm353_vm0, %v4064_v48  ;;  %1892 = vmatpush.bf16.msra.mxu3 %v5141_v7  ;;  %v4208_v21 = vld [vmem:[#allocation2 + $0x98] sm:$0xf]  ;;  %v5068_v22 = vld [vmem:[#allocation2 + $0xb8] sm:$0xf0]  ;;  %v4205_v32 = vor.u32 %v5063_v16, %v4202_v19 }
  0x63   : > { %538 = vst.msk [vmem:[#allocation2 + $0x78] sm:$0xf] %vm353_vm0, %v4065_v52  ;;  %v5046_v8 = vld [vmem:[#allocation2 + $0xc] sm:$0xf]  ;;  %v4080_v26 = vld [vmem:[%s5398_s27 + $0x98] sm:$0xf]  ;;  %v4209_v42 = vor.u32 %v5068_v22, %v4208_v21 }
  0x64   : > { %554 = vst.msk [vmem:[#allocation2 + $0x58] sm:$0xf] %vm353_vm0, %v4072_v60  ;;  %v4138_v9 = vld [vmem:[#allocation2 + $0x2c] sm:$0xf0]  ;;  %1837 = vmatpush.bf16.msrb.mxu1 %v5122_v13  ;;  %v577_v30 = vshrl.u32 %v4078_v20, 16  ;;  %v586_v33 = vshll.u32 %v4079_v23, 16  ;;  %1921 = vmatpush.bf16.msra.mxu0 %v5149_v56 }
  0x65   : > { %1709 = vmatmul.bf16.gmra.mxu3 %v4237_v38  ;;  %v4144_v54 = vld [vmem:[#allocation2 + $0x10] sm:$0xf]  ;;  %524 = vst.msk [vmem:[#allocation2 + $0xe0] sm:$0xf] %vm353_vm0, %v495_v62  ;;  %v4141_v24 = vor.u32 %v5046_v8, %v4138_v9  ;;  %v591_v34 = vshrl.u32 %v4080_v26, 16  ;;  %v594_v35 = vshll.u32 %v4080_v26, 16  ;;  %1866 = vmatpush.bf16.msrb.mxu2 %v5130_v3 }
  0x66   : > { %v5051_v55 = vld [vmem:[#allocation2 + $0x30] sm:$0xf0]  ;;  %555 = vst.msk [vmem:[#allocation2 + $0x7c] sm:$0xf] %vm353_vm0, %v4073_v61  ;;  %v579_v38 = vrot.slane %v577_v30, 4  ;;  %v600_v40 = vshll.u32 %v4081_v29, 16 }
  0x67   : > { %1728 = vmatmul.bf16.gmra.mxu1 %v4169_v46  ;;  %v4145_v59 = vor.u32 %v5051_v55, %v4144_v54  ;;  %525 = vst.msk [vmem:[#allocation2 + $0x104] sm:$0xf] %vm353_vm0, %v509_v5  ;;  %v4095_v41 = vld [vmem:[%s5398_s27 + $0x10] sm:$0xf]  ;;  %v593_v43 = vrot.slane %v591_v34, 4  ;;  %v596_v44 = vrot.slane %v594_v35, 5 }
  0x68   : > { %539 = vst.msk [vmem:[#allocation2 + $0x9c] sm:$0xf] %vm353_vm0, %v4066_v14  ;;  %1838 = vmatpush.bf16.msrb.mxu1 %v5121_v25  ;;  %v583_v45 = vor.u32 %v582_v39, %v579_v38  ;;  %v588_v46 = vrot.slane %v586_v33, 5  ;;  %v602_v49 = vrot.slane %v600_v40, 5  ;;  %v4082_v50 = vld [vmem:[%s5398_s27 + $0xa0] sm:$0xf] }
  0x69   : > { %1757 = vmatmul.bf16.gmra.mxu2 %v4173_v53  ;;  %540 = vst.msk [vmem:[#allocation2 + $0xc0] sm:$0xf] %vm353_vm0, %v4067_v15  ;;  %v597_v48 = vor.u32 %v596_v44, %v593_v43  ;;  %v4084_v52 = vld [vmem:[%s5398_s27 + $0xa8] sm:$0xf]  ;;  %v605_v53 = vshrl.u32 %v4082_v50, 16  ;;  %v5140_v55 = vld [vmem:[%s6675_s1 + $0x1d8] sm:$0xff] }
  0x6a   : > { %556 = vst.msk [vmem:[#allocation2 + $0xa0] sm:$0xf] %vm353_vm0, %v4074_v17  ;;  %1867 = vmatpush.bf16.msrb.mxu2 %v5129_v37  ;;  %v584_v51 = vrot.slane %v583_v45, 4  ;;  %v608_v57 = vshll.u32 %v4082_v50, 16  ;;  %v619_v58 = vshrl.u32 %v4084_v52, 16  ;;  %v5139_v60 = vld [vmem:[%s6675_s1 + $0x1d0] sm:$0xff]  ;;  %1893 = vmatpush.bf16.msra.mxu3 %v5140_v55 }
  0x6b   : > { %1810 = vmatmul.bf16.vlgmr.msrb.gmra.mxu0 %v4145_v59  ;;  %557 = vst.msk [vmem:[#allocation2 + $0xc4] sm:$0xf] %vm353_vm0, %v4075_v18  ;;  %v4180_v27 = vld [vmem:[#allocation2 + $0x58] sm:$0xf]  ;;  %v598_v54 = vrot.slane %v597_v48, 4  ;;  %v607_v63 = vrot.slane %v605_v53, 4 }
  0x6c   : > { %713 = vst.msk [vmem:[#allocation2 + $0x18] sm:$0xf] %vm353_vm0, %v4094_v36  ;;  %v589_v59 = vsel %vm5538_vm3, %v584_v51, %v588_v46  ;;  %v4068_v61 = vld [vmem:[%s5398_s27 + $0xc0] sm:$0xf]  ;;  %v4069_v62 = vld [vmem:[%s5398_s27 + $0xc8] sm:$0xf] }
  0x6d   : > { %v5060_v28 = vld [vmem:[#allocation2 + $0x78] sm:$0xf0]  ;;  %714 = vst.msk [vmem:[#allocation2 + $0x3c] sm:$0xf] %vm353_vm0, %v4095_v41  ;;  %v603_v0 = vsel %vm5538_vm3, %v598_v54, %v602_v49  ;;  %v4083_v1 = vld [vmem:[%s5398_s27 + $0xa4] sm:$0x1] }
  0x6e   : > { %v4181_v47 = vor.u32 %v5060_v28, %v4180_v27  ;;  %696 = vst.msk [vmem:[#allocation2 + $0x14] sm:$0xf] %vm353_vm0, %v589_v59  ;;  %v4085_v2 = vld [vmem:[%s5398_s27 + $0xac] sm:$0x1]  ;;  %v5148_v4 = vld [vmem:[%s6675_s1 + $0x218] sm:$0xff]  ;;  %v610_v5 = vrot.slane %v608_v57, 5  ;;  %1894 = vmatpush.bf16.msra.mxu3 %v5139_v60 }
  0x6f   : > { %697 = vst.msk [vmem:[#allocation2 + $0x38] sm:$0xf] %vm353_vm0, %v603_v0  ;;  %v614_v6 = vshll.u32 %v4083_v1, 16  ;;  %v622_v7 = vshll.u32 %v4084_v52, 16  ;;  %v5055_v8 = vld [vmem:[#allocation2 + $0x54] sm:$0xf]  ;;  %1922 = vmatpush.bf16.msra.mxu0 %v5148_v4 }
  0x70   : > { %541 = vst.msk [vmem:[#allocation2 + $0xe4] sm:$0xf] %vm353_vm0, %v4068_v61  ;;  %v621_v9 = vrot.slane %v619_v58, 4  ;;  %v628_v11 = vshll.u32 %v4085_v2, 16  ;;  %v5072_v12 = vld [vmem:[#allocation2 + $0xdc] sm:$0xf]  ;;  %v611_v16 = vor.u32 %v610_v5, %v607_v63 }
  0x71   : > { %v4238_v13 = vld [vmem:[#allocation2 + $0xfc] sm:$0xf0]  ;;  %v4174_v14 = vld [vmem:[#allocation2 + $0x74] sm:$0xf0]  ;;  %542 = vst.msk [vmem:[#allocation2 + $0x108] sm:$0xf] %vm353_vm0, %v4069_v62 }
  0x72   : > { %v4076_v15 = vld [vmem:[%s5398_s27 + $0x108] sm:$0xf]  ;;  %v4077_v17 = vld [vmem:[%s5398_s27 + $0x110] sm:$0xf]  ;;  %v616_v18 = vrot.slane %v614_v6, 5  ;;  %v624_v19 = vrot.slane %v622_v7, 5  ;;  %v4177_v22 = vor.u32 %v5055_v8, %v4174_v14  ;;  %v4241_v28 = vor.u32 %v5072_v12, %v4238_v13 }
  0x73   : > { %558 = vst.msk [vmem:[#allocation2 + $0xe8] sm:$0xf] %vm353_vm0, %v4076_v15  ;;  %v612_v20 = vrot.slane %v611_v16, 4  ;;  %v4096_v21 = vld [vmem:[%s5398_s27 + $0x18] sm:$0xf]  ;;  %v630_v23 = vrot.slane %v628_v11, 5 }
  0x74   : > { %559 = vst.msk [vmem:[#allocation2 + $0x10c] sm:$0xf] %vm353_vm0, %v4077_v17  ;;  %v625_v3 = vor.u32 %v624_v19, %v621_v9  ;;  %v4244_v25 = vld [vmem:[#allocation2 + $0xe0] sm:$0xf]  ;;  %v5077_v26 = vld [vmem:[#allocation2 + $0x100] sm:$0xf0] }
  0x75   : > { %1781 = vmatmul.bf16.vlgmr.msrb.gmra.mxu3 %v4141_v24  ;;  %v4097_v24 = vld [vmem:[%s5398_s27 + $0x20] sm:$0xf]  ;;  %715 = vst.msk [vmem:[#allocation2 + $0x60] sm:$0xf] %vm353_vm0, %v4096_v21  ;;  %v617_v27 = vsel %vm5538_vm3, %v612_v20, %v616_v18  ;;  %v5069_v31 = vld [vmem:[#allocation2 + $0xc0] sm:$0xf0] }
  0x76   : > { %716 = vst.msk [vmem:[#allocation2 + $0x84] sm:$0xf] %vm353_vm0, %v4097_v24  ;;  %v626_v29 = vrot.slane %v625_v3, 4  ;;  %v4216_v30 = vld [vmem:[#allocation2 + $0xa0] sm:$0xf]  ;;  %v5138_v45 = vld [vmem:[%s6675_s1 + $0x1c8] sm:$0xff] }
  0x77   : > { %1733 = vmatmul.bf16.gmra.mxu1 %v4205_v32  ;;  %698 = vst.msk [vmem:[#allocation2 + $0x5c] sm:$0xf] %vm353_vm0, %v617_v27  ;;  %v4245_v32 = vor.u32 %v5077_v26, %v4244_v25  ;;  %v4086_v34 = vld [vmem:[%s5398_s27 + $0xb0] sm:$0xf]  ;;  %v4088_v35 = vld [vmem:[%s5398_s27 + $0xb8] sm:$0xf]  ;;  %v4217_v38 = vor.u32 %v5069_v31, %v4216_v30  ;;  %1895 = vmatpush.bf16.msra.mxu3 %v5138_v45 }
  0x78   : > { %v631_v33 = vsel %vm5538_vm3, %v626_v29, %v630_v23  ;;  %v633_v36 = vshrl.u32 %v4086_v34, 16  ;;  %v636_v37 = vshll.u32 %v4086_v34, 16  ;;  %v647_v39 = vshrl.u32 %v4088_v35, 16  ;;  %v4110_v41 = vld [vmem:[%s5398_s27 + $0x8] sm:$0xf]  ;;  %v5147_v46 = vld [vmem:[%s6675_s1 + $0x210] sm:$0xff] }
  0x79   : > { %1762 = vmatmul.bf16.gmra.mxu2 %v4209_v42  ;;  %699 = vst.msk [vmem:[#allocation2 + $0x80] sm:$0xf] %vm353_vm0, %v631_v33  ;;  %v650_v40 = vshll.u32 %v4088_v35, 16  ;;  %v4112_v44 = vld [vmem:[%s5398_s27 + $0x10] sm:$0xf]  ;;  %v755_v50 = vshrl.u32 %v4110_v41, 16  ;;  %1923 = vmatpush.bf16.msra.mxu0 %v5147_v46 }
  0x7a   : > { %v635_v42 = vrot.slane %v633_v36, 4  ;;  %v638_v43 = vrot.slane %v636_v37, 5  ;;  %v758_v51 = vshll.u32 %v4110_v41, 16  ;;  %v5064_v52 = vld [vmem:[#allocation2 + $0x9c] sm:$0xf]  ;;  %v5137_v54 = vld [vmem:[%s6675_s1 + $0x1c0] sm:$0xff] }
  0x7b   : > { %1815 = vmatmul.bf16.gmra.mxu0 %v4181_v47  ;;  %v649_v47 = vrot.slane %v647_v39, 4  ;;  %v652_v48 = vrot.slane %v650_v40, 5  ;;  %v4210_v53 = vld [vmem:[#allocation2 + $0xbc] sm:$0xf0]  ;;  %v4087_v55 = vld [vmem:[%s5398_s27 + $0xb4] sm:$0x1]  ;;  %1896 = vmatpush.bf16.msra.mxu3 %v5137_v54 }
  0x7c   : > { %v639_v49 = vor.u32 %v638_v43, %v635_v42  ;;  %v4089_v56 = vld [vmem:[%s5398_s27 + $0xbc] sm:$0x1]  ;;  %v769_v58 = vshrl.u32 %v4112_v44, 16  ;;  %v5146_v59 = vld [vmem:[%s6675_s1 + $0x208] sm:$0xff]  ;;  %v642_v61 = vshll.u32 %v4087_v55, 16  ;;  %v757_v63 = vrot.slane %v755_v50, 4 }
  0x7d   : > { %v653_v57 = vor.u32 %v652_v48, %v649_v47  ;;  %v656_v62 = vshll.u32 %v4089_v56, 16  ;;  %v4111_v1 = vld [vmem:[%s5398_s27 + $0xc] sm:$0x1]  ;;  %v4113_v2 = vld [vmem:[%s5398_s27 + $0x14] sm:$0x1]  ;;  %v760_v4 = vrot.slane %v758_v51, 5  ;;  %v4213_v14 = vor.u32 %v5064_v52, %v4210_v53  ;;  %1924 = vmatpush.bf16.msra.mxu0 %v5146_v59 }
  0x7e   : > { %v640_v60 = vrot.slane %v639_v49, 4  ;;  %v5047_v5 = vld [vmem:[#allocation2 + $0x14] sm:$0xf]  ;;  %v644_v6 = vrot.slane %v642_v61, 5  ;;  %v4098_v8 = vld [vmem:[%s5398_s27 + $0x28] sm:$0xf] }
  0x7f   : > { %v654_v0 = vrot.slane %v653_v57, 4  ;;  %v658_v7 = vrot.slane %v656_v62, 5  ;;  %v4099_v9 = vld [vmem:[%s5398_s27 + $0x30] sm:$0xf]  ;;  %v4146_v11 = vld [vmem:[#allocation2 + $0x34] sm:$0xf0]  ;;  %v761_v13 = vor.u32 %v760_v4, %v757_v63 }
  0x80   : > { %717 = vst.msk [vmem:[#allocation2 + $0xa8] sm:$0xf] %vm353_vm0, %v4098_v8  ;;  %v4102_v12 = vld [vmem:[%s5398_s27 + $0x50] sm:$0xf]  ;;  %v4152_v15 = vld [vmem:[#allocation2 + $0x18] sm:$0xf]  ;;  %v645_v17 = vsel %vm5538_vm3, %v640_v60, %v644_v6  ;;  %v4149_v26 = vor.u32 %v5047_v5, %v4146_v11 }
  0x81   : > { %v5145_v16 = vld [vmem:[%s6675_s1 + $0x200] sm:$0xff]  ;;  %v659_v18 = vsel %vm5538_vm3, %v654_v0, %v658_v7  ;;  %718 = vst.msk [vmem:[#allocation2 + $0xcc] sm:$0xf] %vm353_vm0, %v4099_v9  ;;  %v4103_v19 = vld [vmem:[%s5398_s27 + $0x58] sm:$0xf]  ;;  %v764_v20 = vshll.u32 %v4111_v1, 16 }
  0x82   : > { %700 = vst.msk [vmem:[#allocation2 + $0xa4] sm:$0xf] %vm353_vm0, %v645_v17  ;;  %v762_v21 = vrot.slane %v761_v13, 4  ;;  %v772_v3 = vshll.u32 %v4112_v44, 16  ;;  %v778_v23 = vshll.u32 %v4113_v2, 16  ;;  %1925 = vmatpush.bf16.msra.mxu0 %v5145_v16 }
  0x83   : > { %v5052_v24 = vld [vmem:[#allocation2 + $0x38] sm:$0xf0]  ;;  %701 = vst.msk [vmem:[#allocation2 + $0xc8] sm:$0xf] %vm353_vm0, %v659_v18  ;;  %v766_v25 = vrot.slane %v764_v20, 5 }
  0x84   : > { %v4252_v27 = vld [vmem:[#allocation2 + $0xe8] sm:$0xf]  ;;  %730 = vst.msk [vmem:[#allocation2 + $0x1c] sm:$0xf] %vm353_vm0, %v4102_v12  ;;  %v5078_v29 = vld [vmem:[#allocation2 + $0x108] sm:$0xf0] }
  0x85   : > { %1786 = vmatmul.bf16.gmra.mxu3 %v4177_v22  ;;  %v771_v22 = vrot.slane %v769_v58, 4  ;;  %731 = vst.msk [vmem:[#allocation2 + $0x40] sm:$0xf] %vm353_vm0, %v4103_v19  ;;  %v767_v30 = vsel %vm5538_vm3, %v762_v21, %v766_v25  ;;  %v780_v31 = vrot.slane %v778_v23, 5  ;;  %v4090_v34 = vld [vmem:[%s5398_s27 + $0xc0] sm:$0xf]  ;;  %v4253_v40 = vor.u32 %v5078_v29, %v4252_v27 }
  0x86   : > { %874 = vst.msk [vmem:[#allocation2 + $0x20] sm:$0xf] %vm353_vm0, %v767_v30  ;;  %v4092_v35 = vld [vmem:[%s5398_s27 + $0xc8] sm:$0xf]  ;;  %v661_v36 = vshrl.u32 %v4090_v34, 16  ;;  %v664_v37 = vshll.u32 %v4090_v34, 16 }
  0x87   : > { %1738 = vmatmul.bf16.gmra.mxu1 %v4241_v28  ;;  %v774_v28 = vrot.slane %v772_v3, 5  ;;  %v678_v39 = vshll.u32 %v4092_v35, 16  ;;  %v4114_v45 = vld [vmem:[%s5398_s27 + $0x18] sm:$0xf]  ;;  %v4091_v47 = vld [vmem:[%s5398_s27 + $0xc4] sm:$0x1] }
  0x88   : > { %v663_v42 = vrot.slane %v661_v36, 4  ;;  %v666_v43 = vrot.slane %v664_v37, 5  ;;  %v4093_v48 = vld [vmem:[%s5398_s27 + $0xcc] sm:$0x1]  ;;  %v670_v50 = vshll.u32 %v4091_v47, 16  ;;  %v783_v54 = vshrl.u32 %v4114_v45, 16 }
  0x89   : > { %1767 = vmatmul.bf16.gmra.mxu2 %v4245_v32  ;;  %v4153_v32 = vor.u32 %v5052_v24, %v4152_v15  ;;  %v775_v33 = vor.u32 %v774_v28, %v771_v22  ;;  %v680_v51 = vrot.slane %v678_v39, 5  ;;  %v684_v52 = vshll.u32 %v4093_v48, 16  ;;  %v4115_v53 = vld [vmem:[%s5398_s27 + $0x1c] sm:$0x1]  ;;  %v5073_v55 = vld [vmem:[#allocation2 + $0xe4] sm:$0xf] }
  0x8a   : > { %v667_v49 = vor.u32 %v666_v43, %v663_v42  ;;  %v4246_v56 = vld [vmem:[#allocation2 + $0x104] sm:$0xf0]  ;;  %v672_v58 = vrot.slane %v670_v50, 5  ;;  %v4116_v60 = vld [vmem:[%s5398_s27 + $0x20] sm:$0xf]  ;;  %v785_v63 = vrot.slane %v783_v54, 4 }
  0x8b   : > { %1820 = vmatmul.bf16.gmra.mxu0 %v4217_v38  ;;  %v675_v38 = vshrl.u32 %v4092_v35, 16  ;;  %v776_v41 = vrot.slane %v775_v33, 4  ;;  %v686_v61 = vrot.slane %v684_v52, 5  ;;  %v4117_v62 = vld [vmem:[%s5398_s27 + $0x24] sm:$0x1]  ;;  %v786_v0 = vshll.u32 %v4114_v45, 16 }
  0x8c   : > { %v668_v57 = vrot.slane %v667_v49, 4  ;;  %v5056_v1 = vld [vmem:[#allocation2 + $0x5c] sm:$0xf]  ;;  %v4182_v2 = vld [vmem:[#allocation2 + $0x7c] sm:$0xf0]  ;;  %v792_v7 = vshll.u32 %v4115_v53, 16  ;;  %v4249_v16 = vor.u32 %v5073_v55, %v4246_v56 }
  0x8d   : > { %v677_v44 = vrot.slane %v675_v38, 4  ;;  %v781_v46 = vsel %vm5538_vm3, %v776_v41, %v780_v31  ;;  %v4100_v6 = vld [vmem:[%s5398_s27 + $0x38] sm:$0xf]  ;;  %v797_v8 = vshrl.u32 %v4116_v60, 16  ;;  %v4101_v9 = vld [vmem:[%s5398_s27 + $0x40] sm:$0xf]  ;;  %v4185_v3 = vor.u32 %v5056_v1, %v4182_v2 }
  0x8e   : > { %875 = vst.msk [vmem:[#allocation2 + $0x44] sm:$0xf] %vm353_vm0, %v781_v46  ;;  %v673_v4 = vsel %vm5538_vm3, %v668_v57, %v672_v58  ;;  %v4104_v11 = vld [vmem:[%s5398_s27 + $0x60] sm:$0xf]  ;;  %v788_v15 = vrot.slane %v786_v0, 5  ;;  %v800_v18 = vshll.u32 %v4116_v60, 16 }
  0x8f   : > { %v681_v59 = vor.u32 %v680_v51, %v677_v44  ;;  %702 = vst.msk [vmem:[#allocation2 + $0xec] sm:$0xf] %vm353_vm0, %v673_v4  ;;  %v4188_v12 = vld [vmem:[#allocation2 + $0x60] sm:$0xf]  ;;  %v799_v17 = vrot.slane %v797_v8, 4  ;;  %v806_v19 = vshll.u32 %v4117_v62, 16 }
  0x90   : > { %719 = vst.msk [vmem:[#allocation2 + $0xf0] sm:$0xf] %vm353_vm0, %v4100_v6  ;;  %v5061_v20 = vld [vmem:[#allocation2 + $0x80] sm:$0xf0]  ;;  %v789_v21 = vor.u32 %v788_v15, %v785_v63  ;;  %v794_v22 = vrot.slane %v792_v7, 5  ;;  %v802_v24 = vrot.slane %v800_v18, 5 }
  0x91   : > { %v682_v5 = vrot.slane %v681_v59, 4  ;;  %720 = vst.msk [vmem:[#allocation2 + $0x114] sm:$0xf] %vm353_vm0, %v4101_v9  ;;  %v4160_v23 = vld [vmem:[#allocation2 + $0x20] sm:$0xf]  ;;  %v4189_v27 = vor.u32 %v5061_v20, %v4188_v12  ;;  %v808_v29 = vrot.slane %v806_v19, 5 }
  0x92   : > { %732 = vst.msk [vmem:[#allocation2 + $0x64] sm:$0xf] %vm353_vm0, %v4104_v11  ;;  %v803_v28 = vor.u32 %v802_v24, %v799_v17  ;;  %v4118_v30 = vld [vmem:[%s5398_s27 + $0x28] sm:$0xf]  ;;  %v4120_v31 = vld [vmem:[%s5398_s27 + $0x30] sm:$0xf] }
  0x93   : > { %v687_v13 = vsel %vm5538_vm3, %v682_v5, %v686_v61  ;;  %v811_v33 = vshrl.u32 %v4118_v30, 16  ;;  %v814_v34 = vshll.u32 %v4118_v30, 16  ;;  %v825_v35 = vshrl.u32 %v4120_v31, 16  ;;  %v4119_v42 = vld [vmem:[%s5398_s27 + $0x2c] sm:$0x1] }
  0x94   : > { %703 = vst.msk [vmem:[#allocation2 + $0x110] sm:$0xf] %vm353_vm0, %v687_v13  ;;  %v804_v37 = vrot.slane %v803_v28, 4  ;;  %v828_v38 = vshll.u32 %v4120_v31, 16  ;;  %v4121_v44 = vld [vmem:[%s5398_s27 + $0x34] sm:$0x1] }
  0x95   : > { %1791 = vmatmul.bf16.gmra.mxu3 %v4213_v14  ;;  %v4105_v14 = vld [vmem:[%s5398_s27 + $0x68] sm:$0xf]  ;;  %v5053_v25 = vld [vmem:[#allocation2 + $0x40] sm:$0xf0]  ;;  %v813_v39 = vrot.slane %v811_v33, 4  ;;  %v827_v43 = vrot.slane %v825_v35, 4 }
  0x96   : > { %733 = vst.msk [vmem:[#allocation2 + $0x88] sm:$0xf] %vm353_vm0, %v4105_v14  ;;  %v4161_v36 = vor.u32 %v5053_v25, %v4160_v23  ;;  %v809_v41 = vsel %vm5538_vm3, %v804_v37, %v808_v29  ;;  %v820_v46 = vshll.u32 %v4119_v42, 16  ;;  %v830_v47 = vrot.slane %v828_v38, 5  ;;  %v5048_v50 = vld [vmem:[#allocation2 + $0x1c] sm:$0xf] }
  0x97   : > { %1839 = vmatmul.bf16.vlgmr.msrb.gmra.mxu1 %v4149_v26  ;;  %v790_v26 = vrot.slane %v789_v21, 4  ;;  %877 = vst.msk [vmem:[#allocation2 + $0x8c] sm:$0xf] %vm353_vm0, %v809_v41  ;;  %v834_v48 = vshll.u32 %v4121_v44, 16  ;;  %v4154_v54 = vld [vmem:[#allocation2 + $0x3c] sm:$0xf0] }
  0x98   : > { %v822_v51 = vrot.slane %v820_v46, 5  ;;  %v831_v52 = vor.u32 %v830_v47, %v827_v43  ;;  %v4106_v55 = vld [vmem:[%s5398_s27 + $0x70] sm:$0xf]  ;;  %v4107_v56 = vld [vmem:[%s5398_s27 + $0x78] sm:$0xf]  ;;  %v4157_v61 = vor.u32 %v5048_v50, %v4154_v54 }
  0x99   : > { %1868 = vmatmul.bf16.vlgmr.msrb.gmra.mxu2 %v4153_v32  ;;  %v795_v32 = vsel %vm5538_vm3, %v790_v26, %v794_v22  ;;  %v836_v53 = vrot.slane %v834_v48, 5  ;;  %734 = vst.msk [vmem:[#allocation2 + $0xac] sm:$0xf] %vm353_vm0, %v4106_v55  ;;  %v5065_v59 = vld [vmem:[#allocation2 + $0xa4] sm:$0xf] }
  0x9a   : > { %876 = vst.msk [vmem:[#allocation2 + $0x68] sm:$0xf] %vm353_vm0, %v795_v32  ;;  %v832_v58 = vrot.slane %v831_v52, 4  ;;  %v4218_v60 = vld [vmem:[#allocation2 + $0xc4] sm:$0xf0] }
  0x9b   : > { %1825 = vmatmul.bf16.gmra.mxu0 %v4253_v40  ;;  %v816_v40 = vrot.slane %v814_v34, 5  ;;  %735 = vst.msk [vmem:[#allocation2 + $0xd0] sm:$0xf] %vm353_vm0, %v4107_v56  ;;  %v4224_v63 = vld [vmem:[#allocation2 + $0xa8] sm:$0xf]  ;;  %v4221_v1 = vor.u32 %v5065_v59, %v4218_v60 }
  0x9c   : > { %v837_v62 = vsel %vm5538_vm3, %v832_v58, %v836_v53  ;;  %v5070_v0 = vld [vmem:[#allocation2 + $0xc8] sm:$0xf0]  ;;  %v4122_v6 = vld [vmem:[%s5398_s27 + $0x38] sm:$0xf]  ;;  %v4124_v7 = vld [vmem:[%s5398_s27 + $0x40] sm:$0xf] }
  0x9d   : > { %v817_v45 = vor.u32 %v816_v40, %v813_v39  ;;  %879 = vst.msk [vmem:[#allocation2 + $0xd4] sm:$0xf] %vm353_vm0, %v837_v62  ;;  %v4225_v5 = vor.u32 %v5070_v0, %v4224_v63  ;;  %v839_v8 = vshrl.u32 %v4122_v6, 16  ;;  %v842_v9 = vshll.u32 %v4122_v6, 16  ;;  %v4123_v17 = vld [vmem:[%s5398_s27 + $0x3c] sm:$0x1] }
  0x9e   : > { %v5062_v4 = vld [vmem:[#allocation2 + $0x88] sm:$0xf0]  ;;  %v853_v11 = vshrl.u32 %v4124_v7, 16  ;;  %v856_v12 = vshll.u32 %v4124_v7, 16  ;;  %v4125_v18 = vld [vmem:[%s5398_s27 + $0x44] sm:$0x1] }
  0x9f   : > { %v818_v49 = vrot.slane %v817_v45, 4  ;;  %v841_v14 = vrot.slane %v839_v8, 4  ;;  %v844_v15 = vrot.slane %v842_v9, 5  ;;  %v848_v20 = vshll.u32 %v4123_v17, 16  ;;  %v5057_v25 = vld [vmem:[#allocation2 + $0x64] sm:$0xf] }
  0xa0   : > { %v858_v21 = vrot.slane %v856_v12, 5  ;;  %v862_v22 = vshll.u32 %v4125_v18, 16  ;;  %v4190_v26 = vld [vmem:[#allocation2 + $0x84] sm:$0xf0]  ;;  %v4108_v28 = vld [vmem:[%s5398_s27 + $0x80] sm:$0xf] }
  0xa1   : > { %v823_v57 = vsel %vm5538_vm3, %v818_v49, %v822_v51  ;;  %v4196_v2 = vld [vmem:[#allocation2 + $0x68] sm:$0xf]  ;;  %v845_v19 = vor.u32 %v844_v15, %v841_v14  ;;  %v850_v23 = vrot.slane %v848_v20, 5  ;;  %736 = vst.msk [vmem:[#allocation2 + $0xf4] sm:$0xf] %vm353_vm0, %v4108_v28  ;;  %v4193_v35 = vor.u32 %v5057_v25, %v4190_v26  ;;  %v5200_v12 = vld [vmem:[%s6677_s3 + $0x38] sm:$0xff] }
  0xa2   : > { %878 = vst.msk [vmem:[#allocation2 + $0xb0] sm:$0xf] %vm353_vm0, %v823_v57  ;;  %v4197_v13 = vor.u32 %v5062_v4, %v4196_v2  ;;  %v4109_v29 = vld [vmem:[%s5398_s27 + $0x88] sm:$0xf]  ;;  %v5074_v32 = vld [vmem:[#allocation2 + $0xec] sm:$0xf]  ;;  %3705 = vmatpush.bf16.msra.mxu2 %v5200_v12 }
  0xa3   : > { %v4254_v33 = vld [vmem:[#allocation2 + $0x10c] sm:$0xf0]  ;;  %737 = vst.msk [vmem:[#allocation2 + $0x118] sm:$0xf] %vm353_vm0, %v4109_v29  ;;  %v5079_v37 = vld [vmem:[#allocation2 + $0x110] sm:$0xf0] }
  0xa4   : > { %v4257_v38 = vor.u32 %v5074_v32, %v4254_v33  ;;  %v5071_v41 = vld [vmem:[#allocation2 + $0xd0] sm:$0xf0]  ;;  %v5066_v44 = vld [vmem:[#allocation2 + $0xac] sm:$0xf]  ;;  %v4226_v45 = vld [vmem:[#allocation2 + $0xcc] sm:$0xf0] }
  0xa5   : > { %1796 = vmatmul.bf16.gmra.mxu3 %v4249_v16  ;;  %v855_v16 = vrot.slane %v853_v11, 4  ;;  %v4229_v47 = vor.u32 %v5066_v44, %v4226_v45  ;;  %v4568_v17 = vld [vmem:[%s5398_s27 + $0xd8] sm:$0xf]  ;;  %v5153_v18 = vld [vmem:[%s5398_s27 + $0xdc] sm:$0xf0]  ;;  %v5223_v12 = vld [vmem:[%s6677_s3 + $0xf0] sm:$0xff] }
  0xa6   : > { %v4572_v29 = vld [vmem:[%s5398_s27 + $0xe8] sm:$0xf]  ;;  %v5197_v32 = vld [vmem:[%s6677_s3 + $0x20] sm:$0xff] }
  0xa7   : > { %1844 = vmatmul.bf16.gmra.mxu1 %v4185_v3  ;;  %v846_v3 = vrot.slane %v845_v19, 4  ;;  %v859_v24 = vor.u32 %v858_v21, %v855_v16  ;;  %v4569_v19 = vor.u32 %v5153_v18, %v4568_v17  ;;  %v5199_v21 = vld [vmem:[%s6677_s3 + $0x30] sm:$0xff]  ;;  %v5155_v44 = vld [vmem:[%s5398_s27 + $0xfc] sm:$0xf0] }
  0xa8   : > { %v5865_v39 = vpop.f32.mrf.mxu0  ;;  %v5075_v56 = vld [vmem:[#allocation2 + $0xf4] sm:$0xf]  ;;  %3706 = vmatpush.bf16.msra.mxu2 %v5199_v21 }
  0xa9   : > { %1873 = vmatmul.bf16.gmra.mxu2 %v4189_v27  ;;  %v864_v27 = vrot.slane %v862_v22, 5  ;;  %v851_v30 = vsel %vm5538_vm3, %v846_v3, %v850_v23  ;;  %v860_v31 = vrot.slane %v859_v24, 4  ;;  %v4232_v40 = vld [vmem:[#allocation2 + $0xb0] sm:$0xf]  ;;  %v5198_v24 = vld [vmem:[%s6677_s3 + $0x28] sm:$0xff] }
  0xaa   : > { %880 = vst.msk [vmem:[#allocation2 + $0xf8] sm:$0xf] %vm353_vm0, %v851_v30  ;;  %v4233_v43 = vor.u32 %v5071_v41, %v4232_v40  ;;  %v4262_v57 = vld [vmem:[#allocation2 + $0x114] sm:$0xf0]  ;;  %v5154_v30 = vld [vmem:[%s5398_s27 + $0xec] sm:$0xf0] }
  0xab   : > { %1926 = vmatmul.bf16.vlgmr.msra.gmra.mxu0 %v4161_v36  ;;  %v865_v34 = vsel %vm5538_vm3, %v860_v31, %v864_v27  ;;  %v4260_v36 = vld [vmem:[#allocation2 + $0xf0] sm:$0xf]  ;;  %v4265_v60 = vor.u32 %v5075_v56, %v4262_v57  ;;  %v4573_v31 = vor.u32 %v5154_v30, %v4572_v29  ;;  %v5968_v41 = vld [vmem:[%s6676_s2] ss:$0 sm:$0xff]  ;;  %v5224_v56 = vld [vmem:[%s6677_s3 + $0xf8] sm:$0xff] }
  0xac   : > { %881 = vst.msk [vmem:[#allocation2 + $0x11c] sm:$0xf] %vm353_vm0, %v865_v34  ;;  %v4261_v42 = vor.u32 %v5079_v37, %v4260_v36  ;;  %3707 = vmatpush.bf16.msra.mxu2 %v5198_v24  ;;  %v1696_v45 = vadd.f32 %v5968_v41, %v5865_v39 }
  0xb0   : > { %v5867_v46 = vpop.f32.mrf.mxu0  ;;  %3708 = vmatpush.bf16.msra.mxu2 %v5197_v32 }
  0xb1   : > { %v4268_v49 = vld [vmem:[#allocation2 + $0xf8] sm:$0xf]  ;;  %v1698_v21 = vadd.f32 %v5968_v41, %v5867_v46  ;;  %v5195_v46 = vld [vmem:[%s6677_s3 + $0x10] sm:$0xff] }
  0xb3   : > { %v5080_v50 = vld [vmem:[#allocation2 + $0x118] sm:$0xf0] }
  0xb4   : > { %v4269_v51 = vor.u32 %v5080_v50, %v4268_v49  ;;  %v5208_v50 = vld [vmem:[%s6677_s3 + $0x78] sm:$0xff] }
  0xb5   : > { %1897 = vmatmul.bf16.vlgmr.msra.gmra.mxu3 %v4157_v61 }
  0xb6   : > { %3734 = vmatpush.bf16.msrb.mxu3 %v5208_v50  ;;  %v5156_v50 = vld [vmem:[%s5398_s27 + $0x10c] sm:$0xf0] }
  0xb7   : > { %1849 = vmatmul.bf16.gmra.mxu1 %v4221_v1 }
  0xb9   : > { %1878 = vmatmul.bf16.gmra.mxu2 %v4225_v5 }
  0xbb   : > { %1931 = vmatmul.bf16.gmra.mxu0 %v4197_v13  ;;  %v2106_v13 = vld [vmem:[%s6679_s5] sm:$0x3] }
  0xbc   : > { %v2146_v14 = vsel %vm2144_vm4, %v2106_v13, 0  ;;  %v5207_v13 = vld [vmem:[%s6677_s3 + $0x70] sm:$0xff] }
  0xbd   : > { %2155 = vmatpush.bf16.msra.mxu1 %v2146_v14  ;;  %3735 = vmatpush.bf16.msrb.mxu3 %v5207_v13 }
  0xc1   : > { %3792 = vmatpush.bf16.msrb.mxu1 %v5224_v56 }
  0xc5   : > { %1902 = vmatmul.bf16.gmra.mxu3 %v4193_v35  ;;  %3793 = vmatpush.bf16.msrb.mxu1 %v5223_v12  ;;  %v2337_v12 = vld [vmem:[#allocation4] sm:$0xe] }
  0xc7   : > { %1854 = vmatmul.bf16.gmra.mxu1 %v4257_v38  ;;  %v5216_v38 = vld [vmem:[%s6677_s3 + $0xb8] sm:$0xff] }
  0xc8   : > { %3763 = vmatpush.bf16.msrb.mxu0 %v5216_v38  ;;  %v5212_v38 = vld [vmem:[%s6677_s3 + $0x98] sm:$0xff] }
  0xc9   : > { %1883 = vmatmul.bf16.gmra.mxu2 %v4261_v42 }
  0xcb   : > { %1936 = vmatmul.bf16.gmra.mxu0 %v4233_v43  ;;  %v4576_v43 = vld [vmem:[%s5398_s27 + $0xf8] sm:$0xf] }
  0xd4   : > { %v5869_v48 = vpop.f32.mrf.mxu1 }
  0xd5   : > { %1907 = vmatmul.bf16.gmra.mxu3 %v4229_v47  ;;  %v5215_v47 = vld [vmem:[%s6677_s3 + $0xb0] sm:$0xff]  ;;  %v1725_v39 = vadd.f32 %v5869_v48, %v1696_v45  ;;  %v5196_v48 = vld [vmem:[%s6677_s3 + $0x18] sm:$0xff] }
  0xd6   : > { %3764 = vmatpush.bf16.msrb.mxu0 %v5215_v47  ;;  %3709 = vmatpush.bf16.msra.mxu2 %v5196_v48 }
  0xd7   : > { %4582 = vmatmul.msk.bf16.vlgmr.msra.gmra.mxu1 %vm2131_vm5, %v4569_v19  ;;  %v5213_v19 = vld [vmem:[%s6677_s3 + $0xa0] sm:$0xff] }
  0xd8   : > { %v5871_v52 = vpop.f32.mrf.mxu3  ;;  %v5873_v53 = vpop.f32.mrf.mxu0 }
  0xda   : > { %3710 = vmatpush.bf16.msra.mxu2 %v5195_v46 }
  0xdb   : > { %1941 = vmatmul.bf16.gmra.mxu0 %v4269_v51  ;;  %v4577_v51 = vor.u32 %v5155_v44, %v4576_v43  ;;  %v5221_v43 = vld [vmem:[%s6677_s3 + $0xe0] sm:$0xff] }
  0xdc   : > { %v5875_v54 = vpop.f32.mrf.mxu2  ;;  %v5877_v55 = vpop.f32.mrf.mxu1  ;;  %v5205_v44 = vld [vmem:[%s6677_s3 + $0x60] sm:$0xff] }
  0xdd   : > { %v1754_v17 = vadd.f32 %v5875_v54, %v1725_v39  ;;  %v5222_v54 = vld [vmem:[%s6677_s3 + $0xe8] sm:$0xff] }
  0xde   : > { %3794 = vmatpush.bf16.msrb.mxu1 %v5222_v54 }
  0xe0   : > { %v5879_v58 = vpop.f32.mrf.mxu3  ;;  %v5881_v59 = vpop.f32.mrf.mxu0 }
  0xe2   : > { %3795 = vmatpush.bf16.msrb.mxu1 %v5221_v43 }
  0xe4   : > { %v5883_v61 = vpop.f32.mrf.mxu2  ;;  %v5885_v62 = vpop.f32.mrf.mxu1 }
  0xe5   : > { %1912 = vmatmul.bf16.gmra.mxu3 %v4265_v60  ;;  %v5214_v60 = vld [vmem:[%s6677_s3 + $0xa8] sm:$0xff] }
  0xe6   : > { %3765 = vmatpush.bf16.msrb.mxu0 %v5214_v60  ;;  %v5211_v60 = vld [vmem:[%s6677_s3 + $0x90] sm:$0xff] }
  0xe7   : > { %4583 = vmatmul.msk.bf16.gmra.mxu1 %vm2131_vm5, %v4573_v31  ;;  %v5206_v31 = vld [vmem:[%s6677_s3 + $0x68] sm:$0xff] }
  0xe8   : > { %v5887_v63 = vpop.f32.mrf.mxu3  ;;  %v5889_v0 = vpop.f32.mrf.mxu0  ;;  %3736 = vmatpush.bf16.msrb.mxu3 %v5206_v31 }
  0xea   : > { %3766 = vmatpush.bf16.msrb.mxu0 %v5213_v19 }
  0xec   : > { %v5891_v1 = vpop.f32.mrf.mxu2  ;;  %v5897_v5 = vpop.f32.mrf.mxu1  ;;  %3737 = vmatpush.bf16.msrb.mxu3 %v5205_v44  ;;  %v5219_v44 = vld [vmem:[%s6677_s3 + $0xd0] sm:$0xff] }
  0xee   : > { %3767 = vmatpush.bf16.msrb.mxu0 %v5212_v38 }
  0xf0   : > { %v5893_v2 = vpop.f32.mrf.mxu3  ;;  %v5895_v4 = vpop.f32.mrf.mxu0 }
  0xf2   : > { %3768 = vmatpush.bf16.msrb.mxu0 %v5211_v60 }
  0xf4   : > { %v5899_v6 = vpop.f32.mrf.mxu2  ;;  %v5905_v9 = vpop.f32.mrf.mxu1 }
  0xf7   : > { %4584 = vmatmul.msk.bf16.gmra.mxu1 %vm2131_vm5, %v4577_v51  ;;  %v2177_v51 = vld [vmem:[#allocation4] sm:$0xf] }
  0xf8   : > { %v5901_v7 = vpop.f32.mrf.mxu3  ;;  %v5903_v8 = vpop.f32.mrf.mxu0  ;;  %2185 = vst [vmem:[#allocation3] sm:$0xf] %v2177_v51 }
  0xf9   : > { %v1783_v24 = vadd.f32 %v5901_v7, %v1754_v17  ;;  %v1727_v7 = vadd.f32 %v5877_v55, %v1698_v21  ;;  %v1701_v55 = vadd.f32 %v5968_v41, %v5873_v53  ;;  %v5194_v53 = vld [vmem:[%s6677_s3 + $0x8] sm:$0xff]  ;;  %v2338_v17 = vld [vmem:[#allocation4 + $0x4] sm:$0x1]  ;;  %v4586_v21 = vrot.slane %v2337_v12, 9 }
  0xfa   : > { %3711 = vmatpush.bf16.msra.mxu2 %v5194_v53 }
  0xfb   : > { %v1812_v32 = vadd.f32 %v5889_v0, %v1783_v24  ;;  %v1756_v45 = vadd.f32 %v5883_v61, %v1727_v7  ;;  %v4580_v0 = vld [vmem:[%s5398_s27 + $0x108] sm:$0xf]  ;;  %v2374_v24 = vrot.slane %v2338_v17, 5  ;;  %v1730_v54 = vadd.f32 %v5885_v62, %v1701_v55  ;;  %v5193_v62 = vld [vmem:[%s6677_s3] sm:$0xff]  ;;  %s5044_s27 = sshll.u32 %s6693_s25, 6 }
  0xfc   : > { %v5907_v11 = vpop.f32.mrf.mxu2  ;;  %v5921_v20 = vpop.f32.mrf.mxu1  ;;  %v4581_v39 = vor.u32 %v5156_v50, %v4580_v0  ;;  %v5210_v7 = vld [vmem:[%s6677_s3 + $0x88] sm:$0xff]  ;;  %v2193_v55 = vld [vmem:[#allocation4] sm:$0xf]  ;;  %v1703_v50 = vadd.f32 %v5968_v41, %v5881_v59  ;;  %s6635_s20 = scalar_lea.vmem %s6681_s7, %s5044_s27 }
  0xfd   : > { %3769 = vmatpush.bf16.msrb.mxu0 %v5210_v7  ;;  %v2213_v51 = vshll.u32 %v2193_v55, 16  ;;  %v5218_v59 = vld [vmem:[%s6677_s3 + $0xc8] sm:$0xff] }
  0xfe   : > { %3712 = vmatpush.bf16.msra.mxu2 %v5193_v62 }
 0x100   : > { %v5915_v15 = vpop.f32.mrf.mxu3  ;;  %v5917_v16 = vpop.f32.mrf.mxu0 }
 0x101   : > { %v1785_v61 = vadd.f32 %v5915_v15, %v1756_v45  ;;  %v5204_v15 = vld [vmem:[%s6677_s3 + $0x58] sm:$0xff]  ;;  %v5203_v45 = vld [vmem:[%s6677_s3 + $0x50] sm:$0xff] }
 0x102   : > { %3738 = vmatpush.bf16.msrb.mxu3 %v5204_v15  ;;  %v1732_v15 = vadd.f32 %v5897_v5, %v1703_v50 }
 0x103   : > { %v1814_v38 = vadd.f32 %v5895_v4, %v1785_v61 }
 0x104   : > { %v5927_v22 = vpop.f32.mrf.mxu2  ;;  %v5936_v25 = vpop.f32.mrf.mxu1  ;;  %v1761_v62 = vadd.f32 %v5899_v6, %v1732_v15  ;;  %v2059_v15 = vld [vmem:[#allocation4 + $0x14] sm:$0x1] }
 0x106   : > { %3739 = vmatpush.bf16.msrb.mxu3 %v5203_v45 }
 0x107   : > { %4585 = vmatmul.msk.bf16.gmra.mxu1 %vm2131_vm5, %v4581_v39 }
 0x108   : > { %v5929_v3 = vpop.f32.mrf.mxu3  ;;  %v5931_v23 = vpop.f32.mrf.mxu0 }
 0x10c   : > { %v5942_v28 = vpop.f32.mrf.mxu2  ;;  %v5954_v35 = vpop.f32.mrf.mxu1 }
 0x110   : > { %v5938_v26 = vpop.f32.mrf.mxu3  ;;  %v5940_v27 = vpop.f32.mrf.mxu0 }
 0x114   : > { %v5956_v36 = vpop.f32.mrf.mxu2  ;;  %v1840_v42 = vpop.f32.mrf.mxu1 }
 0x115   : > { %v1841_v47 = vadd.f32 %v1840_v42, %v1812_v32  ;;  %v5220_v42 = vld [vmem:[%s6677_s3 + $0xd8] sm:$0xff]  ;;  %v2375_v32 = vsel %vm6055_vm8, %v4586_v21, %v2374_v24 }
 0x116   : > { %3796 = vmatpush.bf16.msrb.mxu1 %v5220_v42  ;;  %2412 = vst [vmem:[#allocation3 + $0x8] sm:$0xf] %v2375_v32  ;;  %v2215_v42 = vrot.slane %v2213_v51, 5 }
 0x118   : > { %v5950_v33 = vpop.f32.mrf.mxu3  ;;  %v5952_v34 = vpop.f32.mrf.mxu0 }
 0x11a   : > { %3797 = vmatpush.bf16.msrb.mxu1 %v5219_v44  ;;  %v2047_v44 = vld [vmem:[#allocation4 + $0x8] sm:$0xf] }
 0x11c   : > { %v1869_v49 = vpop.f32.mrf.mxu2  ;;  %v6000_v18 = vpop.f32.mrf.mxu1 }
 0x11d   : > { %v1870_v13 = vadd.f32 %v1869_v49, %v1841_v47  ;;  %v1759_v47 = vadd.f32 %v5891_v1, %v1730_v54  ;;  %v1843_v0 = vadd.f32 %v6000_v18, %v1814_v38  ;;  %v5209_v1 = vld [vmem:[%s6677_s3 + $0x80] sm:$0xff]  ;;  %v6265_v38 = vld [vmem:[%s6677_s3 + $0x1f8] sm:$0xff] }
 0x11e   : > { %v2194_v18 = vld [vmem:[#allocation4 + $0x4] sm:$0x1]  ;;  %3770 = vmatpush.bf16.msrb.mxu0 %v5209_v1  ;;  %3798 = vmatpush.bf16.msrb.mxu1 %v5218_v59 }
 0x11f   : > { %v1788_v39 = vadd.f32 %v5929_v3, %v1759_v47  ;;  %v2219_v17 = vshll.u32 %v2194_v18, 16 }
 0x120   : > { %v5958_v37 = vpop.f32.mrf.mxu3  ;;  %v5963_v40 = vpop.f32.mrf.mxu0 }
 0x121   : > { %v2221_v54 = vrot.slane %v2219_v17, 5 }
 0x124   : > { %v6011_v29 = vpop.f32.mrf.mxu2  ;;  %v6049_v48 = vpop.f32.mrf.mxu1 }
 0x125   : > { %v1872_v60 = vadd.f32 %v6011_v29, %v1843_v0 }
 0x128   : > { %v5983_v57 = vpop.f32.mrf.mxu3  ;;  %v1927_v14 = vpop.f32.mrf.mxu0 }
 0x12c   : > { %v6060_v46 = vpop.f32.mrf.mxu2  ;;  %v1847_v21 = vpop.f32.mrf.mxu1 }
 0x130   : > { %v6013_v30 = vpop.f32.mrf.mxu3  ;;  %v6037_v56 = vpop.f32.mrf.mxu0 }
 0x134   : > { %v1876_v5 = vpop.f32.mrf.mxu2 }
 0x138   : > { %v1898_v19 = vpop.f32.mrf.mxu3  ;;  %v1932_v53 = vpop.f32.mrf.mxu0 }
 0x139   : > { %v1899_v31 = vadd.f32 %v1898_v19, %v1870_v13  ;;  %v5202_v19 = vld [vmem:[%s6677_s3 + $0x48] sm:$0xff] }
 0x13a   : > { %3740 = vmatpush.bf16.msrb.mxu3 %v5202_v19  ;;  %v2056_v19 = vld [vmem:[#allocation4 + $0x10] sm:$0xf] }
 0x13b   : > { %v1928_v43 = vadd.f32 %v1927_v14, %v1899_v31  ;;  %v2210_v14 = vshrl.u32 %v2193_v55, 16  ;;  %v1817_v31 = vadd.f32 %v5903_v8, %v1788_v39  ;;  %v2053_v8 = vld [vmem:[#allocation4 + $0xc] sm:$0x1] }
 0x13d   : > { %v1947_v4 = vmax.f32 %v1928_v43, 0.0  ;;  %v2212_v61 = vrot.slane %v2210_v14, 4  ;;  %v1846_v47 = vadd.f32 %v6049_v48, %v1817_v31 }
 0x13f   : > { %v1955_v12 = vpack.c.bf16 %v1947_v4, %v1947_v4  ;;  %v2216_v24 = vor.u32 %v2215_v42, %v2212_v61  ;;  %v1875_v50 = vadd.f32 %v6060_v46, %v1846_v47  ;;  %v1706_v46 = vadd.f32 %v5968_v41, %v5871_v52  ;;  %v5201_v61 = vld [vmem:[%s6677_s3 + $0x40] sm:$0xff] }
 0x140   : > { %v1900_v13 = vpop.f32.mrf.mxu3  ;;  %v1934_v18 = vpop.f32.mrf.mxu0  ;;  %3741 = vmatpush.bf16.msrb.mxu3 %v5201_v61 }
 0x141   : > { %v1964_v3 = vshrl.u32 %v1955_v12, 16  ;;  %v1901_v29 = vadd.f32 %v1900_v13, %v1872_v60  ;;  %v1967_v32 = vshll.u32 %v1955_v12, 16  ;;  %v2217_v55 = vrot.slane %v2216_v24, 4 }
 0x143   : > { %v1966_v7 = vrot.slane %v1964_v3, 7  ;;  %v1930_v43 = vadd.f32 %v6037_v56, %v1901_v29  ;;  %v1790_v56 = vadd.f32 %v5938_v26, %v1761_v62  ;;  %v2222_v6 = vsel %vm5538_vm3, %v2217_v55, %v2221_v54  ;;  %v5217_v26 = vld [vmem:[%s6677_s3 + $0xc0] sm:$0xff]  ;;  %v1850_v29 = vpop.f32.mrf.mxu1 }
 0x144   : > { %2329 = vst [vmem:[#allocation3 + $0x4] sm:$0xf] %v2222_v6  ;;  %3799 = vmatpush.bf16.msrb.mxu1 %v5217_v26  ;;  %v1735_v3 = vadd.f32 %v5905_v9, %v1706_v46  ;;  %v1708_v9 = vadd.f32 %v5968_v41, %v5879_v58 }
 0x145   : > { %v1969_v0 = vor.u32 %v1967_v32, %v1966_v7  ;;  %v1970_v4 = vrot.slane %v1966_v7, 4  ;;  %v1948_v14 = vmax.f32 %v1930_v43, 0.0  ;;  %v1819_v13 = vadd.f32 %v5917_v16, %v1790_v56  ;;  %v1879_v32 = vpop.f32.mrf.mxu2 }
 0x146   : > { %v1764_v7 = vadd.f32 %v5907_v11, %v1735_v3  ;;  %v1737_v11 = vadd.f32 %v5921_v20, %v1708_v9 }
 0x147   : > { %v2048_v51 = vsel %vm6096_vm13, %v1969_v0, %v2047_v44  ;;  %v2054_v39 = vsel %vm6104_vm14, %v1970_v4, %v2053_v8  ;;  %v1956_v60 = vpack.c.bf16 %v1948_v14, %v1948_v14  ;;  %v1848_v24 = vadd.f32 %v1847_v21, %v1819_v13  ;;  %v2065_v13 = vld [vmem:[#allocation4 + $0x1c] sm:$0x1] }
 0x148   : > { %2049 = vst [vmem:[#allocation4 + $0x8] sm:$0xf] %v2048_v51  ;;  %v1903_v48 = vpop.f32.mrf.mxu3  ;;  %v1793_v44 = vadd.f32 %v5950_v33, %v1764_v7  ;;  %v1766_v14 = vadd.f32 %v5927_v22, %v1737_v11  ;;  %v1937_v58 = vpop.f32.mrf.mxu0  ;;  %v1711_v22 = vadd.f32 %v5968_v41, %v5887_v63  ;;  %5273 = vmatpush.bf16.msra.mxu1 %v6265_v38 }
 0x149   : > { %2055 = vst [vmem:[#allocation4 + $0xc] sm:$0x1] %v2054_v39  ;;  %v1972_v12 = vshrl.u32 %v1956_v60, 16  ;;  %v1904_v1 = vadd.f32 %v1903_v48, %v1875_v50  ;;  %v1975_v42 = vshll.u32 %v1956_v60, 16  ;;  %v1877_v43 = vadd.f32 %v1876_v5, %v1848_v24 }
 0x14a   : > { %v1822_v56 = vadd.f32 %v5931_v23, %v1793_v44  ;;  %v1795_v20 = vadd.f32 %v5958_v37, %v1766_v14  ;;  %v2062_v23 = vld [vmem:[#allocation4 + $0x18] sm:$0xf]  ;;  %v1740_v37 = vadd.f32 %v5936_v25, %v1711_v22 }
 0x14b   : > { %v1974_v59 = vrot.slane %v1972_v12, 7  ;;  %v1933_v17 = vadd.f32 %v1932_v53, %v1904_v1  ;;  %v1852_v1 = vpop.f32.mrf.mxu1 }
 0x14c   : > { %v1851_v12 = vadd.f32 %v1850_v29, %v1822_v56  ;;  %v1824_v24 = vadd.f32 %v5940_v27, %v1795_v20 }
 0x14d   : > { %v1977_v54 = vor.u32 %v1975_v42, %v1974_v59  ;;  %v1978_v52 = vrot.slane %v1974_v59, 4  ;;  %v1949_v31 = vmax.f32 %v1933_v17, 0.0  ;;  %v1881_v61 = vpop.f32.mrf.mxu2 }
 0x14e   : > { %v1853_v25 = vadd.f32 %v1852_v1, %v1824_v24 }
 0x14f   : > { %v2057_v16 = vsel %vm6096_vm13, %v1977_v54, %v2056_v19  ;;  %v2060_v53 = vsel %vm6104_vm14, %v1978_v52, %v2059_v15  ;;  %v1957_v62 = vpack.c.bf16 %v1949_v31, %v1949_v31  ;;  %v2195_v21 = vld [vmem:[#allocation4 + $0x8] sm:$0xf]  ;;  %v1713_v31 = vadd.f32 %v5968_v41, %v5893_v2 }
 0x150   : > { %v1905_v8 = vpop.f32.mrf.mxu3  ;;  %2058 = vst [vmem:[#allocation4 + $0x10] sm:$0xf] %v2057_v16  ;;  %v2224_v47 = vshrl.u32 %v2195_v21, 16  ;;  %v2178_v4 = vld [vmem:[#allocation4 + $0x8] sm:$0xf]  ;;  %v2227_v51 = vshll.u32 %v2195_v21, 16  ;;  %v1882_v56 = vadd.f32 %v1881_v61, %v1853_v25 }
 0x151   : > { %v1906_v55 = vadd.f32 %v1905_v8, %v1877_v43  ;;  %2061 = vst [vmem:[#allocation4 + $0x14] sm:$0x1] %v2060_v53  ;;  %v1980_v5 = vshrl.u32 %v1957_v62, 16  ;;  %v1983_v50 = vshll.u32 %v1957_v62, 16  ;;  %v2339_v33 = vld [vmem:[#allocation4 + $0x8] sm:$0xe]  ;;  %v1769_v43 = vadd.f32 %v5942_v28, %v1740_v37 }
 0x152   : > { %2186 = vst [vmem:[#allocation3 + $0x24] sm:$0xf] %v2178_v4  ;;  %v2340_v60 = vld [vmem:[#allocation4 + $0xc] sm:$0x1]  ;;  %v2420_v48 = vld [vmem:[#allocation4 + $0x8] sm:$0xf]  ;;  %v1742_v41 = vadd.f32 %v5954_v35, %v1713_v31 }
 0x153   : > { %v1935_v0 = vadd.f32 %v1934_v18, %v1906_v55  ;;  %v1982_v6 = vrot.slane %v1980_v5, 7  ;;  %2428 = vst [vmem:[#allocation3 + $0xc] sm:$0xf] %v2420_v48  ;;  %v1880_v18 = vadd.f32 %v1879_v32, %v1851_v12  ;;  %v4587_v17 = vrot.slane %v2339_v33, 9  ;;  %v2436_v29 = vld [vmem:[#allocation4 + $0x8] sm:$0xf]  ;;  %v1939_v5 = vpop.f32.mrf.mxu0 }
 0x154   : > { %v2378_v3 = vrot.slane %v2340_v60, 5  ;;  %v2226_v19 = vrot.slane %v2224_v47, 4  ;;  %v2229_v15 = vrot.slane %v2227_v51, 5  ;;  %v2196_v52 = vld [vmem:[#allocation4 + $0xc] sm:$0x1]  ;;  %v2453_v9 = vshrl.u32 %v2436_v29, 16 }
 0x155   : > { %v1950_v39 = vmax.f32 %v1935_v0, 0.0  ;;  %v1985_v26 = vor.u32 %v1983_v50, %v1982_v6  ;;  %v1986_v46 = vrot.slane %v1982_v6, 4  ;;  %v4612_v32 = vld [vmem:[#allocation3] sm:$0xf]  ;;  %v2437_v16 = vld [vmem:[#allocation4 + $0xc] sm:$0x1]  ;;  %v1798_v55 = vadd.f32 %v5983_v57, %v1769_v43  ;;  %v1855_v57 = vpop.f32.mrf.mxu1 }
 0x156   : > { %v6150_v53 = vld [vmem:[#allocation4 + $0x8] sm:$0xe]  ;;  %v2379_v27 = vsel %vm6055_vm8, %v4587_v17, %v2378_v3  ;;  %v2068_v21 = vld [vmem:[#allocation4 + $0x20] sm:$0xf]  ;;  %v2230_v8 = vor.u32 %v2229_v15, %v2226_v19  ;;  %v2233_v2 = vshll.u32 %v2196_v52, 16  ;;  %v5232_v0 = vld [vmem:[%s6677_s3 + $0x138] sm:$0xff]  ;;  %v1771_v33 = vadd.f32 %v5956_v36, %v1742_v41 }
 0x157   : > { %v1958_v59 = vpack.c.bf16 %v1950_v39, %v1950_v39  ;;  %v2063_v54 = vsel %vm6096_vm13, %v1985_v26, %v2062_v23  ;;  %v2066_v7 = vsel %vm6104_vm14, %v1986_v46, %v2065_v13  ;;  %v2456_v4 = vshll.u32 %v2436_v29, 16  ;;  %v2071_v6 = vld [vmem:[#allocation4 + $0x24] sm:$0x1]  ;;  %2413 = vst [vmem:[#allocation3 + $0x2c] sm:$0xf] %v2379_v27  ;;  %3821 = vmatpush.bf16.msrb.mxu2 %v5232_v0  ;;  %v5231_v36 = vld [vmem:[%s6677_s3 + $0x130] sm:$0xff]  ;;  %v1884_v46 = vpop.f32.mrf.mxu2 }
 0x158   : > { %v1908_v42 = vpop.f32.mrf.mxu3  ;;  %2064 = vst [vmem:[#allocation4 + $0x18] sm:$0xf] %v2063_v54  ;;  %v2462_v14 = vshll.u32 %v2437_v16, 16  ;;  %v6160_v35 = vld [vmem:[#allocation4 + $0xc] sm:$0x1]  ;;  %v6162_v20 = vrot.slane %v2453_v9, 4  ;;  %v1827_v15 = vadd.f32 %v5952_v34, %v1798_v55 }
 0x159   : > { %v1909_v63 = vadd.f32 %v1908_v42, %v1880_v18  ;;  %v1988_v62 = vshrl.u32 %v1958_v59, 16  ;;  %v1991_v44 = vshll.u32 %v1958_v59, 16  ;;  %2067 = vst [vmem:[#allocation4 + $0x1c] sm:$0x1] %v2066_v7  ;;  %v5161_v47 = vld [vmem:[#allocation3 + $0x20] sm:$0xf0]  ;;  %v1800_v42 = vadd.f32 %v6013_v30, %v1771_v33 }
 0x15a   : > { %v4613_v50 = vor.u32 %v5161_v47, %v4612_v32  ;;  %v2421_v48 = vld [vmem:[#allocation4 + $0x10] sm:$0xf]  ;;  %v4594_v12 = vrot.slane %v6150_v53, 9  ;;  %v2231_v26 = vrot.slane %v2230_v8, 4  ;;  %v4620_v13 = vld [vmem:[#allocation3 + $0x8] sm:$0xf]  ;;  %v1856_v34 = vadd.f32 %v1855_v57, %v1827_v15 }
 0x15b   : > { %v1990_v28 = vrot.slane %v1988_v62, 7  ;;  %v1938_v11 = vadd.f32 %v1937_v58, %v1909_v63  ;;  %2429 = vst [vmem:[#allocation3 + $0x30] sm:$0xf] %v2421_v48  ;;  %v2438_v22 = vld [vmem:[#allocation4 + $0x10] sm:$0xf]  ;;  %v2235_v59 = vrot.slane %v2233_v2, 5  ;;  %3822 = vmatpush.bf16.msrb.mxu2 %v5231_v36  ;;  %v1829_v9 = vadd.f32 %v5963_v40, %v1800_v42  ;;  %v1942_v47 = vpop.f32.mrf.mxu0 }
 0x15c   : > { %3713 = vmatmul.bf16.vlgmr.msra.gmra.mxu2 %v4613_v50  ;;  %v6173_v17 = vrot.slane %v2456_v4, 5  ;;  %v2614_v3 = vrot.slane %v6160_v35, 5  ;;  %v6176_v19 = vld [vmem:[#allocation4 + $0x14] sm:$0x1]  ;;  %v6179_v37 = vrot.slane %v2462_v14, 5  ;;  %v5230_v30 = vld [vmem:[%s6677_s3 + $0x128] sm:$0xff]  ;;  %v1885_v27 = vadd.f32 %v1884_v46, %v1856_v34 }
 0x15d   : > { %v1993_v51 = vor.u32 %v1991_v44, %v1990_v28  ;;  %v1994_v39 = vrot.slane %v1990_v28, 4  ;;  %v1951_v58 = vmax.f32 %v1938_v11, 0.0  ;;  %v6181_v29 = vld [vmem:[#allocation4 + $0x10] sm:$0xe]  ;;  %v2236_v54 = vsel %vm5538_vm3, %v2231_v26, %v2235_v59  ;;  %v6188_v31 = vld [vmem:[#allocation4 + $0x14] sm:$0x1]  ;;  %v1857_v57 = vpop.f32.mrf.mxu1 }
 0x15e   : > { %v2467_v63 = vshrl.u32 %v2438_v22, 16  ;;  %v2470_v52 = vshll.u32 %v2438_v22, 16  ;;  %v2179_v7 = vld [vmem:[#allocation4 + $0x10] sm:$0xf]  ;;  %v2476_v32 = vshll.u32 %v6176_v19, 16  ;;  %v4595_v55 = vrot.slane %v6181_v29, 9 }
 0x15f   : > { %v2069_v23 = vsel %vm6096_vm13, %v1993_v51, %v2068_v21  ;;  %v2072_v18 = vsel %vm6104_vm14, %v1994_v39, %v2071_v6  ;;  %v1959_v61 = vpack.c.bf16 %v1951_v58, %v1951_v58  ;;  %v6191_v43 = vld [vmem:[#allocation4 + $0x10] sm:$0xf]  ;;  %v5162_v25 = vld [vmem:[#allocation3 + $0x28] sm:$0xf0]  ;;  %v2074_v44 = vld [vmem:[#allocation4 + $0x28] sm:$0xf]  ;;  %3823 = vmatpush.bf16.msrb.mxu2 %v5230_v30  ;;  %v1886_v46 = vpop.f32.mrf.mxu2  ;;  %v1858_v15 = vadd.f32 %v1857_v57, %v1829_v9 }
 0x160   : > { %v1910_v60 = vpop.f32.mrf.mxu3  ;;  %2070 = vst [vmem:[#allocation4 + $0x20] sm:$0xf] %v2069_v23  ;;  %v2341_v62 = vld [vmem:[#allocation4 + $0x10] sm:$0xe]  ;;  %v2077_v21 = vld [vmem:[#allocation4 + $0x2c] sm:$0x1]  ;;  %v4621_v8 = vor.u32 %v5162_v25, %v4620_v13 }
 0x161   : > { %v1911_v1 = vadd.f32 %v1910_v60, %v1882_v56  ;;  %2073 = vst [vmem:[#allocation4 + $0x24] sm:$0x1] %v2072_v18  ;;  %v1996_v16 = vshrl.u32 %v1959_v61, 16  ;;  %v5158_v2 = vld [vmem:[#allocation3 + $0xc] sm:$0xf]  ;;  %v1999_v11 = vshll.u32 %v1959_v61, 16  ;;  %v1887_v25 = vadd.f32 %v1886_v46, %v1858_v15 }
 0x162   : > { %2330 = vst [vmem:[#allocation3 + $0x28] sm:$0xf] %v2236_v54  ;;  %v2342_v41 = vld [vmem:[#allocation4 + $0x14] sm:$0x1]  ;;  %v4622_v0 = vld [vmem:[#allocation3 + $0x2c] sm:$0xf0]  ;;  %3771 = vmatmul.bf16.vlgmr.msrb.gmra.mxu0 %v4621_v8 }
 0x163   : > { %v1940_v24 = vadd.f32 %v1939_v5, %v1911_v1  ;;  %v1998_v28 = vrot.slane %v1996_v16, 7  ;;  %v2618_v14 = vrot.slane %v6188_v31, 5  ;;  %v4625_v56 = vor.u32 %v5158_v2, %v4622_v0  ;;  %v2180_v6 = vld [vmem:[#allocation4 + $0x18] sm:$0xf]  ;;  %2187 = vst [vmem:[#allocation3 + $0x48] sm:$0xf] %v2179_v7 }
 0x164   : > { %v4588_v50 = vrot.slane %v2341_v62, 9  ;;  %v6196_v33 = vld [vmem:[#allocation4 + $0x14] sm:$0x1]  ;;  %2188 = vst [vmem:[#allocation3 + $0x6c] sm:$0xf] %v2180_v6  ;;  %v2382_v60 = vrot.slane %v2342_v41, 5 }
 0x165   : > { %v1952_v5 = vmax.f32 %v1940_v24, 0.0  ;;  %v2001_v51 = vor.u32 %v1999_v11, %v1998_v28  ;;  %v2002_v39 = vrot.slane %v1998_v28, 4  ;;  %v6198_v48 = vrot.slane %v2467_v63, 4  ;;  %3800 = vmatmul.bf16.vlgmr.msrb.gmra.mxu1 %v4625_v56  ;;  %v5157_v13 = vld [vmem:[#allocation3 + $0x4] sm:$0xf]  ;;  %v6450_v29 = vld [vmem:[%s6677_s3 + $0x228] sm:$0xff] }
 0x166   : > { %v6200_v1 = vrot.slane %v2470_v52, 5  ;;  %v2694_v36 = vshrl.u32 %v6191_v43, 16  ;;  %v2697_v22 = vshll.u32 %v6191_v43, 16  ;;  %v2343_v59 = vld [vmem:[#allocation4 + $0x18] sm:$0xe]  ;;  %v2703_v42 = vshll.u32 %v6196_v33, 16 }
 0x167   : > { %v1960_v58 = vpack.c.bf16 %v1952_v5, %v1952_v5  ;;  %v2075_v23 = vsel %vm6096_vm13, %v2001_v51, %v2074_v44  ;;  %v2078_v18 = vsel %vm6104_vm14, %v2002_v39, %v2077_v21  ;;  %v2080_v24 = vld [vmem:[#allocation4 + $0x30] sm:$0xf]  ;;  %v2083_v54 = vld [vmem:[#allocation4 + $0x34] sm:$0x1]  ;;  %v2344_v63 = vld [vmem:[#allocation4 + $0x1c] sm:$0x1]  ;;  %v2383_v16 = vsel %vm6055_vm8, %v4588_v50, %v2382_v60  ;;  %v1944_v51 = vpop.f32.mrf.mxu0 }
 0x168   : > { %v1913_v4 = vpop.f32.mrf.mxu3  ;;  %2076 = vst [vmem:[#allocation4 + $0x28] sm:$0xf] %v2075_v23  ;;  %v6211_v62 = vld [vmem:[#allocation4 + $0x20] sm:$0xf]  ;;  %v4589_v21 = vrot.slane %v2343_v59, 9  ;;  %v2386_v11 = vrot.slane %v2344_v63, 5  ;;  %v2619_v53 = vsel %vm6055_vm8, %v4595_v55, %v2618_v14 }
 0x169   : > { %v1914_v40 = vadd.f32 %v1913_v4, %v1885_v27  ;;  %v2004_v61 = vshrl.u32 %v1960_v58, 16  ;;  %2079 = vst [vmem:[#allocation4 + $0x2c] sm:$0x1] %v2078_v18  ;;  %v2007_v34 = vshll.u32 %v1960_v58, 16  ;;  %v4614_v7 = vld [vmem:[#allocation3 + $0x24] sm:$0xf0] }
 0x16a   : > { %v4617_v27 = vor.u32 %v5157_v13, %v4614_v7  ;;  %2414 = vst [vmem:[#allocation3 + $0x50] sm:$0xf] %v2383_v16  ;;  %v2422_v9 = vld [vmem:[#allocation4 + $0x18] sm:$0xf]  ;;  %v5229_v8 = vld [vmem:[%s6677_s3 + $0x120] sm:$0xff]  ;;  %v6218_v0 = vrot.slane %v2476_v32, 5 }
 0x16b   : > { %v1943_v26 = vadd.f32 %v1942_v47, %v1914_v40  ;;  %v2006_v52 = vrot.slane %v2004_v61, 7  ;;  %v4648_v28 = vld [vmem:[#allocation3 + $0x48] sm:$0xf]  ;;  %v2423_v47 = vld [vmem:[#allocation4 + $0x20] sm:$0xf]  ;;  %3824 = vmatpush.bf16.msrb.mxu2 %v5229_v8  ;;  %v6220_v6 = vrot.slane %v2694_v36, 4 }
 0x16c   : > { %3742 = vmatmul.bf16.vlgmr.msrb.gmra.mxu3 %v4617_v27  ;;  %v5170_v56 = vld [vmem:[#allocation3 + $0x68] sm:$0xf0]  ;;  %2430 = vst [vmem:[#allocation3 + $0x54] sm:$0xf] %v2422_v9  ;;  %v2197_v19 = vld [vmem:[#allocation4 + $0x10] sm:$0xf] }
 0x16d   : > { %v1953_v30 = vmax.f32 %v1943_v26, 0.0  ;;  %v2009_v2 = vor.u32 %v2007_v34, %v2006_v52  ;;  %v2010_v41 = vrot.slane %v2006_v52, 4  ;;  %v4649_v39 = vor.u32 %v5170_v56, %v4648_v28  ;;  %2431 = vst [vmem:[#allocation3 + $0x78] sm:$0xf] %v2423_v47  ;;  %v2086_v60 = vld [vmem:[#allocation4 + $0x38] sm:$0xf] }
 0x16e   : > { %v2387_v26 = vsel %vm6055_vm8, %v4589_v21, %v2386_v11  ;;  %v2722_v36 = vshrl.u32 %v6211_v62, 16  ;;  %v2089_v23 = vld [vmem:[#allocation4 + $0x3c] sm:$0x1]  ;;  %v2238_v18 = vshrl.u32 %v2197_v19, 16  ;;  %v2198_v15 = vld [vmem:[#allocation4 + $0x14] sm:$0x1] }
 0x16f   : > { %v1961_v44 = vpack.c.bf16 %v1953_v30, %v1953_v30  ;;  %v2081_v50 = vsel %vm6096_vm13, %v2009_v2, %v2080_v24  ;;  %v2084_v57 = vsel %vm6104_vm14, %v2010_v41, %v2083_v54  ;;  %3718 = vmatmul.bf16.gmra.mxu2 %v4649_v39  ;;  %v6229_v61 = vld [vmem:[#allocation4 + $0x28] sm:$0xf]  ;;  %v5228_v24 = vld [vmem:[%s6677_s3 + $0x118] sm:$0xff]  ;;  %v2725_v54 = vshll.u32 %v6211_v62, 16  ;;  %2415 = vst [vmem:[#allocation3 + $0x74] sm:$0xf] %v2387_v26 }
 0x170   : > { %v1915_v5 = vpop.f32.mrf.mxu3  ;;  %2082 = vst [vmem:[#allocation4 + $0x30] sm:$0xf] %v2081_v50  ;;  %v2199_v63 = vld [vmem:[#allocation4 + $0x18] sm:$0xf]  ;;  %v2200_v7 = vld [vmem:[#allocation4 + $0x1c] sm:$0x1]  ;;  %3825 = vmatpush.bf16.msrb.mxu2 %v5228_v24 }
 0x171   : > { %v2012_v4 = vshrl.u32 %v1961_v44, 16  ;;  %v1916_v40 = vadd.f32 %v1915_v5, %v1887_v25  ;;  %v2015_v58 = vshll.u32 %v1961_v44, 16  ;;  %2085 = vst [vmem:[#allocation4 + $0x34] sm:$0x1] %v2084_v57  ;;  %v2181_v16 = vld [vmem:[#allocation4 + $0x20] sm:$0xf] }
 0x172   : > { %v2182_v25 = vld [vmem:[#allocation4 + $0x28] sm:$0xf]  ;;  %v2736_v27 = vshrl.u32 %v6229_v61, 16  ;;  %v2240_v9 = vrot.slane %v2238_v18, 4  ;;  %v2241_v2 = vshll.u32 %v2197_v19, 16  ;;  %v2247_v41 = vshll.u32 %v2198_v15, 16 }
 0x173   : > { %v2014_v32 = vrot.slane %v2012_v4, 7  ;;  %v1945_v46 = vadd.f32 %v1944_v51, %v1916_v40  ;;  %v5167_v21 = vld [vmem:[#allocation3 + $0x54] sm:$0xf]  ;;  %v2739_v28 = vshll.u32 %v6229_v61, 16  ;;  %v2252_v47 = vshrl.u32 %v2199_v63, 16  ;;  %v5240_v4 = vld [vmem:[%s6677_s3 + $0x178] sm:$0xff] }
 0x174   : > { %v4658_v8 = vld [vmem:[#allocation3 + $0x74] sm:$0xf0]  ;;  %2189 = vst [vmem:[#allocation3 + $0x90] sm:$0xf] %v2181_v16  ;;  %v4656_v56 = vld [vmem:[#allocation3 + $0x50] sm:$0xf]  ;;  %3850 = vmatpush.bf16.msra.mxu3 %v5240_v4 }
 0x175   : > { %v2017_v13 = vor.u32 %v2015_v58, %v2014_v32  ;;  %v2018_v59 = vrot.slane %v2014_v32, 4  ;;  %v1954_v30 = vmax.f32 %v1945_v46, 0.0  ;;  %v4661_v5 = vor.u32 %v5167_v21, %v4658_v8  ;;  %v2092_v50 = vld [vmem:[#allocation4 + $0x40] sm:$0xf]  ;;  %v2095_v57 = vld [vmem:[#allocation4 + $0x44] sm:$0x1] }
 0x176   : > { %v2243_v51 = vrot.slane %v2241_v2, 5  ;;  %v2255_v39 = vshll.u32 %v2199_v63, 16  ;;  %v2261_v32 = vshll.u32 %v2200_v7, 16  ;;  %2190 = vst [vmem:[#allocation3 + $0xb4] sm:$0xf] %v2182_v25  ;;  %v2254_v58 = vrot.slane %v2252_v47, 4 }
 0x177   : > { %v2087_v52 = vsel %vm6096_vm13, %v2017_v13, %v2086_v60  ;;  %v2090_v34 = vsel %vm6104_vm14, %v2018_v59, %v2089_v23  ;;  %v1962_v44 = vpack.c.bf16 %v1954_v30, %v1954_v30  ;;  %3805 = vmatmul.bf16.gmra.mxu1 %v4661_v5  ;;  %v2345_v60 = vld [vmem:[#allocation4 + $0x20] sm:$0xe]  ;;  %v2346_v26 = vld [vmem:[#allocation4 + $0x24] sm:$0x1]  ;;  %v5171_v46 = vld [vmem:[#allocation3 + $0x70] sm:$0xf0] }
 0x178   : > { %2088 = vst [vmem:[#allocation4 + $0x38] sm:$0xf] %v2087_v52  ;;  %v2244_v23 = vor.u32 %v2243_v51, %v2240_v9  ;;  %v2249_v18 = vrot.slane %v2247_v41, 5  ;;  %v2257_v13 = vrot.slane %v2255_v39, 5  ;;  %v2347_v59 = vld [vmem:[#allocation4 + $0x28] sm:$0xe]  ;;  %v4657_v15 = vor.u32 %v5171_v46, %v4656_v56 }
 0x179   : > { %2091 = vst [vmem:[#allocation4 + $0x3c] sm:$0x1] %v2090_v34  ;;  %v2020_v11 = vshrl.u32 %v1962_v44, 16  ;;  %v2023_v40 = vshll.u32 %v1962_v44, 16  ;;  %v2348_v52 = vld [vmem:[#allocation4 + $0x2c] sm:$0x1] }
 0x17a   : > { %v4590_v34 = vrot.slane %v2345_v60, 9  ;;  %v5248_v63 = vld [vmem:[%s6677_s3 + $0x1b8] sm:$0xff]  ;;  %v5227_v7 = vld [vmem:[%s6677_s3 + $0x110] sm:$0xff]  ;;  %v2245_v16 = vrot.slane %v2244_v23, 4  ;;  %v2258_v25 = vor.u32 %v2257_v13, %v2254_v58  ;;  %v2390_v44 = vrot.slane %v2346_v26, 5  ;;  %3776 = vmatmul.bf16.gmra.mxu0 %v4657_v15  ;;  %v5226_v62 = vld [vmem:[%s6677_s3 + $0x108] sm:$0xff] }
 0x17b   : > { %v2022_v19 = vrot.slane %v2020_v11, 7  ;;  %v4591_v21 = vrot.slane %v2347_v59, 9  ;;  %v2424_v9 = vld [vmem:[#allocation4 + $0x28] sm:$0xf]  ;;  %v5239_v8 = vld [vmem:[%s6677_s3 + $0x170] sm:$0xff]  ;;  %v2263_v11 = vrot.slane %v2261_v32, 5  ;;  %3826 = vmatpush.bf16.msrb.mxu2 %v5227_v7  ;;  %3879 = vmatpush.bf16.msra.mxu0 %v5248_v63 }
 0x17c   : > { %v2394_v5 = vrot.slane %v2348_v52, 5  ;;  %2432 = vst [vmem:[#allocation3 + $0x9c] sm:$0xf] %v2424_v9  ;;  %v5247_v47 = vld [vmem:[%s6677_s3 + $0x1b0] sm:$0xff]  ;;  %v2250_v4 = vsel %vm5538_vm3, %v2245_v16, %v2249_v18  ;;  %v2259_v56 = vrot.slane %v2258_v25, 4  ;;  %3851 = vmatpush.bf16.msra.mxu3 %v5239_v8  ;;  %v6286_v7 = vrot.slane %v2697_v22, 5 }
 0x17d   : > { %v2025_v24 = vor.u32 %v2023_v40, %v2022_v19  ;;  %v2026_v30 = vrot.slane %v2022_v19, 4  ;;  %v4684_v40 = vld [vmem:[#allocation3 + $0x90] sm:$0xf]  ;;  %v2201_v39 = vld [vmem:[#allocation4 + $0x20] sm:$0xf]  ;;  %v6290_v16 = vrot.slane %v2703_v42, 5 }
 0x17e   : > { %v6267_v45 = vld [vmem:[#allocation4 + $0x10] sm:$0xe]  ;;  %v2264_v32 = vsel %vm5538_vm3, %v2259_v56, %v2263_v11  ;;  %2331 = vst [vmem:[#allocation3 + $0x4c] sm:$0xf] %v2250_v4  ;;  %v2395_v58 = vsel %vm6055_vm8, %v4591_v21, %v2394_v5  ;;  %v2202_v60 = vld [vmem:[#allocation4 + $0x24] sm:$0x1] }
 0x17f   : > { %v2093_v2 = vsel %vm6096_vm13, %v2025_v24, %v2092_v50  ;;  %v2096_v41 = vsel %vm6104_vm14, %v2026_v30, %v2095_v57  ;;  %v5179_v50 = vld [vmem:[#allocation3 + $0xb0] sm:$0xf0]  ;;  %v2391_v57 = vsel %vm6055_vm8, %v4590_v34, %v2390_v44  ;;  %v2425_v51 = vld [vmem:[#allocation4 + $0x30] sm:$0xf]  ;;  %v2203_v26 = vld [vmem:[#allocation4 + $0x28] sm:$0xf]  ;;  %3880 = vmatpush.bf16.msra.mxu0 %v5247_v47  ;;  %3827 = vmatpush.bf16.msrb.mxu2 %v5226_v62 }
 0x180   : > { %2094 = vst [vmem:[#allocation4 + $0x40] sm:$0xf] %v2093_v2  ;;  %v4685_v19 = vor.u32 %v5179_v50, %v4684_v40  ;;  %v2204_v46 = vld [vmem:[#allocation4 + $0x2c] sm:$0x1]  ;;  %v2266_v23 = vshrl.u32 %v2201_v39, 16  ;;  %v2269_v18 = vshll.u32 %v2201_v39, 16 }
 0x181   : > { %2097 = vst [vmem:[#allocation4 + $0x44] sm:$0x1] %v2096_v41  ;;  %v2275_v13 = vshll.u32 %v2202_v60, 16  ;;  %v2280_v59 = vshrl.u32 %v2203_v26, 16  ;;  %v2283_v15 = vshll.u32 %v2203_v26, 16  ;;  %v2289_v24 = vshll.u32 %v2204_v46, 16 }
 0x182   : > { %2332 = vst [vmem:[#allocation3 + $0x70] sm:$0xf] %v2264_v32  ;;  %3723 = vmatmul.bf16.gmra.mxu2 %v4685_v19  ;;  %v2268_v30 = vrot.slane %v2266_v23, 4  ;;  %v2271_v52 = vrot.slane %v2269_v18, 5  ;;  %v5246_v34 = vld [vmem:[%s6677_s3 + $0x1a8] sm:$0xff]  ;;  %v6282_v63 = vld [vmem:[%s6677_s3 + $0x1f0] sm:$0xff] }
 0x183   : > { %2416 = vst [vmem:[#allocation3 + $0x98] sm:$0xf] %v2391_v57  ;;  %v4602_v25 = vrot.slane %v6267_v45, 9  ;;  %v2282_v44 = vrot.slane %v2280_v59, 4  ;;  %v6295_v21 = vrot.slane %v2722_v36, 4  ;;  %v6299_v9 = vrot.slane %v2725_v54, 5  ;;  %5274 = vmatpush.bf16.msra.mxu1 %v6282_v63  ;;  %3881 = vmatpush.bf16.msra.mxu0 %v5246_v34 }
 0x184   : > { %2417 = vst [vmem:[#allocation3 + $0xbc] sm:$0xf] %v2395_v58  ;;  %v2272_v8 = vor.u32 %v2271_v52, %v2268_v30  ;;  %v2285_v43 = vrot.slane %v2283_v15, 5  ;;  %v2183_v22 = vld [vmem:[#allocation4 + $0x30] sm:$0xf]  ;;  %v6304_v33 = vrot.slane %v2736_v27, 4 }
 0x185   : > { %2433 = vst [vmem:[#allocation3 + $0xc0] sm:$0xf] %v2425_v51  ;;  %v6308_v42 = vrot.slane %v2739_v28, 5  ;;  %v2277_v2 = vrot.slane %v2275_v13, 5  ;;  %v2184_v36 = vld [vmem:[#allocation4 + $0x38] sm:$0xf]  ;;  %v2459_v28 = vor.u32 %v6173_v17, %v6162_v20 }
 0x186   : > { %v5166_v54 = vld [vmem:[#allocation3 + $0x4c] sm:$0xf]  ;;  %v2273_v41 = vrot.slane %v2272_v8, 4  ;;  %v2286_v11 = vor.u32 %v2285_v43, %v2282_v44  ;;  %v2291_v5 = vrot.slane %v2289_v24, 5  ;;  %2191 = vst [vmem:[#allocation3 + $0xd8] sm:$0xf] %v2183_v22 }
 0x187   : > { %2192 = vst [vmem:[#allocation3 + $0xfc] sm:$0xf] %v2184_v36  ;;  %v5238_v61 = vld [vmem:[%s6677_s3 + $0x168] sm:$0xff]  ;;  %v5245_v27 = vld [vmem:[%s6677_s3 + $0x1a0] sm:$0xff]  ;;  %v5176_v40 = vld [vmem:[#allocation3 + $0x9c] sm:$0xf] }
 0x188   : > { %v2278_v50 = vsel %vm5538_vm3, %v2273_v41, %v2277_v2  ;;  %v2287_v57 = vrot.slane %v2286_v11, 4  ;;  %v6326_v51 = vld [vmem:[%s6677_s3 + $0x1e8] sm:$0xff]  ;;  %v2349_v39 = vld [vmem:[#allocation4 + $0x30] sm:$0xe]  ;;  %3852 = vmatpush.bf16.msra.mxu3 %v5238_v61  ;;  %3882 = vmatpush.bf16.msra.mxu0 %v5245_v27  ;;  %v2350_v19 = vld [vmem:[#allocation4 + $0x34] sm:$0x1] }
 0x189   : > { %v4650_v47 = vld [vmem:[#allocation3 + $0x6c] sm:$0xf0]  ;;  %2333 = vst [vmem:[#allocation3 + $0x94] sm:$0xf] %v2278_v50  ;;  %5275 = vmatpush.bf16.msra.mxu1 %v6326_v51  ;;  %v2351_v60 = vld [vmem:[#allocation4 + $0x38] sm:$0xe] }
 0x18a   : > { %v4653_v4 = vor.u32 %v5166_v54, %v4650_v47  ;;  %v4692_v56 = vld [vmem:[#allocation3 + $0x98] sm:$0xf]  ;;  %v2292_v58 = vsel %vm5538_vm3, %v2287_v57, %v2291_v5  ;;  %v2352_v26 = vld [vmem:[#allocation4 + $0x3c] sm:$0x1]  ;;  %v4592_v23 = vrot.slane %v2349_v39, 9  ;;  %v2398_v18 = vrot.slane %v2350_v19, 5 }
 0x18b   : > { %v5180_v32 = vld [vmem:[#allocation3 + $0xb8] sm:$0xf0]  ;;  %2334 = vst [vmem:[#allocation3 + $0xb8] sm:$0xf] %v2292_v58  ;;  %v4593_v13 = vrot.slane %v2351_v60, 9  ;;  %v2402_v24 = vrot.slane %v2352_v26, 5  ;;  %v2728_v39 = vor.u32 %v6299_v9, %v6295_v21  ;;  %v2742_v58 = vor.u32 %v6308_v42, %v6304_v33 }
 0x18c   : > { %3747 = vmatmul.bf16.gmra.mxu3 %v4653_v4  ;;  %v4693_v20 = vor.u32 %v5180_v32, %v4692_v56  ;;  %v4694_v17 = vld [vmem:[#allocation3 + $0xbc] sm:$0xf0]  ;;  %v5244_v59 = vld [vmem:[%s6677_s3 + $0x198] sm:$0xff]  ;;  %v2682_v15 = vld [vmem:[#allocation4 + $0x24] sm:$0x1]  ;;  %v2460_v44 = vrot.slane %v2459_v28, 4  ;;  %v2399_v43 = vsel %vm6055_vm8, %v4592_v23, %v2398_v18  ;;  %v2473_v28 = vor.u32 %v6200_v1, %v6198_v48 }
 0x18d   : > { %v4697_v46 = vor.u32 %v5176_v40, %v4694_v17  ;;  %v6337_v30 = vld [vmem:[%s6677_s3 + $0x1e0] sm:$0xff]  ;;  %v2426_v34 = vld [vmem:[#allocation4 + $0x38] sm:$0xf]  ;;  %3883 = vmatpush.bf16.msra.mxu0 %v5244_v59  ;;  %v2403_v36 = vsel %vm6055_vm8, %v4593_v13, %v2402_v24  ;;  %2418 = vst [vmem:[#allocation3 + $0xe0] sm:$0xf] %v2399_v43  ;;  %v5243_v54 = vld [vmem:[%s6677_s3 + $0x190] sm:$0xff] }
 0x18e   : > { %3781 = vmatmul.bf16.gmra.mxu0 %v4693_v20  ;;  %v5237_v52 = vld [vmem:[%s6677_s3 + $0x160] sm:$0xff]  ;;  %v4720_v8 = vld [vmem:[#allocation3 + $0xd8] sm:$0xf]  ;;  %2434 = vst [vmem:[#allocation3 + $0xe4] sm:$0xf] %v2426_v34  ;;  %5276 = vmatpush.bf16.msra.mxu1 %v6337_v30  ;;  %v2731_v4 = vshll.u32 %v2682_v15, 16  ;;  %v2465_v1 = vsel %vm5538_vm3, %v2460_v44, %v6179_v37 }
 0x18f   : > { %3810 = vmatmul.bf16.gmra.mxu1 %v4697_v46  ;;  %v2427_v22 = vld [vmem:[#allocation4 + $0x40] sm:$0xf]  ;;  %v5188_v2 = vld [vmem:[#allocation3 + $0xf8] sm:$0xf0]  ;;  %3853 = vmatpush.bf16.msra.mxu3 %v5237_v52  ;;  %2419 = vst [vmem:[#allocation3 + $0x104] sm:$0xf] %v2403_v36 }
 0x190   : > { %v5225_v62 = vld [vmem:[%s6677_s3 + $0x100] sm:$0xff]  ;;  %v4721_v41 = vor.u32 %v5188_v2, %v4720_v8  ;;  %v2205_v11 = vld [vmem:[#allocation4 + $0x30] sm:$0xf]  ;;  %v2206_v5 = vld [vmem:[#allocation4 + $0x34] sm:$0x1]  ;;  %v2474_v42 = vrot.slane %v2473_v28, 4 }
 0x191   : > { %v6353_v47 = vld [vmem:[#allocation4 + $0x14] sm:$0x1]  ;;  %v2684_v61 = vld [vmem:[#allocation4 + $0x2c] sm:$0x1]  ;;  %2435 = vst [vmem:[#allocation3 + $0x108] sm:$0xf] %v2427_v22  ;;  %3828 = vmatpush.bf16.msrb.mxu2 %v5225_v62  ;;  %3884 = vmatpush.bf16.msra.mxu0 %v5243_v54 }
 0x192   : > { %v2207_v27 = vld [vmem:[#allocation4 + $0x38] sm:$0xf]  ;;  %3728 = vmatmul.bf16.gmra.mxu2 %v4721_v41  ;;  %v2208_v56 = vld [vmem:[#allocation4 + $0x3c] sm:$0x1]  ;;  %v2294_v40 = vshrl.u32 %v2205_v11, 16  ;;  %v2297_v50 = vshll.u32 %v2205_v11, 16  ;;  %v2479_v62 = vsel %vm5538_vm3, %v2474_v42, %v6218_v0 }
 0x193   : > { %v2308_v57 = vshrl.u32 %v2207_v27, 16  ;;  %v4686_v32 = vld [vmem:[#allocation3 + $0xb4] sm:$0xf0]  ;;  %v2303_v19 = vshll.u32 %v2206_v5, 16  ;;  %v2311_v20 = vshll.u32 %v2207_v27, 16  ;;  %v2745_v21 = vshll.u32 %v2684_v61, 16 }
 0x194   : > { %v6362_v17 = vld [vmem:[%s6677_s3 + $0x1d8] sm:$0xff]  ;;  %v5175_v9 = vld [vmem:[#allocation3 + $0x94] sm:$0xf]  ;;  %v2296_v60 = vrot.slane %v2294_v40, 4  ;;  %v2299_v26 = vrot.slane %v2297_v50, 5  ;;  %v5242_v46 = vld [vmem:[%s6677_s3 + $0x188] sm:$0xff] }
 0x195   : > { %v5236_v48 = vld [vmem:[%s6677_s3 + $0x158] sm:$0xff]  ;;  %v2310_v23 = vrot.slane %v2308_v57, 4  ;;  %v2313_v18 = vrot.slane %v2311_v20, 5  ;;  %v2317_v13 = vshll.u32 %v2208_v56, 16  ;;  %5277 = vmatpush.bf16.msra.mxu1 %v6362_v17  ;;  %v6379_v37 = vld [vmem:[%s6677_s3 + $0x1d0] sm:$0xff]  ;;  %v2855_v59 = vrot.slane %v6353_v47, 5  ;;  %3885 = vmatpush.bf16.msra.mxu0 %v5242_v46 }
 0x196   : > { %3854 = vmatpush.bf16.msra.mxu3 %v5236_v48  ;;  %v5235_v33 = vld [vmem:[%s6677_s3 + $0x150] sm:$0xff]  ;;  %v2733_v15 = vrot.slane %v2731_v4, 5  ;;  %v4689_v24 = vor.u32 %v5175_v9, %v4686_v32  ;;  %v2300_v52 = vor.u32 %v2299_v26, %v2296_v60  ;;  %2572 = vst [vmem:[#allocation3 + $0x10] sm:$0xf] %v2465_v1  ;;  %v5241_v34 = vld [vmem:[%s6677_s3 + $0x180] sm:$0xff]  ;;  %v6391_v44 = vld [vmem:[%s6677_s3 + $0x238] sm:$0xff] }
 0x197   : > { %v4728_v8 = vld [vmem:[#allocation3 + $0xe0] sm:$0xf]  ;;  %v5189_v43 = vld [vmem:[#allocation3 + $0x100] sm:$0xf0]  ;;  %v2305_v2 = vrot.slane %v2303_v19, 5  ;;  %v2314_v36 = vor.u32 %v2313_v18, %v2310_v23  ;;  %v2729_v54 = vrot.slane %v2728_v39, 4  ;;  %3937 = vmatpush.bf16.msra.mxu2 %v6391_v44 }
 0x198   : > { %v5185_v22 = vld [vmem:[#allocation3 + $0xe4] sm:$0xf]  ;;  %v4730_v41 = vld [vmem:[#allocation3 + $0x104] sm:$0xf0]  ;;  %v2301_v11 = vrot.slane %v2300_v52, 4  ;;  %v2743_v5 = vrot.slane %v2742_v58, 4  ;;  %v4729_v27 = vor.u32 %v5189_v43, %v4728_v8 }
 0x199   : > { %2573 = vst [vmem:[#allocation3 + $0x34] sm:$0xf] %v2479_v62  ;;  %v2747_v61 = vrot.slane %v2745_v21, 5  ;;  %v2315_v28 = vrot.slane %v2314_v36, 4  ;;  %v2319_v4 = vrot.slane %v2317_v13, 5  ;;  %5278 = vmatpush.bf16.msra.mxu1 %v6379_v37  ;;  %v6401_v56 = vld [vmem:[%s6677_s3 + $0x1c8] sm:$0xff]  ;;  %v4733_v40 = vor.u32 %v5185_v22, %v4730_v41  ;;  %3886 = vmatpush.bf16.msra.mxu0 %v5241_v34 }
 0x19a   : > { %3855 = vmatpush.bf16.msra.mxu3 %v5235_v33  ;;  %v2661_v0 = vld [vmem:[#allocation4 + $0x10] sm:$0xf]  ;;  %v2306_v50 = vsel %vm5538_vm3, %v2301_v11, %v2305_v2  ;;  %v5234_v57 = vld [vmem:[%s6677_s3 + $0x148] sm:$0xff]  ;;  %v2662_v39 = vld [vmem:[#allocation4 + $0x18] sm:$0xf]  ;;  %v2734_v48 = vsel %vm5538_vm3, %v2729_v54, %v2733_v15 }
 0x19b   : > { %2669 = vst [vmem:[#allocation3 + $0x18] sm:$0xf] %v2661_v0  ;;  %v6411_v32 = vld [vmem:[%s6677_s3 + $0x230] sm:$0xff]  ;;  %v2320_v19 = vsel %vm5538_vm3, %v2315_v28, %v2319_v4  ;;  %v6418_v20 = vld [vmem:[%s6677_s3 + $0x1c0] sm:$0xff]  ;;  %v2440_v1 = vld [vmem:[#allocation4 + $0x18] sm:$0xf]  ;;  %v2748_v9 = vsel %vm5538_vm3, %v2743_v5, %v2747_v61 }
 0x19c   : > { %3752 = vmatmul.bf16.gmra.mxu3 %v4689_v24  ;;  %2335 = vst [vmem:[#allocation3 + $0xdc] sm:$0xf] %v2306_v50  ;;  %v2441_v58 = vld [vmem:[#allocation4 + $0x1c] sm:$0x1]  ;;  %v6423_v21 = vld [vmem:[#allocation4 + $0x18] sm:$0xf]  ;;  %3938 = vmatpush.bf16.msra.mxu2 %v6411_v32 }
 0x19d   : > { %3908 = vmatpush.bf16.msrb.mxu0 %v6265_v38  ;;  %2336 = vst [vmem:[#allocation3 + $0x100] sm:$0xf] %v2320_v19  ;;  %v2442_v60 = vld [vmem:[#allocation4 + $0x20] sm:$0xf]  ;;  %v2443_v26 = vld [vmem:[#allocation4 + $0x24] sm:$0x1]  ;;  %5279 = vmatpush.bf16.msra.mxu1 %v6401_v56  ;;  %v2615_v38 = vsel %vm6055_vm8, %v4594_v12, %v2614_v3 }
 0x19e   : > { %3786 = vmatmul.bf16.gmra.mxu0 %v4729_v27  ;;  %v4628_v46 = vld [vmem:[#allocation3 + $0x10] sm:$0xf]  ;;  %2670 = vst [vmem:[#allocation3 + $0x3c] sm:$0xf] %v2662_v39  ;;  %v2481_v23 = vshrl.u32 %v2440_v1, 16  ;;  %v2484_v18 = vshll.u32 %v2440_v1, 16  ;;  %3856 = vmatpush.bf16.msra.mxu3 %v5234_v57 }
 0x19f   : > { %v6435_v13 = vld [vmem:[#allocation4 + $0x1c] sm:$0x1]  ;;  %3815 = vmatmul.bf16.gmra.mxu1 %v4733_v40  ;;  %v5233_v33 = vld [vmem:[%s6677_s3 + $0x140] sm:$0xff]  ;;  %2815 = vst [vmem:[#allocation3 + $0x64] sm:$0xf] %v2734_v48  ;;  %v2490_v35 = vshll.u32 %v2441_v58, 16 }
 0x1a0   : > { %v2495_v12 = vshrl.u32 %v2442_v60, 16  ;;  %v2498_v3 = vshll.u32 %v2442_v60, 16  ;;  %v5163_v42 = vld [vmem:[#allocation3 + $0x30] sm:$0xf0]  ;;  %2816 = vst [vmem:[#allocation3 + $0x88] sm:$0xf] %v2748_v9  ;;  %3939 = vmatpush.bf16.msra.mxu2 %v6450_v29 }
 0x1a1   : > { %v2483_v15 = vrot.slane %v2481_v23, 4  ;;  %v2486_v24 = vrot.slane %v2484_v18, 5  ;;  %3909 = vmatpush.bf16.msrb.mxu0 %v6282_v63  ;;  %v4629_v52 = vor.u32 %v5163_v42, %v4628_v46  ;;  %2652 = vst [vmem:[#allocation3 + $0x14] sm:$0xf] %v2615_v38  ;;  %v2504_v43 = vshll.u32 %v2443_v26, 16  ;;  %5280 = vmatpush.bf16.msra.mxu1 %v6418_v20  ;;  %v6464_v5 = vld [vmem:[%s6677_s3 + $0x220] sm:$0xff] }
 0x1a2   : > { %v2497_v34 = vrot.slane %v2495_v12, 4  ;;  %v2500_v8 = vrot.slane %v2498_v3, 5  ;;  %v2708_v31 = vshrl.u32 %v6423_v21, 16  ;;  %v2711_v55 = vshll.u32 %v6423_v21, 16  ;;  %v6454_v14 = vld [vmem:[#allocation4 + $0x18] sm:$0xe]  ;;  %3857 = vmatpush.bf16.msra.mxu3 %v5233_v33 }
 0x1a3   : > { %2653 = vst [vmem:[#allocation3 + $0x38] sm:$0xf] %v2619_v53  ;;  %v2487_v63 = vor.u32 %v2486_v24, %v2483_v15  ;;  %v6457_v22 = vld [vmem:[#allocation4 + $0x1c] sm:$0x1]  ;;  %3829 = vmatmul.bf16.vlgmr.msrb.gmra.mxu2 %v4629_v52  ;;  %v2663_v36 = vld [vmem:[#allocation4 + $0x20] sm:$0xf] }
 0x1a4   : > { %v2501_v2 = vor.u32 %v2500_v8, %v2497_v34  ;;  %v2664_v62 = vld [vmem:[#allocation4 + $0x28] sm:$0xf]  ;;  %v2717_v54 = vshll.u32 %v6435_v13, 16  ;;  %v2492_v11 = vrot.slane %v2490_v35, 5  ;;  %2671 = vst [vmem:[#allocation3 + $0x60] sm:$0xf] %v2663_v36  ;;  %3940 = vmatpush.bf16.msra.mxu2 %v6464_v5 }
 0x1a5   : > { %v2488_v41 = vrot.slane %v2487_v63, 4  ;;  %v4722_v61 = vld [vmem:[#allocation3 + $0xfc] sm:$0xf0]  ;;  %v2506_v28 = vrot.slane %v2504_v43, 5  ;;  %2672 = vst [vmem:[#allocation3 + $0x84] sm:$0xf] %v2664_v62  ;;  %3910 = vmatpush.bf16.msrb.mxu0 %v6326_v51 }
 0x1a6   : > { %5281 = vmatpush.bf16.msrb.mxu3 %v6391_v44  ;;  %v2502_v27 = vrot.slane %v2501_v2, 4  ;;  %v4603_v4 = vrot.slane %v6454_v14, 9  ;;  %v2859_v0 = vrot.slane %v6457_v22, 5  ;;  %v2685_v50 = vld [vmem:[#allocation4 + $0x30] sm:$0xf]  ;;  %v6477_v35 = vrot.slane %v2708_v31, 4 }
 0x1a7   : > { %v2493_v40 = vsel %vm5538_vm3, %v2488_v41, %v2492_v11  ;;  %v2686_v57 = vld [vmem:[#allocation4 + $0x34] sm:$0x1]  ;;  %v5184_v39 = vld [vmem:[#allocation3 + $0xdc] sm:$0xf]  ;;  %v2687_v44 = vld [vmem:[#allocation4 + $0x38] sm:$0xf] }
 0x1a8   : > { %v2507_v19 = vsel %vm5538_vm3, %v2502_v27, %v2506_v28  ;;  %2574 = vst [vmem:[#allocation3 + $0x58] sm:$0xf] %v2493_v40  ;;  %v4725_v48 = vor.u32 %v5184_v39, %v4722_v61  ;;  %v5164_v1 = vld [vmem:[#allocation3 + $0x38] sm:$0xf0]  ;;  %v4636_v51 = vld [vmem:[#allocation3 + $0x18] sm:$0xf] }
 0x1a9   : > { %2575 = vst [vmem:[#allocation3 + $0x7c] sm:$0xf] %v2507_v19  ;;  %v2688_v58 = vld [vmem:[#allocation4 + $0x3c] sm:$0x1]  ;;  %v4674_v9 = vld [vmem:[#allocation3 + $0x84] sm:$0xf0]  ;;  %3911 = vmatpush.bf16.msrb.mxu0 %v6337_v30 }
 0x1aa   : > { %5282 = vmatpush.bf16.msrb.mxu3 %v6411_v32  ;;  %v2750_v60 = vshrl.u32 %v2685_v50, 16  ;;  %v2753_v26 = vshll.u32 %v2685_v50, 16  ;;  %v2759_v46 = vshll.u32 %v2686_v57, 16  ;;  %v2764_v38 = vshrl.u32 %v2687_v44, 16  ;;  %v2584_v33 = vld [vmem:[#allocation4 + $0x18] sm:$0xe] }
 0x1ab   : > { %v2767_v23 = vshll.u32 %v2687_v44, 16  ;;  %v2773_v18 = vshll.u32 %v2688_v58, 16  ;;  %v2585_v53 = vld [vmem:[#allocation4 + $0x1c] sm:$0x1]  ;;  %v5169_v12 = vld [vmem:[#allocation3 + $0x64] sm:$0xf]  ;;  %v4637_v32 = vor.u32 %v5164_v1, %v4636_v51 }
 0x1ac   : > { %v2752_v3 = vrot.slane %v2750_v60, 4  ;;  %v2755_v42 = vrot.slane %v2753_v26, 5  ;;  %v2766_v15 = vrot.slane %v2764_v38, 4  ;;  %3757 = vmatmul.bf16.gmra.mxu3 %v4725_v48  ;;  %v2761_v24 = vrot.slane %v2759_v46, 5  ;;  %v2586_v8 = vld [vmem:[#allocation4 + $0x20] sm:$0xe] }
 0x1ad   : > { %v2769_v52 = vrot.slane %v2767_v23, 5  ;;  %v2775_v34 = vrot.slane %v2773_v18, 5  ;;  %v4677_v43 = vor.u32 %v5169_v12, %v4674_v9  ;;  %v2587_v2 = vld [vmem:[#allocation4 + $0x24] sm:$0x1]  ;;  %v4596_v30 = vrot.slane %v2584_v33, 9  ;;  %3912 = vmatpush.bf16.msrb.mxu0 %v6362_v17  ;;  %v5260_v60 = vld [vmem:[%s6677_s3 + $0x218] sm:$0xff]  ;;  %v6497_v33 = vpop.f32.mrf.mxu1 }
 0x1ae   : > { %v2756_v63 = vor.u32 %v2755_v42, %v2752_v3  ;;  %v2622_v36 = vrot.slane %v2585_v53, 5  ;;  %v2444_v62 = vld [vmem:[#allocation4 + $0x28] sm:$0xf]  ;;  %5283 = vmatpush.bf16.msrb.mxu3 %v6450_v29  ;;  %3887 = vmatmul.bf16.vlgmr.msra.gmra.mxu0 %v4637_v32  ;;  %v4597_v11 = vrot.slane %v2586_v8, 9  ;;  %v2626_v61 = vrot.slane %v2587_v2, 5  ;;  %v5259_v18 = vld [vmem:[%s6677_s3 + $0x210] sm:$0xff] }
 0x1af   : > { %v4664_v31 = vld [vmem:[#allocation3 + $0x58] sm:$0xf]  ;;  %v2770_v41 = vor.u32 %v2769_v52, %v2766_v15  ;;  %v2445_v27 = vld [vmem:[#allocation4 + $0x2c] sm:$0x1]  ;;  %3921 = vmatmul.bf16.vlgmr.msra.gmra.mxu1 %v4677_v43  ;;  %v2446_v57 = vld [vmem:[#allocation4 + $0x30] sm:$0xf]  ;;  %3941 = vmatpush.bf16.msra.mxu2 %v5260_v60 }
 0x1b0   : > { %v5172_v28 = vld [vmem:[#allocation3 + $0x78] sm:$0xf0]  ;;  %v2757_v40 = vrot.slane %v2756_v63, 4  ;;  %v2623_v50 = vsel %vm6055_vm8, %v4596_v30, %v2622_v36  ;;  %v2509_v39 = vshrl.u32 %v2444_v62, 16  ;;  %v2627_v29 = vsel %vm6055_vm8, %v4597_v11, %v2626_v61  ;;  %v2447_v17 = vld [vmem:[#allocation4 + $0x34] sm:$0x1] }
 0x1b1   : > { %v4665_v19 = vor.u32 %v5172_v28, %v4664_v31  ;;  %v2771_v44 = vrot.slane %v2770_v41, 4  ;;  %2654 = vst [vmem:[#allocation3 + $0x5c] sm:$0xf] %v2623_v50  ;;  %v2512_v48 = vshll.u32 %v2444_v62, 16  ;;  %v2518_v51 = vshll.u32 %v2445_v27, 16  ;;  %3913 = vmatpush.bf16.msrb.mxu0 %v6379_v37 }
 0x1b2   : > { %v2762_v1 = vsel %vm5538_vm3, %v2757_v40, %v2761_v24  ;;  %2655 = vst [vmem:[#allocation3 + $0x80] sm:$0xf] %v2627_v29  ;;  %v2511_v58 = vrot.slane %v2509_v39, 4  ;;  %v2523_v9 = vshrl.u32 %v2446_v57, 16  ;;  %5284 = vmatpush.bf16.msrb.mxu3 %v6464_v5  ;;  %v2526_v38 = vshll.u32 %v2446_v57, 16 }
 0x1b3   : > { %v2776_v26 = vsel %vm5538_vm3, %v2771_v44, %v2775_v34  ;;  %2817 = vst [vmem:[#allocation3 + $0xac] sm:$0xf] %v2762_v1  ;;  %v2514_v46 = vrot.slane %v2512_v48, 5  ;;  %v2532_v23 = vshll.u32 %v2447_v17, 16  ;;  %3834 = vmatmul.bf16.gmra.mxu2 %v4665_v19  ;;  %v2520_v53 = vrot.slane %v2518_v51, 5 }
 0x1b4   : > { %2818 = vst [vmem:[#allocation3 + $0xd0] sm:$0xf] %v2776_v26  ;;  %v2525_v12 = vrot.slane %v2523_v9, 4  ;;  %v2665_v5 = vld [vmem:[#allocation4 + $0x30] sm:$0xf]  ;;  %v2528_v37 = vrot.slane %v2526_v38, 5  ;;  %3942 = vmatpush.bf16.msra.mxu2 %v5259_v18 }
 0x1b5   : > { %v2515_v3 = vor.u32 %v2514_v46, %v2511_v58  ;;  %v2534_v42 = vrot.slane %v2532_v23, 5  ;;  %v2666_v15 = vld [vmem:[#allocation4 + $0x38] sm:$0xf]  ;;  %2673 = vst [vmem:[#allocation3 + $0xa8] sm:$0xf] %v2665_v5  ;;  %3914 = vmatpush.bf16.msrb.mxu0 %v6401_v56  ;;  %v6504_v56 = vrot.slane %v2711_v55, 5 }
 0x1b6   : > { %2674 = vst [vmem:[#allocation3 + $0xcc] sm:$0xf] %v2666_v15  ;;  %v2689_v32 = vld [vmem:[#allocation4 + $0x40] sm:$0xf]  ;;  %v2690_v24 = vld [vmem:[#allocation4 + $0x44] sm:$0x1]  ;;  %5285 = vmatpush.bf16.msrb.mxu3 %v5260_v60  ;;  %v2529_v34 = vor.u32 %v2528_v37, %v2525_v12 }
 0x1b7   : > { %v2516_v52 = vrot.slane %v2515_v3, 4  ;;  %v2691_v8 = vld [vmem:[#allocation4 + $0x48] sm:$0xf]  ;;  %v2692_v43 = vld [vmem:[#allocation4 + $0x4c] sm:$0x1]  ;;  %v2778_v63 = vshrl.u32 %v2689_v32, 16 }
 0x1b8   : > { %v4630_v2 = vld [vmem:[#allocation3 + $0x34] sm:$0xf0]  ;;  %v2781_v30 = vshll.u32 %v2689_v32, 16  ;;  %v2787_v36 = vshll.u32 %v2690_v24, 16  ;;  %v2792_v62 = vshrl.u32 %v2691_v8, 16  ;;  %v2795_v31 = vshll.u32 %v2691_v8, 16 }
 0x1b9   : > { %v5159_v41 = vld [vmem:[#allocation3 + $0x14] sm:$0xf]  ;;  %v2521_v11 = vsel %vm5538_vm3, %v2516_v52, %v2520_v53  ;;  %v2530_v61 = vrot.slane %v2529_v34, 4  ;;  %v2780_v27 = vrot.slane %v2778_v63, 4  ;;  %v2801_v28 = vshll.u32 %v2692_v43, 16  ;;  %3915 = vmatpush.bf16.msrb.mxu0 %v6418_v20  ;;  %v6509_v20 = vpop.f32.mrf.mxu1  ;;  %v5258_v12 = vld [vmem:[%s6677_s3 + $0x208] sm:$0xff] }
 0x1ba   : > { %v5173_v40 = vld [vmem:[#allocation3 + $0x80] sm:$0xf0]  ;;  %2576 = vst [vmem:[#allocation3 + $0xa0] sm:$0xf] %v2521_v11  ;;  %v2783_v50 = vrot.slane %v2781_v30, 5  ;;  %5286 = vmatpush.bf16.msrb.mxu3 %v5259_v18  ;;  %v4633_v57 = vor.u32 %v5159_v41, %v4630_v2  ;;  %v2794_v29 = vrot.slane %v2792_v62, 4  ;;  %3943 = vmatpush.bf16.msra.mxu2 %v5258_v12 }
 0x1bb   : > { %v4672_v39 = vld [vmem:[#allocation3 + $0x60] sm:$0xf]  ;;  %v4710_v19 = vld [vmem:[#allocation3 + $0xcc] sm:$0xf0]  ;;  %v2535_v44 = vsel %vm5538_vm3, %v2530_v61, %v2534_v42  ;;  %v2797_v17 = vrot.slane %v2795_v31, 5  ;;  %v2789_v58 = vrot.slane %v2787_v36, 5 }
 0x1bc   : > { %v5178_v48 = vld [vmem:[#allocation3 + $0xac] sm:$0xf]  ;;  %2577 = vst [vmem:[#allocation3 + $0xc4] sm:$0xf] %v2535_v44  ;;  %v2784_v1 = vor.u32 %v2783_v50, %v2780_v27  ;;  %v2588_v21 = vld [vmem:[#allocation4 + $0x28] sm:$0xe]  ;;  %3858 = vmatmul.bf16.vlgmr.msra.gmra.mxu3 %v4633_v57  ;;  %v4673_v55 = vor.u32 %v5173_v40, %v4672_v39  ;;  %v2700_v50 = vor.u32 %v6286_v7, %v6220_v6 }
 0x1bd   : > { %v2798_v51 = vor.u32 %v2797_v17, %v2794_v29  ;;  %v2803_v9 = vrot.slane %v2801_v28, 5  ;;  %v2589_v60 = vld [vmem:[#allocation4 + $0x2c] sm:$0x1]  ;;  %v2590_v26 = vld [vmem:[#allocation4 + $0x30] sm:$0xe]  ;;  %v4713_v46 = vor.u32 %v5178_v48, %v4710_v19  ;;  %v4598_v18 = vrot.slane %v2588_v21, 9 }
 0x1be   : > { %v2785_v38 = vrot.slane %v2784_v1, 4  ;;  %v2591_v23 = vld [vmem:[#allocation4 + $0x34] sm:$0x1]  ;;  %v2630_v53 = vrot.slane %v2589_v60, 5  ;;  %3892 = vmatmul.bf16.gmra.mxu0 %v4673_v55  ;;  %v4599_v3 = vrot.slane %v2590_v26, 9  ;;  %v5257_v15 = vld [vmem:[%s6677_s3 + $0x200] sm:$0xff]  ;;  %5287 = vmatpush.bf16.msrb.mxu3 %v5258_v12  ;;  %v2714_v21 = vor.u32 %v6504_v56, %v6477_v35 }
 0x1bf   : > { %v2799_v5 = vrot.slane %v2798_v51, 4  ;;  %v2634_v37 = vrot.slane %v2591_v23, 5  ;;  %v2448_v42 = vld [vmem:[#allocation4 + $0x38] sm:$0xf]  ;;  %v6517_v32 = vld [vmem:[#allocation4 + $0x40] sm:$0xe]  ;;  %3926 = vmatmul.bf16.gmra.mxu1 %v4713_v46  ;;  %3944 = vmatpush.bf16.msra.mxu2 %v5257_v15  ;;  %v2856_v51 = vsel %vm6055_vm8, %v4602_v25, %v2855_v59 }
 0x1c0   : > { %v2790_v24 = vsel %vm5538_vm3, %v2785_v38, %v2789_v58  ;;  %v2631_v52 = vsel %vm6055_vm8, %v4598_v18, %v2630_v53  ;;  %v2449_v34 = vld [vmem:[#allocation4 + $0x3c] sm:$0x1]  ;;  %v2450_v8 = vld [vmem:[#allocation4 + $0x40] sm:$0xf]  ;;  %v2451_v43 = vld [vmem:[#allocation4 + $0x44] sm:$0x1] }
 0x1c1   : > { %v4700_v63 = vld [vmem:[#allocation3 + $0xa0] sm:$0xf]  ;;  %v2804_v2 = vsel %vm5538_vm3, %v2799_v5, %v2803_v9  ;;  %2819 = vst [vmem:[#allocation3 + $0xf4] sm:$0xf] %v2790_v24  ;;  %v2635_v30 = vsel %vm6055_vm8, %v4599_v3, %v2634_v37  ;;  %v2537_v36 = vshrl.u32 %v2448_v42, 16  ;;  %v2540_v62 = vshll.u32 %v2448_v42, 16  ;;  %v6542_v46 = vpop.f32.mrf.mxu1 }
 0x1c2   : > { %v6529_v31 = vrot.slane %v2717_v54, 5  ;;  %2820 = vst [vmem:[#allocation3 + $0x118] sm:$0xf] %v2804_v2  ;;  %v2546_v41 = vshll.u32 %v2449_v34, 16  ;;  %v2551_v11 = vshrl.u32 %v2450_v8, 16  ;;  %v2554_v61 = vshll.u32 %v2450_v8, 16  ;;  %5288 = vmatpush.bf16.msrb.mxu3 %v5257_v15 }
 0x1c3   : > { %v5181_v27 = vld [vmem:[#allocation3 + $0xc0] sm:$0xf0]  ;;  %2656 = vst [vmem:[#allocation3 + $0xa4] sm:$0xf] %v2631_v52  ;;  %v2539_v28 = vrot.slane %v2537_v36, 4  ;;  %v2542_v40 = vrot.slane %v2540_v62, 5  ;;  %v2860_v52 = vsel %vm6055_vm8, %v4603_v4, %v2859_v0 }
 0x1c4   : > { %v4701_v57 = vor.u32 %v5181_v27, %v4700_v63  ;;  %2657 = vst [vmem:[#allocation3 + $0xc8] sm:$0xf] %v2635_v30  ;;  %v2553_v39 = vrot.slane %v2551_v11, 4  ;;  %v2556_v19 = vrot.slane %v2554_v61, 5  ;;  %v2560_v44 = vshll.u32 %v2451_v43, 16 }
 0x1c5   : > { %v2834_v13 = vld [vmem:[#allocation4 + $0x44] sm:$0x1]  ;;  %v4608_v54 = vrot.slane %v6517_v32, 9  ;;  %v2543_v29 = vor.u32 %v2542_v40, %v2539_v28  ;;  %v2548_v17 = vrot.slane %v2546_v41, 5  ;;  %v2667_v48 = vld [vmem:[#allocation4 + $0x40] sm:$0xf] }
 0x1c6   : > { %v2668_v1 = vld [vmem:[#allocation4 + $0x48] sm:$0xf]  ;;  %v4666_v55 = vld [vmem:[#allocation3 + $0x7c] sm:$0xf0]  ;;  %3839 = vmatmul.bf16.gmra.mxu2 %v4701_v57  ;;  %v2557_v6 = vor.u32 %v2556_v19, %v2553_v39  ;;  %2675 = vst [vmem:[#allocation3 + $0xf0] sm:$0xf] %v2667_v48 }
 0x1c7   : > { %v2592_v7 = vld [vmem:[#allocation4 + $0x38] sm:$0xe]  ;;  %v2593_v58 = vld [vmem:[#allocation4 + $0x3c] sm:$0x1]  ;;  %v2544_v9 = vrot.slane %v2543_v29, 4  ;;  %v2562_v56 = vrot.slane %v2560_v44, 5 }
 0x1c8   : > { %2676 = vst [vmem:[#allocation3 + $0x114] sm:$0xf] %v2668_v1  ;;  %v2594_v60 = vld [vmem:[#allocation4 + $0x40] sm:$0xe]  ;;  %v4600_v26 = vrot.slane %v2592_v7, 9  ;;  %v2558_v35 = vrot.slane %v2557_v6, 4 }
 0x1c9   : > { %v2595_v38 = vld [vmem:[#allocation4 + $0x44] sm:$0x1]  ;;  %v2638_v23 = vrot.slane %v2593_v58, 5  ;;  %v2701_v18 = vrot.slane %v2700_v50, 4  ;;  %v5168_v53 = vld [vmem:[#allocation3 + $0x5c] sm:$0xf]  ;;  %v2549_v47 = vsel %vm5538_vm3, %v2544_v9, %v2548_v17  ;;  %v6566_v11 = vpop.f32.mrf.mxu1 }
 0x1ca   : > { %v4601_v12 = vrot.slane %v2594_v60, 9  ;;  %v2642_v45 = vrot.slane %v2595_v38, 5  ;;  %2893 = vst [vmem:[#allocation3 + $0x20] sm:$0xf] %v2856_v51  ;;  %v2879_v5 = vrot.slane %v2834_v13, 5  ;;  %v2563_v59 = vsel %vm5538_vm3, %v2558_v35, %v2562_v56 }
 0x1cb   : > { %v5182_v25 = vld [vmem:[#allocation3 + $0xc8] sm:$0xf0]  ;;  %2578 = vst [vmem:[#allocation3 + $0xe8] sm:$0xf] %v2549_v47  ;;  %v2639_v3 = vsel %vm6055_vm8, %v4600_v26, %v2638_v23  ;;  %v2715_v37 = vrot.slane %v2714_v21, 4  ;;  %v4669_v42 = vor.u32 %v5168_v53, %v4666_v55  ;;  %v2706_v8 = vsel %vm5538_vm3, %v2701_v18, %v6290_v16 }
 0x1cc   : > { %v5187_v15 = vld [vmem:[#allocation3 + $0xf4] sm:$0xf]  ;;  %v4746_v32 = vld [vmem:[#allocation3 + $0x114] sm:$0xf0]  ;;  %2579 = vst [vmem:[#allocation3 + $0x10c] sm:$0xf] %v2563_v59  ;;  %v2643_v24 = vsel %vm6055_vm8, %v4601_v12, %v2642_v45  ;;  %v2880_v16 = vsel %vm6055_vm8, %v4608_v54, %v2879_v5 }
 0x1cd   : > { %v4708_v34 = vld [vmem:[#allocation3 + $0xa8] sm:$0xf]  ;;  %2658 = vst [vmem:[#allocation3 + $0xec] sm:$0xf] %v2639_v3  ;;  %3863 = vmatmul.bf16.gmra.mxu3 %v4669_v42  ;;  %v2720_v63 = vsel %vm5538_vm3, %v2715_v37, %v6529_v31  ;;  %v2825_v2 = vld [vmem:[#allocation4 + $0x20] sm:$0xe]  ;;  %v4749_v30 = vor.u32 %v5187_v15, %v4746_v32 }
 0x1ce   : > { %v4709_v43 = vor.u32 %v5182_v25, %v4708_v34  ;;  %2659 = vst [vmem:[#allocation3 + $0x110] sm:$0xf] %v2643_v24  ;;  %v2826_v22 = vld [vmem:[#allocation4 + $0x24] sm:$0x1]  ;;  %v2827_v14 = vld [vmem:[#allocation4 + $0x28] sm:$0xe] }
 0x1cf   : > { %2894 = vst [vmem:[#allocation3 + $0x44] sm:$0xf] %v2860_v52  ;;  %v2828_v36 = vld [vmem:[#allocation4 + $0x2c] sm:$0x1]  ;;  %v2835_v4 = vld [vmem:[#allocation4 + $0x48] sm:$0xe]  ;;  %3931 = vmatmul.bf16.gmra.mxu1 %v4749_v30 }
 0x1d0   : > { %3897 = vmatmul.bf16.gmra.mxu0 %v4709_v43  ;;  %2813 = vst [vmem:[#allocation3 + $0x1c] sm:$0xf] %v2706_v8  ;;  %v2836_v0 = vld [vmem:[#allocation4 + $0x4c] sm:$0x1]  ;;  %v4609_v62 = vrot.slane %v2835_v4, 9  ;;  %v4604_v10 = vrot.slane %v2825_v2, 9 }
 0x1d1   : > { %2814 = vst [vmem:[#allocation3 + $0x40] sm:$0xf] %v2720_v63  ;;  %v2883_v41 = vrot.slane %v2836_v0, 5  ;;  %v2863_v31 = vrot.slane %v2826_v22, 5  ;;  %v4605_v40 = vrot.slane %v2827_v14, 9  ;;  %v2867_v50 = vrot.slane %v2828_v36, 5  ;;  %v6578_v26 = vpop.f32.mrf.mxu1 }
 0x1d2   : > { %2899 = vst [vmem:[#allocation3 + $0xf8] sm:$0xf] %v2880_v16  ;;  %v4736_v61 = vld [vmem:[#allocation3 + $0xe8] sm:$0xf]  ;;  %v2829_v39 = vld [vmem:[#allocation4 + $0x30] sm:$0xe] }
 0x1d3   : > { %v5190_v27 = vld [vmem:[#allocation3 + $0x108] sm:$0xf0]  ;;  %v2884_v28 = vsel %vm6055_vm8, %v4609_v62, %v2883_v41  ;;  %v2864_v57 = vsel %vm6055_vm8, %v4604_v10, %v2863_v31  ;;  %v2830_v19 = vld [vmem:[#allocation4 + $0x34] sm:$0x1]  ;;  %v2868_v13 = vsel %vm6055_vm8, %v4605_v40, %v2867_v50  ;;  %v2831_v54 = vld [vmem:[#allocation4 + $0x38] sm:$0xe] }
 0x1d4   : > { %2900 = vst [vmem:[#allocation3 + $0x11c] sm:$0xf] %v2884_v28  ;;  %v4737_v44 = vor.u32 %v5190_v27, %v4736_v61  ;;  %v2832_v29 = vld [vmem:[#allocation4 + $0x3c] sm:$0x1]  ;;  %v4606_v17 = vrot.slane %v2829_v39, 9  ;;  %v2871_v48 = vrot.slane %v2830_v19, 5 }
 0x1d5   : > { %2895 = vst [vmem:[#allocation3 + $0x68] sm:$0xf] %v2864_v57  ;;  %v4607_v1 = vrot.slane %v2831_v54, 9  ;;  %v2875_v21 = vrot.slane %v2832_v29, 5  ;;  %v4702_v55 = vld [vmem:[#allocation3 + $0xc4] sm:$0xf0] }
 0x1d6   : > { %2896 = vst [vmem:[#allocation3 + $0x8c] sm:$0xf] %v2868_v13  ;;  %3844 = vmatmul.bf16.gmra.mxu2 %v4737_v44  ;;  %v2872_v6 = vsel %vm6055_vm8, %v4606_v17, %v2871_v48  ;;  %v5177_v7 = vld [vmem:[#allocation3 + $0xa4] sm:$0xf]  ;;  %v4744_v51 = vld [vmem:[#allocation3 + $0xf0] sm:$0xf] }
 0x1d7   : > { %v2876_v58 = vsel %vm6055_vm8, %v4607_v1, %v2875_v21  ;;  %2897 = vst [vmem:[#allocation3 + $0xb0] sm:$0xf] %v2872_v6  ;;  %v5191_v9 = vld [vmem:[#allocation3 + $0x110] sm:$0xf0]  ;;  %v4705_v60 = vor.u32 %v5177_v7, %v4702_v55  ;;  %v5165_v56 = vld [vmem:[#allocation3 + $0x40] sm:$0xf0] }
 0x1d8   : > { %2898 = vst [vmem:[#allocation3 + $0xd4] sm:$0xf] %v2876_v58  ;;  %v4745_v35 = vor.u32 %v5191_v9, %v4744_v51  ;;  %v4644_v38 = vld [vmem:[#allocation3 + $0x20] sm:$0xf]  ;;  %v4738_v47 = vld [vmem:[#allocation3 + $0x10c] sm:$0xf0] }
 0x1d9   : > { %v4645_v18 = vor.u32 %v5165_v56, %v4644_v38  ;;  %v6580_v53 = vpop.f32.mrf.mxu1  ;;  %v5186_v12 = vld [vmem:[#allocation3 + $0xec] sm:$0xf]  ;;  %v4638_v45 = vld [vmem:[#allocation3 + $0x3c] sm:$0xf0]  ;;  %v5160_v25 = vld [vmem:[#allocation3 + $0x1c] sm:$0xf] }
 0x1da   : > { %v4741_v5 = vor.u32 %v5186_v12, %v4738_v47  ;;  %v4641_v3 = vor.u32 %v5160_v25, %v4638_v45  ;;  %v6585_v37 = vld [vmem:[%s6678_s4] ss:$0 sm:$0xff]  ;;  %v4752_v22 = vld [vmem:[#allocation3 + $0xf8] sm:$0xf] }
 0x1db   : > { %v5192_v30 = vld [vmem:[#allocation3 + $0x118] sm:$0xf0] }
 0x1dc   : > { %v4680_v34 = vld [vmem:[#allocation3 + $0x68] sm:$0xf]  ;;  %v4753_v4 = vor.u32 %v5192_v30, %v4752_v22 }
 0x1dd   : > { %3868 = vmatmul.bf16.gmra.mxu3 %v4705_v60  ;;  %v5174_v15 = vld [vmem:[#allocation3 + $0x88] sm:$0xf0] }
 0x1de   : > { %v4681_v43 = vor.u32 %v5174_v15, %v4680_v34  ;;  %v4716_v61 = vld [vmem:[#allocation3 + $0xb0] sm:$0xf] }
 0x1df   : > { %v3714_v23 = vpop.f32.mrf.mxu2  ;;  %v3772_v49 = vpop.f32.mrf.mxu0  ;;  %v5183_v31 = vld [vmem:[#allocation3 + $0xd0] sm:$0xf0] }
 0x1e0   : > { %3902 = vmatmul.bf16.gmra.mxu0 %v4745_v35  ;;  %v3715_v32 = vadd.f32 %v6585_v37, %v3714_v23  ;;  %v4717_v40 = vor.u32 %v5183_v31, %v4716_v61 }
 0x1e1   : > { %v6587_v42 = vpop.f32.mrf.mxu1 }
 0x1e6   : > { %3945 = vmatmul.bf16.vlgmr.msra.gmra.mxu2 %v4645_v18 }
 0x1e7   : > { %v3716_v59 = vpop.f32.mrf.mxu2  ;;  %v3774_v24 = vpop.f32.mrf.mxu0 }
 0x1e8   : > { %v3717_v36 = vadd.f32 %v6585_v37, %v3716_v59 }
 0x1e9   : > { %v6590_v14 = vpop.f32.mrf.mxu1 }
 0x1ed   : > { %3873 = vmatmul.bf16.gmra.mxu3 %v4741_v5 }
 0x1ef   : > { %v3743_v52 = vpop.f32.mrf.mxu3 }
 0x1f0   : > { %3916 = vmatmul.bf16.vlgmr.msrb.gmra.mxu0 %v4641_v3  ;;  %v3744_v8 = vadd.f32 %v3743_v52, %v3715_v32 }
 0x1f1   : > { %v3801_v27 = vpop.f32.mrf.mxu1 }
 0x1f2   : > { %v3773_v63 = vadd.f32 %v3772_v49, %v3744_v8  ;;  %v3719_v2 = vpop.f32.mrf.mxu2 }
 0x1f3   : > { %v3720_v19 = vadd.f32 %v6585_v37, %v3719_v2 }
 0x1f4   : > { %v3802_v17 = vadd.f32 %v3801_v27, %v3773_v63 }
 0x1f6   : > { %3950 = vmatmul.bf16.gmra.mxu2 %v4681_v43 }
 0x1f7   : > { %v3745_v0 = vpop.f32.mrf.mxu3  ;;  %v3777_v16 = vpop.f32.mrf.mxu0 }
 0x1f8   : > { %v3746_v62 = vadd.f32 %v3745_v0, %v3717_v36 }
 0x1f9   : > { %v3803_v39 = vpop.f32.mrf.mxu1 }
 0x1fa   : > { %v3775_v41 = vadd.f32 %v3774_v24, %v3746_v62  ;;  %v3721_v10 = vpop.f32.mrf.mxu2 }
 0x1fb   : > { %v3722_v1 = vadd.f32 %v6585_v37, %v3721_v10 }
 0x1fc   : > { %v3804_v51 = vadd.f32 %v3803_v39, %v3775_v41 }
 0x1fd   : > { %3960 = vmatmul.bf16.vlgmr.msrb.gmra.mxu3 %v4753_v4 }
 0x1ff   : > { %v3779_v28 = vpop.f32.mrf.mxu0 }
 0x201   : > { %v3806_v55 = vpop.f32.mrf.mxu1 }
 0x205   : > { %v3724_v50 = vpop.f32.mrf.mxu2 }
 0x206   : > { %3955 = vmatmul.bf16.gmra.mxu2 %v4717_v40  ;;  %v3725_v60 = vadd.f32 %v6585_v37, %v3724_v50 }
 0x209   : > { %v3808_v18 = vpop.f32.mrf.mxu1 }
 0x20b   : > { %v3782_v57 = vpop.f32.mrf.mxu0 }
 0x20d   : > { %v3726_v44 = vpop.f32.mrf.mxu2 }
 0x20e   : > { %v3727_v12 = vadd.f32 %v6585_v37, %v3726_v44 }
 0x20f   : > { %v3748_v13 = vpop.f32.mrf.mxu3 }
 0x210   : > { %v3749_v54 = vadd.f32 %v3748_v13, %v3720_v19 }
 0x211   : > { %v3811_v15 = vpop.f32.mrf.mxu1 }
 0x212   : > { %v3778_v29 = vadd.f32 %v3777_v16, %v3749_v54 }
 0x213   : > { %v3784_v48 = vpop.f32.mrf.mxu0 }
 0x214   : > { %v3807_v23 = vadd.f32 %v3806_v55, %v3778_v29 }
 0x215   : > { %v3729_v21 = vpop.f32.mrf.mxu2 }
 0x216   : > { %v3730_v24 = vadd.f32 %v6585_v37, %v3729_v21 }
 0x217   : > { %v3750_v6 = vpop.f32.mrf.mxu3 }
 0x218   : > { %v3751_v7 = vadd.f32 %v3750_v6, %v3722_v1 }
 0x219   : > { %v3813_v22 = vpop.f32.mrf.mxu1 }
 0x21a   : > { %v3780_v58 = vadd.f32 %v3779_v28, %v3751_v7 }
 0x21b   : > { %v3787_v9 = vpop.f32.mrf.mxu0 }
 0x21c   : > { %v6597_v59 = vadd.f32 %v3808_v18, %v3780_v58 }
 0x21d   : > { %v3731_v35 = vpop.f32.mrf.mxu2 }
 0x21e   : > { %v3732_v30 = vadd.f32 %v6585_v37, %v3731_v35  ;;  %v6625_v35 = vld [vmem:[%s6680_s6] ss:$0 sm:$0xff] }
 0x21f   : > { %v3753_v56 = vpop.f32.mrf.mxu3 }
 0x220   : > { %v3754_v38 = vadd.f32 %v3753_v56, %v3725_v60 }
 0x221   : > { %v3816_v31 = vpop.f32.mrf.mxu1 }
 0x222   : > { %v3783_v47 = vadd.f32 %v3782_v57, %v3754_v38 }
 0x223   : > { %v3789_v49 = vpop.f32.mrf.mxu0 }
 0x224   : > { %v6600_v63 = vadd.f32 %v3811_v15, %v3783_v47 }
 0x226   : > { %v3830_v45 = vpop.f32.mrf.mxu2 }
 0x227   : > { %v3755_v5 = vpop.f32.mrf.mxu3  ;;  %v3831_v6 = vadd.f32 %v3830_v45, %v3802_v17  ;;  %v2158_v17 = vadd.f32 %v6625_v35, %v6497_v33 }
 0x228   : > { %v3756_v25 = vadd.f32 %v3755_v5, %v3727_v12 }
 0x229   : > { %v3818_v50 = vpop.f32.mrf.mxu1 }
 0x22a   : > { %v3785_v3 = vadd.f32 %v3784_v48, %v3756_v25 }
 0x22b   : > { %v3888_v32 = vpop.f32.mrf.mxu0 }
 0x22c   : > { %v6605_v62 = vadd.f32 %v3813_v22, %v3785_v3 }
 0x22e   : > { %v3832_v52 = vpop.f32.mrf.mxu2 }
 0x22f   : > { %v3758_v34 = vpop.f32.mrf.mxu3  ;;  %v3833_v18 = vadd.f32 %v3832_v52, %v3804_v51 }
 0x230   : > { %v3759_v8 = vadd.f32 %v3758_v34, %v3730_v24 }
 0x231   : > { %v3922_v19 = vpop.f32.mrf.mxu1 }
 0x232   : > { %v3788_v43 = vadd.f32 %v3787_v9, %v3759_v8 }
 0x233   : > { %v3890_v2 = vpop.f32.mrf.mxu0 }
 0x234   : > { %v3817_v51 = vadd.f32 %v3816_v31, %v3788_v43 }
 0x236   : > { %v3835_v36 = vpop.f32.mrf.mxu2 }
 0x237   : > { %v3760_v4 = vpop.f32.mrf.mxu3 }
 0x238   : > { %v3761_v0 = vadd.f32 %v3760_v4, %v3732_v30  ;;  %v2160_v30 = vadd.f32 %v6625_v35, %v6509_v20 }
 0x239   : > { %v3924_v48 = vpop.f32.mrf.mxu1 }
 0x23a   : > { %v6603_v16 = vadd.f32 %v3789_v49, %v3761_v0  ;;  %v3836_v49 = vadd.f32 %v3835_v36, %v3807_v23 }
 0x23b   : > { %v3893_v41 = vpop.f32.mrf.mxu0 }
 0x23c   : > { %v3819_v31 = vadd.f32 %v3818_v50, %v6603_v16  ;;  %v2173_v16 = vadd.f32 %v6625_v35, %v6587_v42 }
 0x23e   : > { %v3837_v10 = vpop.f32.mrf.mxu2 }
 0x23f   : > { %v3859_v61 = vpop.f32.mrf.mxu3  ;;  %v3838_v22 = vadd.f32 %v3837_v10, %v6597_v59 }
 0x240   : > { %v3860_v7 = vadd.f32 %v3859_v61, %v3831_v6 }
 0x241   : > { %v6618_v58 = vpop.f32.mrf.mxu1 }
 0x242   : > { %v3889_v56 = vadd.f32 %v3888_v32, %v3860_v7 }
 0x243   : > { %v3895_v27 = vpop.f32.mrf.mxu0 }
 0x247   : > { %v3861_v28 = vpop.f32.mrf.mxu3 }
 0x248   : > { %v3862_v12 = vadd.f32 %v3861_v28, %v3833_v18 }
 0x249   : > { %v6607_v40 = vpop.f32.mrf.mxu2  ;;  %v6630_v24 = vpop.f32.mrf.mxu1 }
 0x24a   : > { %v3891_v32 = vadd.f32 %v3890_v2, %v3862_v12  ;;  %v2163_v2 = vadd.f32 %v6625_v35, %v6542_v46 }
 0x24d   : > { %v6609_v57 = vpop.f32.mrf.mxu0 }
 0x250   : > { %v3864_v37 = vpop.f32.mrf.mxu3 }
 0x251   : > { %v6611_v39 = vpop.f32.mrf.mxu2  ;;  %v3865_v5 = vadd.f32 %v3864_v37, %v3836_v49  ;;  %v3932_v6 = vpop.f32.mrf.mxu1 }
 0x253   : > { %v3894_v52 = vadd.f32 %v3893_v41, %v3865_v5 }
 0x255   : > { %v6613_v44 = vpop.f32.mrf.mxu0  ;;  %v3923_v28 = vadd.f32 %v3922_v19, %v3894_v52 }
 0x258   : > { %v3866_v13 = vpop.f32.mrf.mxu3 }
 0x259   : > { %v3845_v54 = vpop.f32.mrf.mxu2  ;;  %v3867_v0 = vadd.f32 %v3866_v13, %v3838_v22  ;;  %v3841_v13 = vadd.f32 %v6607_v40, %v6600_v63 }
 0x25a   : > { %v3846_v34 = vadd.f32 %v3845_v54, %v3817_v51 }
 0x25b   : > { %v3896_v10 = vadd.f32 %v3895_v27, %v3867_v0 }
 0x25d   : > { %v3903_v29 = vpop.f32.mrf.mxu0  ;;  %v3925_v46 = vadd.f32 %v3924_v48, %v3896_v10  ;;  %v3843_v48 = vadd.f32 %v6611_v39, %v6605_v62  ;;  %v2168_v62 = vadd.f32 %v6625_v35, %v6578_v26 }
 0x260   : > { %v3869_v1 = vpop.f32.mrf.mxu3 }
 0x261   : > { %v3847_v21 = vpop.f32.mrf.mxu2 }
 0x262   : > { %v3848_v7 = vadd.f32 %v3847_v21, %v3819_v31 }
 0x265   : > { %v6615_v55 = vpop.f32.mrf.mxu0 }
 0x268   : > { %v6620_v9 = vpop.f32.mrf.mxu3 }
 0x269   : > { %v3946_v60 = vpop.f32.mrf.mxu2 }
 0x26d   : > { %v3917_v38 = vpop.f32.mrf.mxu0 }
 0x26e   : > { %v3918_v47 = vadd.f32 %v3917_v38, %v3889_v56  ;;  %v3870_v38 = vadd.f32 %v3869_v1, %v3841_v13 }
 0x270   : > { %v3947_v45 = vadd.f32 %v3946_v60, %v3918_v47  ;;  %v3874_v25 = vpop.f32.mrf.mxu3  ;;  %v3899_v47 = vadd.f32 %v6609_v57, %v3870_v38  ;;  %v2175_v57 = vadd.f32 %v6625_v35, %v6590_v14  ;;  %v2170_v14 = vadd.f32 %v6625_v35, %v6580_v53 }
 0x271   : > { %v3948_v15 = vpop.f32.mrf.mxu2  ;;  %v3875_v36 = vadd.f32 %v3874_v25, %v3846_v34 }
 0x272   : > { %v3966_v3 = vadd.f32 %v3947_v45, %v2158_v17  ;;  %v3934_v17 = vpop.f32.mrf.mxu1  ;;  %v3872_v45 = vadd.f32 %v6620_v9, %v3843_v48 }
 0x273   : > { %v3904_v54 = vadd.f32 %v3903_v29, %v3875_v36  ;;  %v2165_v29 = vadd.f32 %v6625_v35, %v6566_v11 }
 0x274   : > { %v3974_v23 = vmax.f32 %v3966_v3, 0.0 }
 0x275   : > { %v3919_v33 = vpop.f32.mrf.mxu0  ;;  %v3933_v56 = vadd.f32 %v3932_v6, %v3904_v54 }
 0x276   : > { %3982 = vst [vmem:[%s6635_s20] sm:$0xff] %v3974_v23  ;;  %v3920_v8 = vadd.f32 %v3919_v33, %v3891_v32 }
 0x278   : > { %v3949_v4 = vadd.f32 %v3948_v15, %v3920_v8  ;;  %v3876_v61 = vpop.f32.mrf.mxu3  ;;  %v3901_v15 = vadd.f32 %v6613_v44, %v3872_v45 }
 0x279   : > { %v3951_v43 = vpop.f32.mrf.mxu2  ;;  %v3877_v60 = vadd.f32 %v3876_v61, %v3848_v7 }
 0x27a   : > { %v3967_v37 = vadd.f32 %v3949_v4, %v2160_v30  ;;  %v3952_v41 = vadd.f32 %v3951_v43, %v3923_v28 }
 0x27b   : > { %v3906_v63 = vadd.f32 %v6615_v55, %v3877_v60  ;;  %v3928_v55 = vadd.f32 %v6618_v58, %v3899_v47  ;;  %v3930_v58 = vadd.f32 %v6630_v24, %v3901_v15 }
 0x27c   : > { %v3975_v59 = vmax.f32 %v3967_v37, 0.0  ;;  %v3968_v20 = vadd.f32 %v3952_v41, %v2163_v2 }
 0x27d   : > { %v3935_v42 = vadd.f32 %v3934_v17, %v3906_v63 }
 0x27e   : > { %3983 = vst [vmem:[%s6635_s20 + $0x8] sm:$0xff] %v3975_v59  ;;  %v3976_v19 = vmax.f32 %v3968_v20, 0.0 }
 0x280   : > { %v3961_v18 = vpop.f32.mrf.mxu3  ;;  %3984 = vst [vmem:[%s6635_s20 + $0x10] sm:$0xff] %v3976_v19 }
 0x281   : > { %v3962_v50 = vadd.f32 %v3961_v18, %v3933_v56  ;;  %v3953_v27 = vpop.f32.mrf.mxu2 }
 0x282   : > { %v3954_v21 = vadd.f32 %v3953_v27, %v3925_v46 }
 0x283   : > { %v3972_v40 = vadd.f32 %v3962_v50, %v2173_v16 }
 0x284   : > { %v3969_v1 = vadd.f32 %v3954_v21, %v2165_v29 }
 0x285   : > { %v3980_v49 = vmax.f32 %v3972_v40, 0.0 }
 0x286   : > { %v3977_v12 = vmax.f32 %v3969_v1, 0.0 }
 0x287   : > { %3988 = vst [vmem:[%s6635_s20 + $0x30] sm:$0xff] %v3980_v49 }
 0x288   : > { %v3963_v11 = vpop.f32.mrf.mxu3  ;;  %3985 = vst [vmem:[%s6635_s20 + $0x18] sm:$0xff] %v3977_v12 }
 0x289   : > { %v3964_v5 = vadd.f32 %v3963_v11, %v3935_v42  ;;  %v3956_v25 = vpop.f32.mrf.mxu2 }
 0x28a   : > { %v3957_v39 = vadd.f32 %v3956_v25, %v3928_v55 }
 0x28b   : > { %v3973_v3 = vadd.f32 %v3964_v5, %v2175_v57 }
 0x28c   : > { %v3970_v51 = vadd.f32 %v3957_v39, %v2168_v62 }
 0x28d   : > { %v3981_v23 = vmax.f32 %v3973_v3, 0.0 }
 0x28e   : > { %v3978_v9 = vmax.f32 %v3970_v51, 0.0 }
 0x28f   : > { %3989 = vst [vmem:[%s6635_s20 + $0x38] sm:$0xff] %v3981_v23 }
 0x290   : > { %3986 = vst [vmem:[%s6635_s20 + $0x20] sm:$0xff] %v3978_v9 }
 0x291   : > { %v3958_v32 = vpop.f32.mrf.mxu2 }
 0x292   : > { %v3959_v52 = vadd.f32 %v3958_v32, %v3930_v58 }
 0x294   : > { %v3971_v33 = vadd.f32 %v3959_v52, %v2170_v14 }
 0x296   : > { %v3979_v34 = vmax.f32 %v3971_v33, 0.0 }
 0x298   : > { %3987 = vst [vmem:[%s6635_s20 + $0x28] sm:$0xff] %v3979_v34 }
 0x299 PF: > { %s17_s24 = sadd.s32 1, %s5308_s24  }
 0x29a   : > { %p14_p5 = scmp.ge.s32.totalorder %s17_s24, 4  }
 0x29c   :  { %16 = sbr.rel (!%p14_p5) target bundleno = 1 (0x1), region = 85 }

</bundles_post_ra>
